<compile_context>
chip_gen: v7x
topology: tpu7x:2x2x1
jax: 0.10.0
libtpu: 0.0.40
codegen_flags: <defaults>
</compile_context>

<pallas_src>
import jax
import jax.numpy as jnp
from jax.experimental import pallas as pl
from jax.experimental.pallas import tpu as pltpu

H1 = 1024
H2 = 4096
TILE_H2 = 2048      # slab of the 4096-wide hidden layer per grid step (2 steps total)


def decoder_kernel(x_ref, w1_ref, b1_ref, w2_ref, b2_ref, w3_ref, b3_ref,
                   out_ref, h1_ref):
    j = pl.program_id(0)

    @pl.when(j == 0)
    def _():
        # First linear + tanh; h1 kept resident (bf16) in VMEM across all slabs.
        h1 = jnp.tanh(
            jnp.dot(x_ref[...].astype(jnp.bfloat16), w1_ref[...],
                    preferred_element_type=jnp.float32) + b1_ref[...])
        h1_ref[...] = h1.astype(jnp.bfloat16)
        out_ref[...] = jnp.zeros_like(out_ref)

    # Slab of the second linear + tanh (bf16 weights straight into the MXU, f32 acc).
    h2 = jnp.tanh(
        jnp.dot(h1_ref[...], w2_ref[...],
                preferred_element_type=jnp.float32) + b2_ref[...])

    # Partial contribution of this H2 slab to the third linear, accumulated in-place
    # into the resident f32 output block.
    out_ref[...] += jnp.dot(h2.astype(jnp.bfloat16), w3_ref[...],
                            preferred_element_type=jnp.float32)

    @pl.when(j == pl.num_programs(0) - 1)
    def _():
        out_ref[...] += b3_ref[...]


def decoder_forward(x, w1b, b1, w2b, b2, w3b, b3):
    """x: (B, input_dim) f32.  w*b: bf16 weights (in_features, out_features) prepared
    once by prepare_decoder_weights.  b*: f32 biases of shape (1, out_features)."""
    B, input_dim = x.shape
    output_dim = w3b.shape[1]
    assert H2 % TILE_H2 == 0
    n_tiles = H2 // TILE_H2

    flops = 2 * B * (input_dim * H1 + H1 * H2 + H2 * output_dim)
    bytes_accessed = (2 * (input_dim * H1 + H1 * H2 + H2 * output_dim)  # bf16 weights
                      + 4 * (H1 + H2 + output_dim)                      # f32 biases
                      + 4 * B * (input_dim + output_dim))               # x in, out
    cost = pl.CostEstimate(flops=flops,
                           transcendentals=B * (H1 + H2),
                           bytes_accessed=bytes_accessed)

    return pl.pallas_call(
        decoder_kernel,
        out_shape=jax.ShapeDtypeStruct((B, output_dim), jnp.float32),
        grid_spec=pltpu.PrefetchScalarGridSpec(
            num_scalar_prefetch=0,
            grid=(n_tiles,),
            in_specs=[
                pl.BlockSpec((B, input_dim), lambda j: (0, 0)),        # x
                pl.BlockSpec((input_dim, H1), lambda j: (0, 0)),       # W1 (bf16)
                pl.BlockSpec((1, H1), lambda j: (0, 0)),               # b1 (f32)
                pl.BlockSpec((H1, TILE_H2), lambda j: (0, j)),         # W2 slab (bf16)
                pl.BlockSpec((1, TILE_H2), lambda j: (0, j)),          # b2 slab (f32)
                pl.BlockSpec((TILE_H2, output_dim), lambda j: (j, 0)), # W3 slab (bf16)
                pl.BlockSpec((1, output_dim), lambda j: (0, 0)),       # b3 (f32)
            ],
            out_specs=pl.BlockSpec((B, output_dim), lambda j: (0, 0)),
            scratch_shapes=[
                pltpu.VMEM((B, H1), jnp.bfloat16),   # resident h1
            ],
        ),
        compiler_params=pltpu.CompilerParams(
            dimension_semantics=("arbitrary",),
            vmem_limit_bytes=24 << 20,   # footprint ~9 MiB double-buffered
        ),
        cost_estimate=cost,
    )(x, w1b, b1, w2b, b2, w3b, b3)


def prepare_decoder_weights(w1, b1, w2, b2, w3, b3):
    """One-time weight prep (NOT on the per-call path): weights -> bf16, biases f32."""
    return (w1.astype(jnp.bfloat16), b1.astype(jnp.float32),
            w2.astype(jnp.bfloat16), b2.astype(jnp.float32),
            w3.astype(jnp.bfloat16), b3.astype(jnp.float32))


def init_decoder_params(key, input_dim, output_dim, dtype=jnp.float32):
    """Deterministic init mimicking PyTorch nn.Linear default (uniform +-1/sqrt(fan_in)).
    Weights are (in_features, out_features), i.e. transposed vs nn.Linear storage."""
    ks = jax.random.split(key, 6)

    def lin(kw, kb, fan_in, fan_out):
        bound = 1.0 / jnp.sqrt(fan_in)
        w = jax.random.uniform(kw, (fan_in, fan_out), dtype, -bound, bound)
        b = jax.random.uniform(kb, (1, fan_out), dtype, -bound, bound)
        return w, b

    w1, b1 = lin(ks[0], ks[1], input_dim, H1)
    w2, b2 = lin(ks[2], ks[3], H1, H2)
    w3, b3 = lin(ks[4], ks[5], H2, output_dim)
    return w1, b1, w2, b2, w3, b3


if __name__ == "__main__":
    key = jax.random.PRNGKey(0)
    k_x, k_p = jax.random.split(key)

    B = 8            # batch
    input_dim = 32   # Decoder input_dim
    output_dim = 64  # Decoder output_dim

    x = jax.random.normal(k_x, (B, input_dim), dtype=jnp.float32)
    params = init_decoder_params(k_p, input_dim, output_dim)

    # One-time weight preparation (hoisted out of the forward path).
    w1b, b1, w2b, b2, w3b, b3 = prepare_decoder_weights(*params)

    fwd = jax.jit(decoder_forward)
    out = jax.block_until_ready(fwd(x, w1b, b1, w2b, b2, w3b, b3))

    # Reference in plain JAX mirroring exactly what the kernel computes
    # (bf16 weights / bf16-cast activations, f32 accumulation).
    xb = x.astype(jnp.bfloat16)
    h1 = jnp.tanh(jnp.dot(xb, w1b, preferred_element_type=jnp.float32) + b1)
    h2 = jnp.tanh(jnp.dot(h1.astype(jnp.bfloat16), w2b,
                          preferred_element_type=jnp.float32) + b2)
    ref = jnp.dot(h2.astype(jnp.bfloat16), w3b,
                  preferred_element_type=jnp.float32) + b3

    assert out.shape == (B, output_dim)
    assert jnp.allclose(out, ref, atol=2e-3, rtol=2e-3), "mismatch vs reference"

    print("KERNEL_OK")
</pallas_src>

<mosaic_0001>
module attributes {stable_mosaic.version = 11 : i64} {
  func.func @decoder_kernel(%arg0: i32, %arg1: memref<8x32xf32, #tpu.memory_space<vmem>>, %arg2: memref<32x1024xbf16, #tpu.memory_space<vmem>>, %arg3: memref<1x1024xf32, #tpu.memory_space<vmem>>, %arg4: memref<1024x2048xbf16, #tpu.memory_space<vmem>>, %arg5: memref<1x2048xf32, #tpu.memory_space<vmem>>, %arg6: memref<2048x64xbf16, #tpu.memory_space<vmem>>, %arg7: memref<1x64xf32, #tpu.memory_space<vmem>>, %arg8: memref<8x64xf32, #tpu.memory_space<vmem>>, %arg9: memref<8x1024xbf16, #tpu.memory_space<vmem>>) attributes {dimension_semantics = [#tpu.dimension_semantics<arbitrary>], iteration_bounds = array<i64: 2>, scalar_prefetch = 0 : i64, scratch_operands = 1 : i64, tpu.core_type = #tpu.core_type<tc>, window_params = [{pipeline_mode = #tpu.pipeline_mode<synchronous>, transform_indices = @transform_0, window_bounds = array<i64: 8, 32>}, {pipeline_mode = #tpu.pipeline_mode<synchronous>, transform_indices = @transform_1, window_bounds = array<i64: 32, 1024>}, {pipeline_mode = #tpu.pipeline_mode<synchronous>, transform_indices = @transform_2, window_bounds = array<i64: 1, 1024>}, {transform_indices = @transform_3, window_bounds = array<i64: 1024, 2048>}, {transform_indices = @transform_4, window_bounds = array<i64: 1, 2048>}, {transform_indices = @transform_5, window_bounds = array<i64: 2048, 64>}, {pipeline_mode = #tpu.pipeline_mode<synchronous>, transform_indices = @transform_6, window_bounds = array<i64: 1, 64>}, {pipeline_mode = #tpu.pipeline_mode<synchronous>, transform_indices = @transform_7, window_bounds = array<i64: 8, 64>}]} {
    %c0_i32 = arith.constant 0 : i32
    %0 = arith.cmpi eq, %arg0, %c0_i32 : i32
    %1 = arith.extui %0 : i1 to i32
    %c0_i32_0 = arith.constant 0 : i32
    %2 = arith.cmpi ne, %1, %c0_i32_0 : i32
    scf.if %2 {
      %c0_14 = arith.constant 0 : index
      %c0_15 = arith.constant 0 : index
      %19 = vector.load %arg1[%c0_14, %c0_15] : memref<8x32xf32, #tpu.memory_space<vmem>>, vector<8x32xf32>
      %20 = arith.truncf %19 : vector<8x32xf32> to vector<8x32xbf16>
      %c0_16 = arith.constant 0 : index
      %c0_17 = arith.constant 0 : index
      %21 = vector.load %arg2[%c0_16, %c0_17] : memref<32x1024xbf16, #tpu.memory_space<vmem>>, vector<32x1024xbf16>
      %cst_18 = arith.constant dense<0.000000e+00> : vector<8x1024xf32>
      %22 = tpu.matmul %20, %21, %cst_18 {dimension_numbers = #tpu.dot_dimension_numbers<[1], [0], [0], [1], [0, 0, 1, 1], [], []>} : vector<8x32xbf16>, vector<32x1024xbf16>, vector<8x1024xf32> -> vector<8x1024xf32>
      %c0_19 = arith.constant 0 : index
      %c0_20 = arith.constant 0 : index
      %23 = vector.load %arg3[%c0_19, %c0_20] : memref<1x1024xf32, #tpu.memory_space<vmem>>, vector<1x1024xf32>
      %24 = vector.broadcast %23 : vector<1x1024xf32> to vector<8x1024xf32>
      %25 = arith.addf %22, %24 : vector<8x1024xf32>
      %26 = math.tanh %25 : vector<8x1024xf32>
      %27 = arith.truncf %26 : vector<8x1024xf32> to vector<8x1024xbf16>
      %c0_21 = arith.constant 0 : index
      %c0_22 = arith.constant 0 : index
      %28 = vector.load %arg9[%c0_21, %c0_22] : memref<8x1024xbf16, #tpu.memory_space<vmem>>, vector<8x1024xbf16>
      tpu.vector_store %arg9[%c0_21, %c0_22], %27 {strides = array<i32>} : memref<8x1024xbf16, #tpu.memory_space<vmem>>, vector<8x1024xbf16>,
      %cst_23 = arith.constant 0.000000e+00 : f32
      %29 = vector.broadcast %cst_23 : f32 to vector<8x64xf32>
      %c0_24 = arith.constant 0 : index
      %c0_25 = arith.constant 0 : index
      %30 = vector.load %arg8[%c0_24, %c0_25] : memref<8x64xf32, #tpu.memory_space<vmem>>, vector<8x64xf32>
      tpu.vector_store %arg8[%c0_24, %c0_25], %29 {strides = array<i32>} : memref<8x64xf32, #tpu.memory_space<vmem>>, vector<8x64xf32>,
    } else {
    }
    %c0 = arith.constant 0 : index
    %c0_1 = arith.constant 0 : index
    %3 = vector.load %arg9[%c0, %c0_1] : memref<8x1024xbf16, #tpu.memory_space<vmem>>, vector<8x1024xbf16>
    %c0_2 = arith.constant 0 : index
    %c0_3 = arith.constant 0 : index
    %4 = vector.load %arg4[%c0_2, %c0_3] : memref<1024x2048xbf16, #tpu.memory_space<vmem>>, vector<1024x2048xbf16>
    %cst = arith.constant dense<0.000000e+00> : vector<8x2048xf32>
    %5 = tpu.matmul %3, %4, %cst {dimension_numbers = #tpu.dot_dimension_numbers<[1], [0], [0], [1], [0, 0, 1, 1], [], []>} : vector<8x1024xbf16>, vector<1024x2048xbf16>, vector<8x2048xf32> -> vector<8x2048xf32>
    %c0_4 = arith.constant 0 : index
    %c0_5 = arith.constant 0 : index
    %6 = vector.load %arg5[%c0_4, %c0_5] : memref<1x2048xf32, #tpu.memory_space<vmem>>, vector<1x2048xf32>
    %7 = vector.broadcast %6 : vector<1x2048xf32> to vector<8x2048xf32>
    %8 = arith.addf %5, %7 : vector<8x2048xf32>
    %9 = math.tanh %8 : vector<8x2048xf32>
    %c0_6 = arith.constant 0 : index
    %c0_7 = arith.constant 0 : index
    %10 = vector.load %arg8[%c0_6, %c0_7] : memref<8x64xf32, #tpu.memory_space<vmem>>, vector<8x64xf32>
    %11 = arith.truncf %9 : vector<8x2048xf32> to vector<8x2048xbf16>
    %c0_8 = arith.constant 0 : index
    %c0_9 = arith.constant 0 : index
    %12 = vector.load %arg6[%c0_8, %c0_9] : memref<2048x64xbf16, #tpu.memory_space<vmem>>, vector<2048x64xbf16>
    %cst_10 = arith.constant dense<0.000000e+00> : vector<8x64xf32>
    %13 = tpu.matmul %11, %12, %cst_10 {dimension_numbers = #tpu.dot_dimension_numbers<[1], [0], [0], [1], [0, 0, 1, 1], [], []>} : vector<8x2048xbf16>, vector<2048x64xbf16>, vector<8x64xf32> -> vector<8x64xf32>
    %14 = arith.addf %10, %13 : vector<8x64xf32>
    %c0_11 = arith.constant 0 : index
    %c0_12 = arith.constant 0 : index
    %15 = vector.load %arg8[%c0_11, %c0_12] : memref<8x64xf32, #tpu.memory_space<vmem>>, vector<8x64xf32>
    tpu.vector_store %arg8[%c0_11, %c0_12], %14 {strides = array<i32>} : memref<8x64xf32, #tpu.memory_space<vmem>>, vector<8x64xf32>,
    %c1_i32 = arith.constant 1 : i32
    %16 = arith.cmpi eq, %arg0, %c1_i32 : i32
    %17 = arith.extui %16 : i1 to i32
    %c0_i32_13 = arith.constant 0 : i32
    %18 = arith.cmpi ne, %17, %c0_i32_13 : i32
    scf.if %18 {
      %c0_14 = arith.constant 0 : index
      %c0_15 = arith.constant 0 : index
      %19 = vector.load %arg8[%c0_14, %c0_15] : memref<8x64xf32, #tpu.memory_space<vmem>>, vector<8x64xf32>
      %c0_16 = arith.constant 0 : index
      %c0_17 = arith.constant 0 : index
      %20 = vector.load %arg7[%c0_16, %c0_17] : memref<1x64xf32, #tpu.memory_space<vmem>>, vector<1x64xf32>
      %21 = vector.broadcast %20 : vector<1x64xf32> to vector<8x64xf32>
      %22 = arith.addf %19, %21 : vector<8x64xf32>
      %c0_18 = arith.constant 0 : index
      %c0_19 = arith.constant 0 : index
      %23 = vector.load %arg8[%c0_18, %c0_19] : memref<8x64xf32, #tpu.memory_space<vmem>>, vector<8x64xf32>
      tpu.vector_store %arg8[%c0_18, %c0_19], %22 {strides = array<i32>} : memref<8x64xf32, #tpu.memory_space<vmem>>, vector<8x64xf32>,
    } else {
    }
    return
  }
  func.func @transform_0(%arg0: i32) -> (i32, i32) {
    %c0_i32 = arith.constant 0 : i32
    %c0_i32_0 = arith.constant 0 : i32
    %c0_i32_1 = arith.constant 0 : i32
    return %c0_i32, %c0_i32_0 : i32, i32
  }
  func.func @transform_1(%arg0: i32) -> (i32, i32) {
    %c0_i32 = arith.constant 0 : i32
    %c0_i32_0 = arith.constant 0 : i32
    %c0_i32_1 = arith.constant 0 : i32
    return %c0_i32, %c0_i32_0 : i32, i32
  }
  func.func @transform_2(%arg0: i32) -> (i32, i32) {
    %c0_i32 = arith.constant 0 : i32
    %c0_i32_0 = arith.constant 0 : i32
    %c0_i32_1 = arith.constant 0 : i32
    return %c0_i32, %c0_i32_0 : i32, i32
  }
  func.func @transform_3(%arg0: i32) -> (i32, i32) {
    %c0_i32 = arith.constant 0 : i32
    %c0_i32_0 = arith.constant 0 : i32
    return %c0_i32, %arg0 : i32, i32
  }
  func.func @transform_4(%arg0: i32) -> (i32, i32) {
    %c0_i32 = arith.constant 0 : i32
    %c0_i32_0 = arith.constant 0 : i32
    return %c0_i32, %arg0 : i32, i32
  }
  func.func @transform_5(%arg0: i32) -> (i32, i32) {
    %c0_i32 = arith.constant 0 : i32
    %c0_i32_0 = arith.constant 0 : i32
    return %arg0, %c0_i32 : i32, i32
  }
  func.func @transform_6(%arg0: i32) -> (i32, i32) {
    %c0_i32 = arith.constant 0 : i32
    %c0_i32_0 = arith.constant 0 : i32
    %c0_i32_1 = arith.constant 0 : i32
    return %c0_i32, %c0_i32_0 : i32, i32
  }
  func.func @transform_7(%arg0: i32) -> (i32, i32) {
    %c0_i32 = arith.constant 0 : i32
    %c0_i32_0 = arith.constant 0 : i32
    %c0_i32_1 = arith.constant 0 : i32
    return %c0_i32, %c0_i32_0 : i32, i32
  }
}

</mosaic_0001>

<bundles_post_ra>
// kernel: decoder_forward.1
= control target key start
LH: loop header
LB: loop body
LE: loop exit
PB: predicated region body
PF: predicated region fallthrough
CT: control target
= control target key end

     0   :  { %s13578_s0 = inlined_call_operand.hbm [shape: f32[8,32], index: 0, kind: input, shape index: {}]   ;;  %s13579_s1 = inlined_call_operand.hbm [shape: bf16[32,1024], index: 1, kind: input, shape index: {}]   ;;  %s13580_s2 = inlined_call_operand.hbm [shape: f32[1,1024], index: 2, kind: input, shape index: {}]   ;;  %s13581_s3 = inlined_call_operand.hbm [shape: bf16[1024,4096], index: 3, kind: input, shape index: {}]   ;;  %s13582_s4 = inlined_call_operand.hbm [shape: f32[1,4096], index: 4, kind: input, shape index: {}]   ;;  %s13583_s5 = inlined_call_operand.vmem [shape: bf16[4096,64], index: 5, kind: input, shape index: {}]   ;;  %s13584_s6 = inlined_call_operand.hbm [shape: f32[1,64], index: 6, kind: input, shape index: {}]   ;;  %s13585_s7 = inlined_call_operand.hbm [shape: f32[8,64], index: 7, kind: output, shape index: {}]  }
   0x1   :  { %13598 = sst [smem:[#allocation22_spill]] %s13579_s1 }
   0x2   :  { %13599 = sst [smem:[#allocation23_spill]] %s13581_s3 }
   0x3   :  { %13600 = sst [smem:[#allocation24_spill]] %s13585_s7 }
   0x4   :  { %12 = vsyncpa [#allocation4], 0 }
   0x5   :  { %13 = vsyncpa [#allocation7], 0 }
   0x6   :  { %14 = vsyncpa [#allocation10], 0 }
   0x7   :  { %16 = vsyncpa [#allocation10 + $0x1], 0 }
   0x8   :  { %17 = vsyncpa [#allocation13], 0 }
   0x9   :  { %18 = vsyncpa [#allocation5], 0  ;;  %s11946_s24 = smov 0   ;;  %s11948_s25 = smov 0  }
   0xa   :  { %s11950_s26 = smov 0   ;;  %s11952_s27 = smov 0  }
   0xb LB: > { %s11965_s28 = sadd.s32 4294967295, %s11890_s27   ;;  %p107_p0 = scmp.ne.s32.totalorder %s11882_s25, %s11878_s24  ;;  %s11890_s27 = sphi %s11952_s27, %s13625_s27   ;;  %s11886_s26 = sphi %s11950_s26, %s13629_s26   ;;  %s11882_s25 = sphi %s11948_s25, %s13628_s25   ;;  %s11878_s24 = sphi %s11946_s24, %s13627_s24  }
   0xc   : > { %p13586_p1 = scmp.eq.s32.totalorder %s11965_s28, 0  ;;  %p9853_p2 = scmp.ge.s32.totalorder %s11890_s27, 1 }
   0xd   : > { %p212_p3 = scmp.lt.s32.totalorder %s11890_s27, 3  ;;  %s11892_s8 = smov [#allocation6]  }
   0xe   : > { %p11974_p5 = por %p13586_p1, %p107_p0  ;;  %s235_s9 = sshll.u32 %s11892_s8, 4  ;;  %s236_s9 = int_to_ptr.vmem [resolvable:$true] %s235_s9 }
   0xf   : > { %p11978_p6 = pnand %p9853_p2, %p212_p3  ;;  %s11991_s11 = sadd.s32 1, %s11890_s27  }
  0x10   : > { %s13601_s29 = scalar_select %p11974_p5, 1, 0 }
  0x11   : > { %s13602_s30 = scalar_select %p11978_p6, 1, 0 }
  0x12   : > { %p11383_p7 = pneg %p11978_p6  ;;  %13604 = sst [smem:[#allocation20_spill]] %s11991_s11 }
  0x13   : > { %s94_s12 = sadd.s32 1, %s11886_s26  ;;  %s91_s13 = ssub.s32 %s11890_s27, %s11991_s11 }
  0x14   : > { %p11986_p8 = pnand %p11383_p7, %p13586_p1  ;;  %s13605_s1 = sld [smem:[#allocation22_spill]] }
  0x16   : > { %s13603_s10 = scalar_select %p11986_p8, 1, 0 }
  0x17   : > { %p12004_p10 = pneg %p11986_p8 }
  0x1a   : > { %s11642_s16 = scalar_lea.hbm %s13605_s1, 2048 }
  0x1b   : > { %p11643_p9 = scmp.ne.s32.totalorder %s13605_s1, %s11642_s16  ;;  %p11649_p13 = scmp.lt.u32.totalorder %s11642_s16, %s13605_s1 }
  0x1d   : > { %p11645_p11 = pnand %p12004_p10, %p11643_p9 }
  0x1f   : > { %p11646_p12 = pneg %p11645_p11 }
  0x21   : > { %p11651_p0 = pnand %p11649_p13, %p11646_p12 }
  0x23   : > { %11654 = shalt.err (!%p11651_p0)
}
  0x24   : > { %s11655_s22 = scalar_lea.vmem %s236_s9, 2048  ;;  %p11663_p4 = scmp.lt.s32.totalorder %s236_s9, %s236_s9 }
  0x25   : > { %p11656_p2 = scmp.ne.s32.totalorder %s236_s9, %s11655_s22  ;;  %p11664_p1 = scmp.lt.s32.totalorder %s11655_s22, %s11655_s22 }
  0x27   : > { %p11658_p3 = pnand %p11656_p2, %p12004_p10  ;;  %p11665_p5 = por %p11664_p1, %p11663_p4 }
  0x29   : > { %p11659_p7 = pneg %p11658_p3 }
  0x2b   : > { %p11666_p6 = pnand %p11665_p5, %p11659_p7 }
  0x2d   : > { %11669 = shalt.err (!%p11666_p6)
}
  0x2e   : > { %s11893_s23 = smov 512   ;;  %s11894_s24 = smov 32  }
  0x2f   : > { %11389 = dma.hbm_to_vmem [thread:$0]  (!%p11986_p8), %s13605_s1, 2048, %s236_s9, [#allocation7], %s11893_s23, %s11893_s23, %s11894_s24  }
  0x30   : > { %p92_p1 = scmp.eq.s32.totalorder %s91_s13, 0  ;;  %p101_p4 = scmp.ne.s32.totalorder %s11886_s26, %s11882_s25 }
  0x31   : > { %p102_p5 = scmp.eq.s32.totalorder %s11890_s27, 0  ;;  %p11407_p6 = scmp.lt.s32.totalorder %s11890_s27, 2 }
  0x32   : > { %s12025_s15 = scalar_select %p92_p1, %s11886_s26, %s94_s12  }
  0x33   : > { %p103_p9 = por %p102_p5, %p101_p4  ;;  %s271_s16 = sand.u32 1, %s11890_s27  }
  0x34   : > { %13607 = sst [smem:[#allocation21_spill]] %s12025_s15  ;;  %s13593_s17 = sand.u32 1, %s11886_s26  }
  0x35   : > { %s9859_s18 = sshll.u32 %s13593_s17, 13  ;;  %s11065_s20 = sshll.u32 %s11890_s27, 10 }
  0x36   : > { %s13608_s3 = sld [smem:[#allocation23_spill]]  ;;  %s275_s9 = scalar_lea.vmem [#allocation9], %s9859_s18 }
  0x37   : > { %s282_s13 = sshll.u32 %s275_s9, 4  ;;  %p12037_p11 = pnand %p11407_p6, %p103_p9  ;;  %s12041_s13 = int_to_ptr.vmem [resolvable:$true] %s282_s13 }
  0x38   : > { %s12043_s23 = scalar_lea.sflag [#allocation10], %s271_s16 }
  0x39   : > { %s13609_s12 = scalar_select %p12037_p11, 1, 0 }
  0x3a   : > { %p13595_p13 = pneg %p12037_p11 }
  0x3c   : > { %s12035_s11 = scalar_lea.hbm %s13608_s3, %s11065_s20  ;;  %s11675_s18 = scalar_lea.hbm %s13608_s3, 262144 }
  0x3d   : > { %s11670_s24 = scalar_lea.hbm %s12035_s11, 131072  ;;  %p11676_p3 = scmp.lt.u32.totalorder %s12035_s11, %s13608_s3 }
  0x3e   : > { %p11671_p12 = scmp.ne.s32.totalorder %s12035_s11, %s11670_s24  ;;  %p11677_p7 = scmp.lt.u32.totalorder %s11675_s18, %s11670_s24 }
  0x3f   : > { %p11679_p4 = scmp.lt.u32.totalorder %s11670_s24, %s12035_s11 }
  0x40   : > { %p11673_p0 = pnand %p13595_p13, %p11671_p12  ;;  %p11678_p1 = por %p11677_p7, %p11676_p3 }
  0x42   : > { %p11674_p2 = pneg %p11673_p0  ;;  %p11680_p5 = por %p11679_p4, %p11678_p1 }
  0x44   : > { %p11681_p6 = pnand %p11680_p5, %p11674_p2 }
  0x46   : > { %11684 = shalt.err (!%p11681_p6)
}
  0x47   : > { %s11685_s16 = scalar_lea.vmem %s12041_s13, 131072  ;;  %s11895_s22 = smov [#allocation9]  }
  0x48   : > { %p11686_p9 = scmp.ne.s32.totalorder %s12041_s13, %s11685_s16  ;;  %s11690_s9 = sshll.u32 %s11895_s22, 4  ;;  %s11691_s9 = int_to_ptr.vmem [resolvable:$false] %s11690_s9 }
  0x49   : > { %s11692_s8 = scalar_lea.vmem %s11691_s9, 262144  ;;  %p11693_p8 = scmp.lt.s32.totalorder %s12041_s13, %s11691_s9 }
  0x4a   : > { %p11688_p12 = pnand %p11686_p9, %p13595_p13  ;;  %p11694_p3 = scmp.lt.s32.totalorder %s11692_s8, %s11685_s16 }
  0x4c   : > { %p11689_p0 = pneg %p11688_p12  ;;  %p11695_p7 = por %p11694_p3, %p11693_p8 }
  0x4e   : > { %p11696_p1 = pnand %p11695_p7, %p11689_p0 }
  0x50   : > { %11699 = shalt.err (!%p11696_p1)
}
  0x51   : > { %s11896_s24 = smov 2048   ;;  %s11897_s14 = smov 1024  }
  0x52   : > { %s11898_s18 = smov 64   ;;  %s11899_s20 = smov [#allocation3]  }
  0x53   : > { %11399 = dma.hbm_to_vmem [thread:$0]  (!%p12037_p11), %s12035_s11, 131072, %s12041_s13, %s12043_s23, %s11896_s24, %s11897_s14, %s11898_s18  }
  0x54   : > { %s225_s21 = sshll.u32 %s11899_s20, 4  ;;  %s11900_s22 = smov [#allocation8]   ;;  %s226_s21 = int_to_ptr.vmem [resolvable:$true] %s225_s21 }
  0x55   : > { %s249_s17 = sshll.u32 %s11900_s22, 4  ;;  %s11700_s8 = scalar_lea.hbm %s13578_s0, 128  ;;  %s250_s17 = int_to_ptr.vmem [resolvable:$true] %s249_s17 }
  0x56   : > { %p11701_p8 = scmp.ne.s32.totalorder %s13578_s0, %s11700_s8  ;;  %p11707_p5 = scmp.lt.u32.totalorder %s11700_s8, %s13578_s0 }
  0x58   : > { %p11703_p2 = pnand %p11701_p8, %p12004_p10 }
  0x5a   : > { %p11704_p4 = pneg %p11703_p2 }
  0x5c   : > { %p11709_p6 = pnand %p11707_p5, %p11704_p4 }
  0x5e   : > { %11712 = shalt.err (!%p11709_p6)
}
  0x5f   : > { %s11713_s11 = scalar_lea.vmem %s226_s21, 128  ;;  %p11721_p3 = scmp.lt.s32.totalorder %s226_s21, %s226_s21 }
  0x60   : > { %p11714_p9 = scmp.ne.s32.totalorder %s226_s21, %s11713_s11  ;;  %p11722_p7 = scmp.lt.s32.totalorder %s11713_s11, %s11713_s11 }
  0x62   : > { %p11716_p12 = pnand %p11714_p9, %p12004_p10  ;;  %p11723_p1 = por %p11722_p7, %p11721_p3 }
  0x64   : > { %p11717_p0 = pneg %p11716_p12 }
  0x66   : > { %p11724_p13 = pnand %p11723_p1, %p11717_p0 }
  0x68   : > { %11727 = shalt.err (!%p11724_p13)
}
  0x69   : > { %p13610_p8 = scmp.ne.s32.totalorder %s13603_s10, 0  ;;  %s11728_s13 = scalar_lea.hbm %s13580_s2, 128 }
  0x6a   : > { %p11729_p2 = scmp.ne.s32.totalorder %s13580_s2, %s11728_s13  ;;  %p11735_p13 = scmp.lt.u32.totalorder %s11728_s13, %s13580_s2 }
  0x6b   : > { %11386 = dma.hbm_to_vmem [thread:$0]  (!%p13610_p8), %s13578_s0, 128, %s226_s21, [#allocation4]  }
  0x6c   : > { %p11731_p4 = pnand %p11729_p2, %p12004_p10 }
  0x6e   : > { %p11732_p5 = pneg %p11731_p4 }
  0x70   : > { %p11737_p6 = pnand %p11735_p13, %p11732_p5 }
  0x72   : > { %11740 = shalt.err (!%p11737_p6)
}
  0x73   : > { %s11741_s22 = scalar_lea.vmem %s250_s17, 128  ;;  %p11749_p3 = scmp.lt.s32.totalorder %s250_s17, %s250_s17 }
  0x74   : > { %p11742_p9 = scmp.ne.s32.totalorder %s250_s17, %s11741_s22  ;;  %p11750_p7 = scmp.lt.s32.totalorder %s11741_s22, %s11741_s22 }
  0x76   : > { %p11744_p12 = pnand %p11742_p9, %p12004_p10  ;;  %p11751_p1 = por %p11750_p7, %p11749_p3 }
  0x78   : > { %p11745_p0 = pneg %p11744_p12 }
  0x7a   : > { %p11752_p11 = pnand %p11751_p1, %p11745_p0 }
  0x7c   : > { %11755 = shalt.err (!%p11752_p11)
}
  0x7d   : > { %11392 = dma.hbm_to_vmem [thread:$0]  (!%p13610_p8), %s13580_s2, 128, %s250_s17, [#allocation7]  }
  0x7e   : > { %s11901_s16 = smov [#allocation12]   ;;  %s13611_s11 = sand.u32 1, %s11886_s26  }
  0x7f   : > { %s260_s8 = sshll.u32 %s11901_s16, 4  ;;  %s9862_s1 = sshll.u32 %s13611_s11, 4  ;;  %s261_s8 = int_to_ptr.vmem [resolvable:$true] %s260_s8 }
  0x80   : > { %s11756_s15 = scalar_lea.hbm %s13584_s6, 16 }
  0x81   : > { %p11757_p11 = scmp.ne.s32.totalorder %s13584_s6, %s11756_s15  ;;  %p11763_p5 = scmp.lt.u32.totalorder %s11756_s15, %s13584_s6 }
  0x83   : > { %p11759_p2 = pnand %p11757_p11, %p12004_p10 }
  0x85   : > { %p11760_p4 = pneg %p11759_p2 }
  0x87   : > { %p11765_p13 = pnand %p11763_p5, %p11760_p4 }
  0x89   : > { %11768 = shalt.err (!%p11765_p13)
}
  0x8a   : > { %s11769_s17 = scalar_lea.vmem %s261_s8, 16  ;;  %s11776_s20 = scalar_lea.vmem %s261_s8, 32 }
  0x8b   : > { %p11770_p6 = scmp.ne.s32.totalorder %s261_s8, %s11769_s17  ;;  %p11777_p0 = scmp.lt.s32.totalorder %s261_s8, %s261_s8 }
  0x8c   : > { %p11778_p3 = scmp.lt.s32.totalorder %s11776_s20, %s11769_s17 }
  0x8d   : > { %p11772_p9 = pnand %p11770_p6, %p12004_p10 }
  0x8e   : > { %p11779_p7 = por %p11778_p3, %p11777_p0 }
  0x8f   : > { %p11773_p12 = pneg %p11772_p9 }
  0x91   : > { %p11780_p1 = pnand %p11779_p7, %p11773_p12 }
  0x93   : > { %11783 = shalt.err (!%p11780_p1)
}
  0x94   : > { %11395 = dma.hbm_to_vmem [thread:$0]  (!%p13610_p8), %s13584_s6, 16, %s261_s8, [#allocation13]  }
  0x95   : > { %s11066_s9 = sshll.u32 %s11890_s27, 8  ;;  %s296_s16 = scalar_lea.vmem [#allocation11], %s9862_s1 }
  0x96   : > { %s304_s11 = sshll.u32 %s296_s16, 4  ;;  %s302_s7 = scalar_lea.hbm %s13582_s4, %s11066_s9  ;;  %s305_s11 = int_to_ptr.vmem [resolvable:$true] %s304_s11 }
  0x97   : > { %s11784_s15 = scalar_lea.hbm %s302_s7, 256  ;;  %p13612_p11 = scmp.ne.s32.totalorder %s13609_s12, 0 }
  0x98   : > { %p11785_p10 = scmp.ne.s32.totalorder %s302_s7, %s11784_s15  ;;  %s11789_s24 = scalar_lea.hbm %s13582_s4, 512 }
  0x99   : > { %p13613_p2 = pneg %p13612_p11  ;;  %p11790_p8 = scmp.lt.u32.totalorder %s302_s7, %s13582_s4 }
  0x9a   : > { %p11791_p13 = scmp.lt.u32.totalorder %s11789_s24, %s11784_s15  ;;  %p11793_p9 = scmp.lt.u32.totalorder %s11784_s15, %s302_s7 }
  0x9b   : > { %p11787_p4 = pnand %p11785_p10, %p13613_p2 }
  0x9c   : > { %p11792_p6 = por %p11791_p13, %p11790_p8 }
  0x9d   : > { %p11788_p5 = pneg %p11787_p4 }
  0x9e   : > { %p11794_p12 = por %p11793_p9, %p11792_p6 }
  0xa0   : > { %p11795_p0 = pnand %p11794_p12, %p11788_p5 }
  0xa2   : > { %11798 = shalt.err (!%p11795_p0)
}
  0xa3   : > { %s11799_s27 = scalar_lea.vmem %s305_s11, 256  ;;  %p13614_p7 = pmov %p13613_p2 }
  0xa4   : > { %p11800_p3 = scmp.ne.s32.totalorder %s305_s11, %s11799_s27  ;;  %s11902_s1 = smov [#allocation11]  }
  0xa5   : > { %s11804_s18 = sshll.u32 %s11902_s1, 4  ;;  %s11805_s18 = int_to_ptr.vmem [resolvable:$false] %s11804_s18 }
  0xa6   : > { %p11802_p1 = pnand %p11800_p3, %p13614_p7  ;;  %s11806_s17 = scalar_lea.vmem %s11805_s18, 512 }
  0xa7   : > { %p11807_p2 = scmp.lt.s32.totalorder %s305_s11, %s11805_s18  ;;  %p11808_p4 = scmp.lt.s32.totalorder %s11806_s17, %s11799_s27 }
  0xa8   : > { %p11803_p10 = pneg %p11802_p1 }
  0xa9   : > { %p11809_p8 = por %p11808_p4, %p11807_p2 }
  0xab   : > { %p11810_p13 = pnand %p11809_p8, %p11803_p10 }
  0xad   : > { %11813 = shalt.err (!%p11810_p13)
}
  0xae   : > { %11402 = dma.hbm_to_vmem [thread:$0]  (!%p13612_p11), %s302_s7, 256, %s305_s11, %s12043_s23  }
  0xaf   : > { %p13615_p5 = scmp.ne.s32.totalorder %s13602_s30, 0 }
  0xb0   : > { %p13616_p6 = scmp.eq.s32.totalorder (!%p13615_p5), %s11965_s28, 0 }
  0xb1   : > { %322 = sbr.rel (%p13615_p5) target bundleno = 1969 (0x7b1), region = 48 }
  0xb8   : > { %11857 = dma.done.wait (%p13616_p6), [#allocation4], 128   ;;  %p13617_p9 = pmov %p13616_p6 }
  0xb9   : > { %p13618_p12 = pmov %p13616_p6 }
  0xba   : > { %11859 = vsyncadd (%p13617_p9), [#allocation4], 4294967168 }
  0xbb   : > { %11861 = dma.done.wait (%p13618_p12), [#allocation7], 2176   ;;  %p13619_p0 = pmov %p13616_p6 }
  0xbc   : > { %s336_s12 = sand.u32 1, %s11965_s28   ;;  %s338_s23 = sand.u32 1, %s11882_s25  }
  0xbd   : > { %11863 = vsyncadd (%p13619_p0), [#allocation7], 4294965120  ;;  %s9869_s20 = sshll.u32 %s338_s23, 13  ;;  %s337_s30 = scalar_lea.sflag [#allocation10], %s336_s12 }
  0xbe   : > { %s12158_s22 = scalar_lea.vmem [#allocation9], %s9869_s20  ;;  %p13620_p11 = scmp.ne.s32.totalorder %s13601_s29, 0 }
  0xc0   : > { %11865 = dma.done.wait (%p13620_p11), %s337_s30, 131328  }
  0xc1   : > { %11867 = vsyncadd (%p13620_p11), %s337_s30, 4294835968  ;;  %s12164_s21 = sshll.u32 %s338_s23, 4  ;;  %p13621_p3 = pmov %p13619_p0 }
  0xc2   : > { %s349_s9 = scalar_lea.vmem [#allocation11], %s12164_s21 }
  0xc3   : > { %11869 = dma.done.wait (%p13621_p3), [#allocation13], 16   ;;  %p13622_p7 = pmov %p13619_p0 }
  0xc4   : > { %s9872_s16 = sshll.u32 %s11965_s28, 8  ;;  %p13623_p10 = scmp.ne.s32.totalorder %s11965_s28, 0 }
  0xc5   : > { %11871 = vsyncadd (%p13622_p7), [#allocation13], 4294967280  ;;  %p392_p1 = scmp.lt.s32.totalorder %s9872_s16, 511  ;;  %v404_v0 = vld [vmem:[#allocation6] sm:$0xff] (!%p13623_p10)  ;;  %v405_v2 = vld [vmem:[#allocation6 + $0x8] sm:$0xff] (!%p13623_p10)  ;;  %v11903_v8 = vmov (!%p13623_p10), 0   ;;  %v422_v36 = vlaneseq (!%p13623_p10) }
  0xc6   : > { %401 = sbr.rel (%p13623_p10) target bundleno = 448 (0x1c0), region = 76  ;;  %v408_v1 = vld [vmem:[#allocation6 + $0x20] sm:$0xff] (!%p13623_p10)  ;;  %v409_v4 = vld [vmem:[#allocation6 + $0x28] sm:$0xff] (!%p13623_p10)  ;;  %578 = vmatprep.mubr.bf16.mxu0 (!%p13623_p10), %v11903_v8  ;;  %619 = vmatprep.mubr.bf16.mxu1 (!%p13623_p10), %v11903_v8  ;;  %v406_v15 = vld [vmem:[#allocation6 + $0x10] sm:$0xff] (!%p13623_p10)  ;;  %vm542_vm0 = vcmask (!%p13623_p10), 261120   ;;  %vm754_vm1 = vcmask (!%p13623_p10), 523264  }
  0xc7   : > { %s13631_s16 = smov (!%p392_p1, %s9872_s16), 511  ;;  %v9876_v3 = vcombine.high (!%p13623_p10), %v404_v0, %v408_v1  ;;  %v9875_v5 = vcombine.low (!%p13623_p10), %v404_v0, %v408_v1  ;;  %v412_v6 = vld [vmem:[#allocation6 + $0x40] sm:$0xff] (!%p13623_p10)  ;;  %v9878_v9 = vcombine.high (!%p13623_p10), %v405_v2, %v409_v4  ;;  %v9877_v10 = vcombine.low (!%p13623_p10), %v405_v2, %v409_v4  ;;  %v413_v12 = vld [vmem:[#allocation6 + $0x48] sm:$0xff] (!%p13623_p10)  ;;  %v410_v16 = vld [vmem:[#allocation6 + $0x30] sm:$0xff] (!%p13623_p10) }
  0xc8   : > { %s9873_s11 = sshll.u32 %s13631_s16, 2  ;;  %v416_v7 = vld [vmem:[#allocation6 + $0x60] sm:$0xff] (!%p13623_p10)  ;;  %v417_v13 = vld [vmem:[#allocation6 + $0x68] sm:$0xff] (!%p13623_p10)  ;;  %v407_v17 = vld [vmem:[#allocation6 + $0x18] sm:$0xff] (!%p13623_p10)  ;;  %v9880_v22 = vcombine.high (!%p13623_p10), %v406_v15, %v410_v16  ;;  %v9879_v29 = vcombine.low (!%p13623_p10), %v406_v15, %v410_v16  ;;  %v11904_v35 = vmov (!%p13623_p10), 0.0   ;;  %v423_v37 = vshrl.u32 (!%p13623_p10), %v422_v36, 7 }
  0xc9   : > { %s12175_s29 = scalar_lea.vmem %s13583_s5, %s9873_s11  ;;  %v9884_v11 = vcombine.high (!%p13623_p10), %v412_v6, %v416_v7  ;;  %546 = vmatprep.subr.bf16.mxu0 (!%p13623_p10), %v9876_v3  ;;  %v9886_v14 = vcombine.high (!%p13623_p10), %v413_v12, %v417_v13  ;;  %587 = vmatprep.subr.bf16.mxu1 (!%p13623_p10), %v9878_v9  ;;  %v9883_v18 = vcombine.low (!%p13623_p10), %v412_v6, %v416_v7  ;;  %v402_v19 = vld [vmem:[#allocation3] sm:$0xff] (!%p13623_p10)  ;;  %v414_v24 = vld [vmem:[#allocation6 + $0x50] sm:$0xff] (!%p13623_p10)  ;;  %v420_v39 = vld [vmem:[#allocation8] sm:$0xff] (!%p13623_p10) }
  0xca   : > { %547 = vmatpush1.bf16.msra.mxu0 (!%p13623_p10), %v9875_v5  ;;  %v411_v20 = vld [vmem:[#allocation6 + $0x38] sm:$0xff] (!%p13623_p10)  ;;  %588 = vmatpush1.bf16.msra.mxu1 (!%p13623_p10), %v9877_v10  ;;  %v9885_v21 = vcombine.low (!%p13623_p10), %v413_v12, %v417_v13  ;;  %v418_v25 = vld [vmem:[#allocation6 + $0x70] sm:$0xff] (!%p13623_p10)  ;;  %v403_v26 = vpack.c.bf16 (!%p13623_p10), %v402_v19, %v402_v19  ;;  %755 = vst.msk [vmem:[#allocation14] sm:$0xff] (!%p13623_p10), %vm754_vm1, %v11904_v35  ;;  %v424_v38 = vsub.s32 (!%p13623_p10), 0, %v423_v37  ;;  %v432_v40 = vsub.s32 (!%p13623_p10), 2, %v423_v37 }
  0xcb   : > { %548 = vmatprep.subr.bf16.mxu0 (!%p13623_p10), %v9884_v11  ;;  %589 = vmatprep.subr.bf16.mxu1 (!%p13623_p10), %v9886_v14  ;;  %v9882_v23 = vcombine.high (!%p13623_p10), %v407_v17, %v411_v20  ;;  %v415_v27 = vld [vmem:[#allocation6 + $0x58] sm:$0xff] (!%p13623_p10)  ;;  %v9881_v30 = vcombine.low (!%p13623_p10), %v407_v17, %v411_v20  ;;  %v9888_v31 = vcombine.high (!%p13623_p10), %v414_v24, %v418_v25  ;;  %v428_v41 = vsub.s32 (!%p13623_p10), 1, %v423_v37 }
  0xcc   : > { %v419_v28 = vld [vmem:[#allocation6 + $0x78] sm:$0xff] (!%p13623_p10)  ;;  %v9887_v33 = vcombine.low (!%p13623_p10), %v414_v24, %v418_v25  ;;  %v436_v42 = vsub.s32 (!%p13623_p10), 3, %v423_v37  ;;  %v425_v43 = vrot.slane (!%p13623_p10), %v420_v39, %v424_v38  ;;  %v433_v44 = vrot.slane (!%p13623_p10), %v420_v39, %v432_v40 }
  0xcd   : > { %v9890_v32 = vcombine.high %v415_v27, %v419_v28  ;;  %v9889_v34 = vcombine.low %v415_v27, %v419_v28  ;;  %v429_v45 = vrot.slane %v420_v39, %v428_v41  ;;  %v440_v51 = vsub.s32 4, %v423_v37 }
  0xce   : > { %549 = vmatpush1.bf16.msra.mxu0 %v9883_v18  ;;  %590 = vmatpush1.bf16.msra.mxu1 %v9885_v21  ;;  %v437_v46 = vrot.slane %v420_v39, %v436_v42  ;;  %v448_v56 = vsub.s32 6, %v423_v37  ;;  %v444_v57 = vsub.s32 5, %v423_v37  ;;  %v452_v61 = vsub.s32 7, %v423_v37 }
  0xcf   : > { %628 = vmatprep.subr.bf16.mxu0 %v9880_v22  ;;  %669 = vmatprep.subr.bf16.mxu1 %v9882_v23  ;;  %v441_v63 = vrot.slane %v420_v39, %v440_v51 }
  0xd0   : > { %v449_v0 = vrot.slane %v420_v39, %v448_v56  ;;  %v445_v1 = vrot.slane %v420_v39, %v444_v57  ;;  %v453_v2 = vrot.slane %v420_v39, %v452_v61 }
  0xd1   : > { %9891 = vmatmul.mubr.msk.bf16.vlgmr.msra.gmra.mrb[0].mxu0 %vm542_vm0, %v403_v26  ;;  %9892 = vmatmul.mubr.msk.bf16.vlgmr.msra.gmra.mrb[0].mxu1 %vm542_vm0, %v403_v26 }
  0xd2   : > { %629 = vmatpush1.bf16.msra.mxu0 %v9879_v29  ;;  %670 = vmatpush1.bf16.msra.mxu1 %v9881_v30 }
  0xd3   : > { %630 = vmatprep.subr.bf16.mxu0 %v9888_v31  ;;  %671 = vmatprep.subr.bf16.mxu1 %v9890_v32 }
  0xd4   : > { %660 = vmatprep.mubr.bf16.mxu0 %v11903_v8  ;;  %701 = vmatprep.mubr.bf16.mxu1 %v11903_v8 }
  0xd6   : > { %631 = vmatpush1.bf16.msra.mxu0 %v9887_v33  ;;  %672 = vmatpush1.bf16.msra.mxu1 %v9889_v34 }
  0xd9   : > { %9893 = vmatmul.mubr.msk.bf16.vlgmr.msra.gmra.mrb[4].mxu0 %vm542_vm0, %v403_v26  ;;  %9894 = vmatmul.mubr.msk.bf16.vlgmr.msra.gmra.mrb[4].mxu1 %vm542_vm0, %v403_v26 }
 0x1a4   : > { %v580_v47 = vpop.f32.mrb[0].mxu0  ;;  %v621_v49 = vpop.f32.mrb[0].mxu1 }
 0x1a5   : > { %v581_v48 = vadd.f32 %v580_v47, %v425_v43  ;;  %v582_v50 = vpop.f32.mrb[1].mxu0  ;;  %v622_v52 = vadd.f32 %v621_v49, %v433_v44  ;;  %v623_v54 = vpop.f32.mrb[1].mxu1 }
 0x1a6   : > { %v583_v53 = vadd.f32 %v582_v50, %v429_v45  ;;  %v584_v55 = vpop.f32.mrb[2].mxu0  ;;  %v624_v58 = vadd.f32 %v623_v54, %v437_v46  ;;  %v625_v59 = vpop.f32.mrb[2].mxu1 }
 0x1a7   : > { %11458 = vtanh.f32 %v581_v48  ;;  %v585_v60 = vpop.f32.mrb[3].mxu0  ;;  %v626_v62 = vpop.f32.mrb[3].mxu1 }
 0x1a8   : > { %11460 = vtanh.f32 %v622_v52 }
 0x1a9   : > { %11462 = vtanh.f32 %v583_v53 }
 0x1aa   : > { %11464 = vtanh.f32 %v624_v58 }
 0x1ac   : > { %v662_v3 = vpop.f32.mrb[4].mxu0  ;;  %v703_v5 = vpop.f32.mrb[4].mxu1 }
 0x1ad   : > { %v663_v4 = vadd.f32 %v662_v3, %v441_v63  ;;  %v664_v6 = vpop.f32.mrb[5].mxu0  ;;  %v704_v7 = vadd.f32 %v703_v5, %v449_v0  ;;  %v705_v9 = vpop.f32.mrb[5].mxu1 }
 0x1ae   : > { %v665_v8 = vadd.f32 %v664_v6, %v445_v1  ;;  %v666_v10 = vpop.f32.mrb[6].mxu0  ;;  %v706_v11 = vadd.f32 %v705_v9, %v453_v2  ;;  %v707_v12 = vpop.f32.mrb[6].mxu1 }
 0x1af   : > { %11466 = vtanh.f32 %v663_v4  ;;  %v667_v13 = vpop.f32.mrb[7].mxu0  ;;  %v708_v14 = vpop.f32.mrb[7].mxu1 }
 0x1b0   : > { %11468 = vtanh.f32 %v704_v7 }
 0x1b1   : > { %v11459_v15 = vpop.eup %11458  ;;  %11470 = vtanh.f32 %v665_v8 }
 0x1b2   : > { %v11461_v16 = vpop.eup %11460  ;;  %11472 = vtanh.f32 %v706_v11 }
 0x1b3   : > { %v11463_v17 = vpop.eup %11462 }
 0x1b4   : > { %v11465_v18 = vpop.eup %11464  ;;  %v11067_v19 = vpack.c.bf16 %v11463_v17, %v11459_v15 }
 0x1b5   : > { %v11068_v20 = vpack.c.bf16 %v11465_v18, %v11461_v16 }
 0x1b6   : > { %750 = vst [vmem:[#allocation2] sm:$0xff] %v11067_v19 }
 0x1b7   : > { %751 = vst [vmem:[#allocation2 + $0x8] sm:$0xff] %v11068_v20 }
 0x1b9   : > { %v11467_v21 = vpop.eup %11466 }
 0x1ba   : > { %v11469_v22 = vpop.eup %11468 }
 0x1bb   : > { %v11471_v23 = vpop.eup %11470 }
 0x1bc   : > { %v11473_v24 = vpop.eup %11472  ;;  %v11069_v25 = vpack.c.bf16 %v11471_v23, %v11467_v21 }
 0x1bd   : > { %v11070_v26 = vpack.c.bf16 %v11473_v24, %v11469_v22 }
 0x1be   : > { %752 = vst [vmem:[#allocation2 + $0x10] sm:$0xff] %v11069_v25 }
 0x1bf   : > { %753 = vst [vmem:[#allocation2 + $0x18] sm:$0xff] %v11070_v26 }
 0x1c0 PF: > { %v760_v27 = vld [vmem:[%s12158_s22] sm:$0xff]  ;;  %v761_v29 = vld [vmem:[%s12158_s22 + $0x8] sm:$0xff]  ;;  %v12211_v16 = vld [vmem:[#allocation2] sm:$0xff]  ;;  %vm9706_vm2 = vcmask 523264   ;;  %p11059_p2 = scmp.ne.s32.totalorder %s11965_s28, 1 }
 0x1c1   : > { %v768_v28 = vld [vmem:[%s12158_s22 + $0x40] sm:$0xff]  ;;  %v769_v31 = vld [vmem:[%s12158_s22 + $0x48] sm:$0xff]  ;;  %v12217_v20 = vcombine.high %v12211_v16, %v12211_v16 }
 0x1c2   : > { %v9908_v30 = vcombine.high %v760_v27, %v768_v28  ;;  %v9907_v32 = vcombine.low %v760_v27, %v768_v28  ;;  %v776_v33 = vld [vmem:[%s12158_s22 + $0x80] sm:$0xff]  ;;  %v9910_v35 = vcombine.high %v761_v29, %v769_v31  ;;  %v9909_v36 = vcombine.low %v761_v29, %v769_v31  ;;  %v777_v38 = vld [vmem:[%s12158_s22 + $0x88] sm:$0xff] }
 0x1c3   : > { %v784_v34 = vld [vmem:[%s12158_s22 + $0xc0] sm:$0xff]  ;;  %v785_v39 = vld [vmem:[%s12158_s22 + $0xc8] sm:$0xff]  ;;  %7048 = vmatprep.mubr.bf16.mxu0 %v12217_v20  ;;  %7212 = vmatprep.mubr.bf16.mxu1 %v12217_v20 }
 0x1c4   : > { %v9924_v37 = vcombine.high %v776_v33, %v784_v34  ;;  %v792_v40 = vld [vmem:[%s12158_s22 + $0x100] sm:$0xff]  ;;  %7016 = vmatprep.subr.bf16.mxu0 %v9908_v30  ;;  %v9926_v41 = vcombine.high %v777_v38, %v785_v39  ;;  %v793_v43 = vld [vmem:[%s12158_s22 + $0x108] sm:$0xff]  ;;  %7180 = vmatprep.subr.bf16.mxu1 %v9910_v35  ;;  %v9923_v45 = vcombine.low %v776_v33, %v784_v34 }
 0x1c5   : > { %v800_v42 = vld [vmem:[%s12158_s22 + $0x140] sm:$0xff]  ;;  %v801_v44 = vld [vmem:[%s12158_s22 + $0x148] sm:$0xff]  ;;  %7017 = vmatpush1.bf16.msra.mxu0 %v9907_v32  ;;  %7181 = vmatpush1.bf16.msra.mxu1 %v9909_v36  ;;  %v9925_v46 = vcombine.low %v777_v38, %v785_v39 }
 0x1c6   : > { %7018 = vmatprep.subr.bf16.mxu0 %v9924_v37  ;;  %v9940_v47 = vcombine.high %v792_v40, %v800_v42  ;;  %7182 = vmatprep.subr.bf16.mxu1 %v9926_v41  ;;  %v9942_v48 = vcombine.high %v793_v43, %v801_v44  ;;  %v808_v49 = vld [vmem:[%s12158_s22 + $0x180] sm:$0xff]  ;;  %v809_v51 = vld [vmem:[%s12158_s22 + $0x188] sm:$0xff]  ;;  %v9939_v53 = vcombine.low %v792_v40, %v800_v42 }
 0x1c7   : > { %v816_v50 = vld [vmem:[%s12158_s22 + $0x1c0] sm:$0xff]  ;;  %v817_v52 = vld [vmem:[%s12158_s22 + $0x1c8] sm:$0xff]  ;;  %v9941_v54 = vcombine.low %v793_v43, %v801_v44 }
 0x1c8   : > { %v9956_v55 = vcombine.high %v808_v49, %v816_v50  ;;  %v9958_v56 = vcombine.high %v809_v51, %v817_v52  ;;  %v824_v57 = vld [vmem:[%s12158_s22 + $0x200] sm:$0xff]  ;;  %v825_v59 = vld [vmem:[%s12158_s22 + $0x208] sm:$0xff]  ;;  %v9955_v61 = vcombine.low %v808_v49, %v816_v50  ;;  %v9957_v62 = vcombine.low %v809_v51, %v817_v52 }
 0x1c9   : > { %7019 = vmatpush1.bf16.msra.mxu0 %v9923_v45  ;;  %7183 = vmatpush1.bf16.msra.mxu1 %v9925_v46  ;;  %v832_v58 = vld [vmem:[%s12158_s22 + $0x240] sm:$0xff]  ;;  %v833_v60 = vld [vmem:[%s12158_s22 + $0x248] sm:$0xff] }
 0x1ca   : > { %7020 = vmatprep.subr.bf16.mxu0 %v9940_v47  ;;  %7184 = vmatprep.subr.bf16.mxu1 %v9942_v48  ;;  %v9972_v63 = vcombine.high %v824_v57, %v832_v58  ;;  %v9974_v0 = vcombine.high %v825_v59, %v833_v60  ;;  %v840_v1 = vld [vmem:[%s12158_s22 + $0x280] sm:$0xff]  ;;  %v841_v3 = vld [vmem:[%s12158_s22 + $0x288] sm:$0xff]  ;;  %v9971_v5 = vcombine.low %v824_v57, %v832_v58 }
 0x1cb   : > { %v848_v2 = vld [vmem:[%s12158_s22 + $0x2c0] sm:$0xff]  ;;  %v849_v4 = vld [vmem:[%s12158_s22 + $0x2c8] sm:$0xff]  ;;  %v9973_v6 = vcombine.low %v825_v59, %v833_v60 }
 0x1cc   : > { %v9988_v7 = vcombine.high %v840_v1, %v848_v2  ;;  %v9990_v8 = vcombine.high %v841_v3, %v849_v4  ;;  %v856_v9 = vld [vmem:[%s12158_s22 + $0x300] sm:$0xff]  ;;  %v857_v11 = vld [vmem:[%s12158_s22 + $0x308] sm:$0xff]  ;;  %v9987_v13 = vcombine.low %v840_v1, %v848_v2  ;;  %v9989_v14 = vcombine.low %v841_v3, %v849_v4 }
 0x1cd   : > { %7021 = vmatpush1.bf16.msra.mxu0 %v9939_v53  ;;  %7185 = vmatpush1.bf16.msra.mxu1 %v9941_v54  ;;  %v864_v10 = vld [vmem:[%s12158_s22 + $0x340] sm:$0xff]  ;;  %v865_v12 = vld [vmem:[%s12158_s22 + $0x348] sm:$0xff] }
 0x1ce   : > { %7022 = vmatprep.subr.bf16.mxu0 %v9956_v55  ;;  %7186 = vmatprep.subr.bf16.mxu1 %v9958_v56  ;;  %v10004_v15 = vcombine.high %v856_v9, %v864_v10  ;;  %v10006_v17 = vcombine.high %v857_v11, %v865_v12  ;;  %v872_v18 = vld [vmem:[%s12158_s22 + $0x380] sm:$0xff]  ;;  %v873_v21 = vld [vmem:[%s12158_s22 + $0x388] sm:$0xff]  ;;  %v10003_v23 = vcombine.low %v856_v9, %v864_v10 }
 0x1cf   : > { %v880_v19 = vld [vmem:[%s12158_s22 + $0x3c0] sm:$0xff]  ;;  %v881_v22 = vld [vmem:[%s12158_s22 + $0x3c8] sm:$0xff]  ;;  %v10005_v24 = vcombine.low %v857_v11, %v865_v12 }
 0x1d0   : > { %v10020_v25 = vcombine.high %v872_v18, %v880_v19  ;;  %v10022_v26 = vcombine.high %v873_v21, %v881_v22  ;;  %v888_v27 = vld [vmem:[%s12158_s22 + $0x400] sm:$0xff]  ;;  %v889_v29 = vld [vmem:[%s12158_s22 + $0x408] sm:$0xff]  ;;  %v10019_v31 = vcombine.low %v872_v18, %v880_v19  ;;  %v10021_v32 = vcombine.low %v873_v21, %v881_v22 }
 0x1d1   : > { %7023 = vmatpush1.bf16.msra.mxu0 %v9955_v61  ;;  %7187 = vmatpush1.bf16.msra.mxu1 %v9957_v62  ;;  %v896_v28 = vld [vmem:[%s12158_s22 + $0x440] sm:$0xff]  ;;  %v897_v30 = vld [vmem:[%s12158_s22 + $0x448] sm:$0xff] }
 0x1d2   : > { %7024 = vmatprep.subr.bf16.mxu0 %v9972_v63  ;;  %7188 = vmatprep.subr.bf16.mxu1 %v9974_v0  ;;  %v10036_v33 = vcombine.high %v888_v27, %v896_v28  ;;  %v10038_v34 = vcombine.high %v889_v29, %v897_v30  ;;  %v904_v35 = vld [vmem:[%s12158_s22 + $0x480] sm:$0xff]  ;;  %v905_v37 = vld [vmem:[%s12158_s22 + $0x488] sm:$0xff]  ;;  %v10035_v39 = vcombine.low %v888_v27, %v896_v28 }
 0x1d3   : > { %v912_v36 = vld [vmem:[%s12158_s22 + $0x4c0] sm:$0xff]  ;;  %v913_v38 = vld [vmem:[%s12158_s22 + $0x4c8] sm:$0xff]  ;;  %v10037_v40 = vcombine.low %v889_v29, %v897_v30 }
 0x1d4   : > { %v10052_v41 = vcombine.high %v904_v35, %v912_v36  ;;  %v10054_v42 = vcombine.high %v905_v37, %v913_v38  ;;  %v920_v43 = vld [vmem:[%s12158_s22 + $0x500] sm:$0xff]  ;;  %v921_v45 = vld [vmem:[%s12158_s22 + $0x508] sm:$0xff]  ;;  %v10051_v47 = vcombine.low %v904_v35, %v912_v36  ;;  %v10053_v48 = vcombine.low %v905_v37, %v913_v38 }
 0x1d5   : > { %7025 = vmatpush1.bf16.msra.mxu0 %v9971_v5  ;;  %7189 = vmatpush1.bf16.msra.mxu1 %v9973_v6  ;;  %v928_v44 = vld [vmem:[%s12158_s22 + $0x540] sm:$0xff]  ;;  %v929_v46 = vld [vmem:[%s12158_s22 + $0x548] sm:$0xff] }
 0x1d6   : > { %7026 = vmatprep.subr.bf16.mxu0 %v9988_v7  ;;  %7190 = vmatprep.subr.bf16.mxu1 %v9990_v8  ;;  %v10068_v49 = vcombine.high %v920_v43, %v928_v44  ;;  %v10070_v50 = vcombine.high %v921_v45, %v929_v46  ;;  %v936_v51 = vld [vmem:[%s12158_s22 + $0x580] sm:$0xff]  ;;  %v937_v53 = vld [vmem:[%s12158_s22 + $0x588] sm:$0xff]  ;;  %v10067_v55 = vcombine.low %v920_v43, %v928_v44 }
 0x1d7   : > { %v944_v52 = vld [vmem:[%s12158_s22 + $0x5c0] sm:$0xff]  ;;  %v945_v54 = vld [vmem:[%s12158_s22 + $0x5c8] sm:$0xff]  ;;  %v10069_v56 = vcombine.low %v921_v45, %v929_v46 }
 0x1d8   : > { %v10084_v57 = vcombine.high %v936_v51, %v944_v52  ;;  %v10086_v58 = vcombine.high %v937_v53, %v945_v54  ;;  %v952_v59 = vld [vmem:[%s12158_s22 + $0x600] sm:$0xff]  ;;  %v953_v61 = vld [vmem:[%s12158_s22 + $0x608] sm:$0xff]  ;;  %v10083_v63 = vcombine.low %v936_v51, %v944_v52  ;;  %v10085_v0 = vcombine.low %v937_v53, %v945_v54 }
 0x1d9   : > { %7027 = vmatpush1.bf16.msra.mxu0 %v9987_v13  ;;  %7191 = vmatpush1.bf16.msra.mxu1 %v9989_v14  ;;  %v960_v60 = vld [vmem:[%s12158_s22 + $0x640] sm:$0xff]  ;;  %v961_v62 = vld [vmem:[%s12158_s22 + $0x648] sm:$0xff] }
 0x1da   : > { %7028 = vmatprep.subr.bf16.mxu0 %v10004_v15  ;;  %7192 = vmatprep.subr.bf16.mxu1 %v10006_v17  ;;  %v10100_v1 = vcombine.high %v952_v59, %v960_v60  ;;  %v10102_v2 = vcombine.high %v953_v61, %v961_v62  ;;  %v968_v3 = vld [vmem:[%s12158_s22 + $0x680] sm:$0xff]  ;;  %v969_v5 = vld [vmem:[%s12158_s22 + $0x688] sm:$0xff]  ;;  %v10099_v7 = vcombine.low %v952_v59, %v960_v60 }
 0x1db   : > { %v976_v4 = vld [vmem:[%s12158_s22 + $0x6c0] sm:$0xff]  ;;  %v977_v6 = vld [vmem:[%s12158_s22 + $0x6c8] sm:$0xff]  ;;  %v10101_v8 = vcombine.low %v953_v61, %v961_v62 }
 0x1dc   : > { %v10116_v9 = vcombine.high %v968_v3, %v976_v4  ;;  %v10118_v10 = vcombine.high %v969_v5, %v977_v6  ;;  %v984_v11 = vld [vmem:[%s12158_s22 + $0x700] sm:$0xff]  ;;  %v985_v13 = vld [vmem:[%s12158_s22 + $0x708] sm:$0xff]  ;;  %v10115_v15 = vcombine.low %v968_v3, %v976_v4  ;;  %v10117_v17 = vcombine.low %v969_v5, %v977_v6 }
 0x1dd   : > { %7029 = vmatpush1.bf16.msra.mxu0 %v10003_v23  ;;  %7193 = vmatpush1.bf16.msra.mxu1 %v10005_v24  ;;  %v992_v12 = vld [vmem:[%s12158_s22 + $0x740] sm:$0xff]  ;;  %v993_v14 = vld [vmem:[%s12158_s22 + $0x748] sm:$0xff] }
 0x1de   : > { %7030 = vmatprep.subr.bf16.mxu0 %v10020_v25  ;;  %7194 = vmatprep.subr.bf16.mxu1 %v10022_v26  ;;  %v10132_v18 = vcombine.high %v984_v11, %v992_v12  ;;  %v10134_v19 = vcombine.high %v985_v13, %v993_v14  ;;  %v1000_v21 = vld [vmem:[%s12158_s22 + $0x780] sm:$0xff]  ;;  %v1001_v23 = vld [vmem:[%s12158_s22 + $0x788] sm:$0xff]  ;;  %v10131_v25 = vcombine.low %v984_v11, %v992_v12 }
 0x1df   : > { %v1008_v22 = vld [vmem:[%s12158_s22 + $0x7c0] sm:$0xff]  ;;  %v1009_v24 = vld [vmem:[%s12158_s22 + $0x7c8] sm:$0xff]  ;;  %v10133_v26 = vcombine.low %v985_v13, %v993_v14 }
 0x1e0   : > { %v10148_v27 = vcombine.high %v1000_v21, %v1008_v22  ;;  %v10150_v28 = vcombine.high %v1001_v23, %v1009_v24  ;;  %v1016_v29 = vld [vmem:[%s12158_s22 + $0x800] sm:$0xff] }
 0x1e1   : > { %7031 = vmatpush1.bf16.msra.mxu0 %v10019_v31  ;;  %7195 = vmatpush1.bf16.msra.mxu1 %v10021_v32  ;;  %v1024_v30 = vld [vmem:[%s12158_s22 + $0x840] sm:$0xff]  ;;  %v1017_v31 = vld [vmem:[%s12158_s22 + $0x808] sm:$0xff] }
 0x1e2   : > { %7032 = vmatprep.subr.bf16.mxu0 %v10036_v33  ;;  %7196 = vmatprep.subr.bf16.mxu1 %v10038_v34  ;;  %v1025_v32 = vld [vmem:[%s12158_s22 + $0x848] sm:$0xff]  ;;  %v10147_v33 = vcombine.low %v1000_v21, %v1008_v22  ;;  %v10149_v34 = vcombine.low %v1001_v23, %v1009_v24  ;;  %v10164_v35 = vcombine.high %v1016_v29, %v1024_v30  ;;  %v1032_v37 = vld [vmem:[%s12158_s22 + $0x880] sm:$0xff] }
 0x1e3   : > { %v10166_v36 = vcombine.high %v1017_v31, %v1025_v32  ;;  %v1040_v38 = vld [vmem:[%s12158_s22 + $0x8c0] sm:$0xff]  ;;  %v10163_v43 = vcombine.low %v1016_v29, %v1024_v30  ;;  %v10165_v44 = vcombine.low %v1017_v31, %v1025_v32 }
 0x1e4   : > { %v10180_v45 = vcombine.high %v1032_v37, %v1040_v38  ;;  %v1048_v46 = vld [vmem:[%s12158_s22 + $0x900] sm:$0xff]  ;;  %v10179_v51 = vcombine.low %v1032_v37, %v1040_v38 }
 0x1e5   : > { %7033 = vmatpush1.bf16.msra.mxu0 %v10035_v39  ;;  %7197 = vmatpush1.bf16.msra.mxu1 %v10037_v40  ;;  %v12263_v39 = vcombine.low %v12211_v16, %v12211_v16  ;;  %v1033_v40 = vld [vmem:[%s12158_s22 + $0x888] sm:$0xff]  ;;  %v1064_v54 = vld [vmem:[%s12158_s22 + $0x980] sm:$0xff] }
 0x1e6   : > { %7034 = vmatprep.subr.bf16.mxu0 %v10052_v41  ;;  %7198 = vmatprep.subr.bf16.mxu1 %v10054_v42  ;;  %v1041_v41 = vld [vmem:[%s12158_s22 + $0x8c8] sm:$0xff]  ;;  %v12267_v42 = vld [vmem:[#allocation2 + $0x8] sm:$0xff]  ;;  %v1080_v62 = vld [vmem:[%s12158_s22 + $0xa00] sm:$0xff] }
 0x1e7   : > { %v1057_v16 = vld [vmem:[%s12158_s22 + $0x948] sm:$0xff]  ;;  %v10181_v52 = vcombine.low %v1033_v40, %v1041_v41  ;;  %v1096_v6 = vld [vmem:[%s12158_s22 + $0xa80] sm:$0xff] }
 0x1e8   : > { %v1112_v14 = vld [vmem:[%s12158_s22 + $0xb00] sm:$0xff] }
 0x1e9   : > { %7035 = vmatpush1.bf16.msra.mxu0 %v10051_v47  ;;  %7199 = vmatpush1.bf16.msra.mxu1 %v10053_v48  ;;  %v1056_v47 = vld [vmem:[%s12158_s22 + $0x940] sm:$0xff]  ;;  %v10182_v48 = vcombine.high %v1033_v40, %v1041_v41 }
 0x1ea   : > { %7036 = vmatprep.subr.bf16.mxu0 %v10068_v49  ;;  %7200 = vmatprep.subr.bf16.mxu1 %v10070_v50  ;;  %v1049_v49 = vld [vmem:[%s12158_s22 + $0x908] sm:$0xff]  ;;  %v12275_v50 = vcombine.high %v12267_v42, %v12267_v42  ;;  %v10196_v53 = vcombine.high %v1048_v46, %v1056_v47  ;;  %v10195_v59 = vcombine.low %v1048_v46, %v1056_v47  ;;  %v1128_v24 = vld [vmem:[%s12158_s22 + $0xb80] sm:$0xff] }
 0x1eb   : > { %v10197_v60 = vcombine.low %v1049_v49, %v1057_v16  ;;  %v1144_v32 = vld [vmem:[%s12158_s22 + $0xc00] sm:$0xff]  ;;  %v1169_v46 = vld [vmem:[%s12158_s22 + $0xcc8] sm:$0xff] }
 0x1ec   : > { %v1160_v41 = vld [vmem:[%s12158_s22 + $0xc80] sm:$0xff] }
 0x1ed   : > { %7037 = vmatpush1.bf16.msra.mxu0 %v10067_v55  ;;  %7201 = vmatpush1.bf16.msra.mxu1 %v10069_v56  ;;  %v1072_v55 = vld [vmem:[%s12158_s22 + $0x9c0] sm:$0xff]  ;;  %v1065_v56 = vld [vmem:[%s12158_s22 + $0x988] sm:$0xff] }
 0x1ee   : > { %7038 = vmatprep.subr.bf16.mxu0 %v10084_v57  ;;  %7202 = vmatprep.subr.bf16.mxu1 %v10086_v58  ;;  %v10198_v57 = vcombine.high %v1049_v49, %v1057_v16  ;;  %v1073_v58 = vld [vmem:[%s12158_s22 + $0x9c8] sm:$0xff]  ;;  %v10212_v61 = vcombine.high %v1064_v54, %v1072_v55  ;;  %v10211_v3 = vcombine.low %v1064_v54, %v1072_v55  ;;  %v1176_v16 = vld [vmem:[%s12158_s22 + $0xd00] sm:$0xff] }
 0x1ef   : > { %v10213_v4 = vcombine.low %v1065_v56, %v1073_v58  ;;  %v1185_v54 = vld [vmem:[%s12158_s22 + $0xd48] sm:$0xff] }
 0x1f1   : > { %7039 = vmatpush1.bf16.msra.mxu0 %v10083_v63  ;;  %7203 = vmatpush1.bf16.msra.mxu1 %v10085_v0  ;;  %v1088_v63 = vld [vmem:[%s12158_s22 + $0xa40] sm:$0xff]  ;;  %v1081_v0 = vld [vmem:[%s12158_s22 + $0xa08] sm:$0xff] }
 0x1f2   : > { %7040 = vmatprep.subr.bf16.mxu0 %v10100_v1  ;;  %7204 = vmatprep.subr.bf16.mxu1 %v10102_v2  ;;  %v10214_v1 = vcombine.high %v1065_v56, %v1073_v58  ;;  %v1089_v2 = vld [vmem:[%s12158_s22 + $0xa48] sm:$0xff]  ;;  %v10228_v5 = vcombine.high %v1080_v62, %v1088_v63  ;;  %v10227_v11 = vcombine.low %v1080_v62, %v1088_v63  ;;  %v1192_v58 = vld [vmem:[%s12158_s22 + $0xd80] sm:$0xff] }
 0x1f3   : > { %v10229_v12 = vcombine.low %v1081_v0, %v1089_v2  ;;  %v1201_v62 = vld [vmem:[%s12158_s22 + $0xdc8] sm:$0xff] }
 0x1f5   : > { %7041 = vmatpush1.bf16.msra.mxu0 %v10099_v7  ;;  %7205 = vmatpush1.bf16.msra.mxu1 %v10101_v8  ;;  %v1104_v7 = vld [vmem:[%s12158_s22 + $0xac0] sm:$0xff]  ;;  %v1097_v8 = vld [vmem:[%s12158_s22 + $0xa88] sm:$0xff] }
 0x1f6   : > { %7042 = vmatprep.subr.bf16.mxu0 %v10116_v9  ;;  %7206 = vmatprep.subr.bf16.mxu1 %v10118_v10  ;;  %v10230_v9 = vcombine.high %v1081_v0, %v1089_v2  ;;  %v1105_v10 = vld [vmem:[%s12158_s22 + $0xac8] sm:$0xff]  ;;  %v10244_v13 = vcombine.high %v1096_v6, %v1104_v7  ;;  %v10243_v21 = vcombine.low %v1096_v6, %v1104_v7  ;;  %v1208_v2 = vld [vmem:[%s12158_s22 + $0xe00] sm:$0xff] }
 0x1f7   : > { %v10245_v22 = vcombine.low %v1097_v8, %v1105_v10  ;;  %v1217_v6 = vld [vmem:[%s12158_s22 + $0xe48] sm:$0xff] }
 0x1f9   : > { %7043 = vmatpush1.bf16.msra.mxu0 %v10115_v15  ;;  %7207 = vmatpush1.bf16.msra.mxu1 %v10117_v17  ;;  %v1120_v15 = vld [vmem:[%s12158_s22 + $0xb40] sm:$0xff]  ;;  %v1113_v17 = vld [vmem:[%s12158_s22 + $0xb08] sm:$0xff] }
 0x1fa   : > { %7044 = vmatprep.subr.bf16.mxu0 %v10132_v18  ;;  %7208 = vmatprep.subr.bf16.mxu1 %v10134_v19  ;;  %v10246_v18 = vcombine.high %v1097_v8, %v1105_v10  ;;  %v1121_v19 = vld [vmem:[%s12158_s22 + $0xb48] sm:$0xff]  ;;  %v10260_v23 = vcombine.high %v1112_v14, %v1120_v15  ;;  %v10259_v29 = vcombine.low %v1112_v14, %v1120_v15  ;;  %v1224_v10 = vld [vmem:[%s12158_s22 + $0xe80] sm:$0xff] }
 0x1fb   : > { %v10261_v30 = vcombine.low %v1113_v17, %v1121_v19  ;;  %v1233_v14 = vld [vmem:[%s12158_s22 + $0xec8] sm:$0xff] }
 0x1fd   : > { %7045 = vmatpush1.bf16.msra.mxu0 %v10131_v25  ;;  %7209 = vmatpush1.bf16.msra.mxu1 %v10133_v26  ;;  %v1136_v25 = vld [vmem:[%s12158_s22 + $0xbc0] sm:$0xff]  ;;  %v1129_v26 = vld [vmem:[%s12158_s22 + $0xb88] sm:$0xff] }
 0x1fe   : > { %7046 = vmatprep.subr.bf16.mxu0 %v10148_v27  ;;  %7210 = vmatprep.subr.bf16.mxu1 %v10150_v28  ;;  %v10262_v27 = vcombine.high %v1113_v17, %v1121_v19  ;;  %v1137_v28 = vld [vmem:[%s12158_s22 + $0xbc8] sm:$0xff]  ;;  %v10276_v31 = vcombine.high %v1128_v24, %v1136_v25  ;;  %v10275_v37 = vcombine.low %v1128_v24, %v1136_v25  ;;  %v1240_v19 = vld [vmem:[%s12158_s22 + $0xf00] sm:$0xff] }
 0x1ff   : > { %v10277_v38 = vcombine.low %v1129_v26, %v1137_v28  ;;  %v1249_v24 = vld [vmem:[%s12158_s22 + $0xf48] sm:$0xff] }
 0x201   : > { %7047 = vmatpush1.bf16.msra.mxu0 %v10147_v33  ;;  %7211 = vmatpush1.bf16.msra.mxu1 %v10149_v34  ;;  %v1152_v33 = vld [vmem:[%s12158_s22 + $0xc40] sm:$0xff]  ;;  %v1145_v34 = vld [vmem:[%s12158_s22 + $0xc08] sm:$0xff] }
 0x202   : > { %7057 = vmatprep.subr.bf16.mxu0 %v10164_v35  ;;  %7221 = vmatprep.subr.bf16.mxu1 %v10166_v36  ;;  %v10278_v35 = vcombine.high %v1129_v26, %v1137_v28  ;;  %v1153_v36 = vld [vmem:[%s12158_s22 + $0xc48] sm:$0xff]  ;;  %v10292_v40 = vcombine.high %v1144_v32, %v1152_v33  ;;  %v10291_v47 = vcombine.low %v1144_v32, %v1152_v33  ;;  %v1256_v28 = vld [vmem:[%s12158_s22 + $0xf80] sm:$0xff] }
 0x203   : > { %v1265_v32 = vld [vmem:[%s12158_s22 + $0xfc8] sm:$0xff] }
 0x204   : > { %7049 = vmatmul.mubr.bf16.vlgmr.msra.gmra.mrb[0].mxu0 %v12263_v39  ;;  %7213 = vmatmul.mubr.bf16.vlgmr.msra.gmra.mrb[0].mxu1 %v12263_v39 }
 0x205   : > { %7058 = vmatpush1.bf16.msra.mxu0 %v10163_v43  ;;  %7222 = vmatpush1.bf16.msra.mxu1 %v10165_v44  ;;  %v1168_v43 = vld [vmem:[%s12158_s22 + $0xcc0] sm:$0xff]  ;;  %v1161_v44 = vld [vmem:[%s12158_s22 + $0xc88] sm:$0xff] }
 0x206   : > { %7059 = vmatprep.subr.bf16.mxu0 %v10180_v45  ;;  %7223 = vmatprep.subr.bf16.mxu1 %v10182_v48  ;;  %v10294_v45 = vcombine.high %v1145_v34, %v1153_v36  ;;  %v10293_v48 = vcombine.low %v1145_v34, %v1153_v36  ;;  %v10308_v49 = vcombine.high %v1160_v41, %v1168_v43  ;;  %v1272_v36 = vld [vmem:[%s12158_s22 + $0x1000] sm:$0xff] }
 0x207   : > { %7089 = vmatprep.mubr.bf16.mxu0 %v12275_v50  ;;  %7253 = vmatprep.mubr.bf16.mxu1 %v12275_v50  ;;  %v10307_v55 = vcombine.low %v1160_v41, %v1168_v43  ;;  %v10309_v56 = vcombine.low %v1161_v44, %v1169_v46  ;;  %v1281_v41 = vld [vmem:[%s12158_s22 + $0x1048] sm:$0xff] }
 0x209   : > { %7060 = vmatpush1.bf16.msra.mxu0 %v10179_v51  ;;  %7224 = vmatpush1.bf16.msra.mxu1 %v10181_v52  ;;  %v1184_v51 = vld [vmem:[%s12158_s22 + $0xd40] sm:$0xff]  ;;  %v1177_v52 = vld [vmem:[%s12158_s22 + $0xd08] sm:$0xff] }
 0x20a   : > { %7061 = vmatprep.subr.bf16.mxu0 %v10196_v53  ;;  %7225 = vmatprep.subr.bf16.mxu1 %v10198_v57  ;;  %v10310_v53 = vcombine.high %v1161_v44, %v1169_v46  ;;  %v10324_v57 = vcombine.high %v1176_v16, %v1184_v51  ;;  %v10323_v63 = vcombine.low %v1176_v16, %v1184_v51  ;;  %v1288_v44 = vld [vmem:[%s12158_s22 + $0x1080] sm:$0xff] }
 0x20b   : > { %v10325_v0 = vcombine.low %v1177_v52, %v1185_v54  ;;  %v12341_v51 = vld [vmem:[#allocation2 + $0x10] sm:$0xff] }
 0x20d   : > { %7062 = vmatpush1.bf16.msra.mxu0 %v10195_v59  ;;  %7226 = vmatpush1.bf16.msra.mxu1 %v10197_v60  ;;  %v1200_v59 = vld [vmem:[%s12158_s22 + $0xdc0] sm:$0xff]  ;;  %v1193_v60 = vld [vmem:[%s12158_s22 + $0xd88] sm:$0xff] }
 0x20e   : > { %7063 = vmatprep.subr.bf16.mxu0 %v10212_v61  ;;  %7227 = vmatprep.subr.bf16.mxu1 %v10214_v1  ;;  %v10326_v61 = vcombine.high %v1177_v52, %v1185_v54  ;;  %v10340_v1 = vcombine.high %v1192_v58, %v1200_v59  ;;  %v10339_v7 = vcombine.low %v1192_v58, %v1200_v59  ;;  %v1305_v58 = vld [vmem:[%s12158_s22 + $0x1108] sm:$0xff] }
 0x20f   : > { %v10341_v8 = vcombine.low %v1193_v60, %v1201_v62  ;;  %v12345_v52 = vcombine.low %v12267_v42, %v12267_v42  ;;  %v12353_v42 = vcombine.high %v12341_v51, %v12341_v51 }
 0x211   : > { %7064 = vmatpush1.bf16.msra.mxu0 %v10211_v3  ;;  %7228 = vmatpush1.bf16.msra.mxu1 %v10213_v4  ;;  %v1216_v3 = vld [vmem:[%s12158_s22 + $0xe40] sm:$0xff]  ;;  %v1209_v4 = vld [vmem:[%s12158_s22 + $0xe08] sm:$0xff] }
 0x212   : > { %7065 = vmatprep.subr.bf16.mxu0 %v10228_v5  ;;  %7229 = vmatprep.subr.bf16.mxu1 %v10230_v9  ;;  %v10342_v5 = vcombine.high %v1193_v60, %v1201_v62  ;;  %v10356_v9 = vcombine.high %v1208_v2, %v1216_v3  ;;  %v10355_v15 = vcombine.low %v1208_v2, %v1216_v3  ;;  %v1313_v60 = vld [vmem:[%s12158_s22 + $0x1148] sm:$0xff] }
 0x213   : > { %v10357_v17 = vcombine.low %v1209_v4, %v1217_v6  ;;  %v1321_v2 = vld [vmem:[%s12158_s22 + $0x1188] sm:$0xff]  ;;  %v10454_v3 = vcombine.high %v1305_v58, %v1313_v60 }
 0x215   : > { %7066 = vmatpush1.bf16.msra.mxu0 %v10227_v11  ;;  %7230 = vmatpush1.bf16.msra.mxu1 %v10229_v12  ;;  %v1232_v11 = vld [vmem:[%s12158_s22 + $0xec0] sm:$0xff]  ;;  %v1225_v12 = vld [vmem:[%s12158_s22 + $0xe88] sm:$0xff] }
 0x216   : > { %7067 = vmatprep.subr.bf16.mxu0 %v10244_v13  ;;  %7231 = vmatprep.subr.bf16.mxu1 %v10246_v18  ;;  %v10358_v13 = vcombine.high %v1209_v4, %v1217_v6  ;;  %v10372_v18 = vcombine.high %v1224_v10, %v1232_v11  ;;  %v10371_v25 = vcombine.low %v1224_v10, %v1232_v11  ;;  %v1329_v4 = vld [vmem:[%s12158_s22 + $0x11c8] sm:$0xff] }
 0x217   : > { %v10373_v26 = vcombine.low %v1225_v12, %v1233_v14  ;;  %v10453_v6 = vcombine.low %v1305_v58, %v1313_v60  ;;  %v1337_v10 = vld [vmem:[%s12158_s22 + $0x1208] sm:$0xff]  ;;  %v10470_v11 = vcombine.high %v1321_v2, %v1329_v4 }
 0x218   : > { %v1425_v58 = vld [vmem:[%s12158_s22 + $0x14c8] sm:$0xff] }
 0x219   : > { %7068 = vmatpush1.bf16.msra.mxu0 %v10243_v21  ;;  %7232 = vmatpush1.bf16.msra.mxu1 %v10245_v22  ;;  %v1248_v21 = vld [vmem:[%s12158_s22 + $0xf40] sm:$0xff]  ;;  %v1241_v22 = vld [vmem:[%s12158_s22 + $0xf08] sm:$0xff] }
 0x21a   : > { %7069 = vmatprep.subr.bf16.mxu0 %v10260_v23  ;;  %7233 = vmatprep.subr.bf16.mxu1 %v10262_v27  ;;  %v10374_v23 = vcombine.high %v1225_v12, %v1233_v14  ;;  %v10388_v27 = vcombine.high %v1240_v19, %v1248_v21  ;;  %v10387_v33 = vcombine.low %v1240_v19, %v1248_v21  ;;  %v1345_v12 = vld [vmem:[%s12158_s22 + $0x1248] sm:$0xff] }
 0x21b   : > { %v10389_v34 = vcombine.low %v1241_v22, %v1249_v24  ;;  %v10469_v14 = vcombine.low %v1321_v2, %v1329_v4  ;;  %v1353_v19 = vld [vmem:[%s12158_s22 + $0x1288] sm:$0xff]  ;;  %v10486_v21 = vcombine.high %v1337_v10, %v1345_v12 }
 0x21c   : > { %v1441_v2 = vld [vmem:[%s12158_s22 + $0x1548] sm:$0xff] }
 0x21d   : > { %7070 = vmatpush1.bf16.msra.mxu0 %v10259_v29  ;;  %7234 = vmatpush1.bf16.msra.mxu1 %v10261_v30  ;;  %v1264_v29 = vld [vmem:[%s12158_s22 + $0xfc0] sm:$0xff]  ;;  %v1257_v30 = vld [vmem:[%s12158_s22 + $0xf88] sm:$0xff] }
 0x21e   : > { %7071 = vmatprep.subr.bf16.mxu0 %v10276_v31  ;;  %7235 = vmatprep.subr.bf16.mxu1 %v10278_v35  ;;  %v10390_v31 = vcombine.high %v1241_v22, %v1249_v24  ;;  %v10404_v35 = vcombine.high %v1256_v28, %v1264_v29  ;;  %v10403_v43 = vcombine.low %v1256_v28, %v1264_v29  ;;  %v1361_v22 = vld [vmem:[%s12158_s22 + $0x12c8] sm:$0xff] }
 0x21f   : > { %v10485_v24 = vcombine.low %v1337_v10, %v1345_v12  ;;  %v1369_v28 = vld [vmem:[%s12158_s22 + $0x1308] sm:$0xff]  ;;  %v10502_v29 = vcombine.high %v1353_v19, %v1361_v22 }
 0x220   : > { %v1457_v10 = vld [vmem:[%s12158_s22 + $0x15c8] sm:$0xff] }
 0x221   : > { %7072 = vmatpush1.bf16.msra.mxu0 %v10275_v37  ;;  %7236 = vmatpush1.bf16.msra.mxu1 %v10277_v38  ;;  %v1280_v37 = vld [vmem:[%s12158_s22 + $0x1040] sm:$0xff]  ;;  %v1273_v38 = vld [vmem:[%s12158_s22 + $0x1008] sm:$0xff] }
 0x222   : > { %7073 = vmatprep.subr.bf16.mxu0 %v10292_v40  ;;  %7237 = vmatprep.subr.bf16.mxu1 %v10294_v45  ;;  %v10406_v40 = vcombine.high %v1257_v30, %v1265_v32  ;;  %v10405_v45 = vcombine.low %v1257_v30, %v1265_v32  ;;  %v10420_v46 = vcombine.high %v1272_v36, %v1280_v37  ;;  %v1377_v30 = vld [vmem:[%s12158_s22 + $0x1348] sm:$0xff] }
 0x223   : > { %v10422_v16 = vcombine.high %v1273_v38, %v1281_v41  ;;  %v10421_v54 = vcombine.low %v1273_v38, %v1281_v41  ;;  %v10501_v32 = vcombine.low %v1353_v19, %v1361_v22  ;;  %v1393_v38 = vld [vmem:[%s12158_s22 + $0x13c8] sm:$0xff]  ;;  %v10517_v41 = vcombine.low %v1369_v28, %v1377_v30 }
 0x224   : > { %v1473_v19 = vld [vmem:[%s12158_s22 + $0x1648] sm:$0xff] }
 0x225   : > { %7074 = vmatpush1.bf16.msra.mxu0 %v10291_v47  ;;  %7238 = vmatpush1.bf16.msra.mxu1 %v10293_v48  ;;  %v1296_v47 = vld [vmem:[%s12158_s22 + $0x10c0] sm:$0xff]  ;;  %v1289_v48 = vld [vmem:[%s12158_s22 + $0x1088] sm:$0xff] }
 0x226   : > { %7075 = vmatprep.subr.bf16.mxu0 %v10308_v49  ;;  %7239 = vmatprep.subr.bf16.mxu1 %v10310_v53  ;;  %v1297_v49 = vld [vmem:[%s12158_s22 + $0x10c8] sm:$0xff]  ;;  %v10419_v53 = vcombine.low %v1272_v36, %v1280_v37  ;;  %v10518_v37 = vcombine.high %v1369_v28, %v1377_v30 }
 0x227   : > { %v10438_v59 = vcombine.high %v1289_v48, %v1297_v49  ;;  %v10437_v62 = vcombine.low %v1289_v48, %v1297_v49  ;;  %v1385_v36 = vld [vmem:[%s12158_s22 + $0x1388] sm:$0xff] }
 0x228   : > { %v1409_v48 = vld [vmem:[%s12158_s22 + $0x1448] sm:$0xff] }
 0x229   : > { %7076 = vmatpush1.bf16.msra.mxu0 %v10307_v55  ;;  %7240 = vmatpush1.bf16.msra.mxu1 %v10309_v56  ;;  %v10436_v55 = vcombine.high %v1288_v44, %v1296_v47  ;;  %v1304_v56 = vld [vmem:[%s12158_s22 + $0x1100] sm:$0xff]  ;;  %v1489_v28 = vld [vmem:[%s12158_s22 + $0x16c8] sm:$0xff] }
 0x22a   : > { %7077 = vmatprep.subr.bf16.mxu0 %v10324_v57  ;;  %7241 = vmatprep.subr.bf16.mxu1 %v10326_v61  ;;  %v1312_v57 = vld [vmem:[%s12158_s22 + $0x1140] sm:$0xff]  ;;  %v10435_v61 = vcombine.low %v1288_v44, %v1296_v47  ;;  %v10534_v47 = vcombine.high %v1385_v36, %v1393_v38 }
 0x22b   : > { %v1400_v44 = vld [vmem:[%s12158_s22 + $0x1400] sm:$0xff] }
 0x22d   : > { %7078 = vmatpush1.bf16.msra.mxu0 %v10323_v63  ;;  %7242 = vmatpush1.bf16.msra.mxu1 %v10325_v0  ;;  %v10452_v63 = vcombine.high %v1304_v56, %v1312_v57  ;;  %v1320_v0 = vld [vmem:[%s12158_s22 + $0x1180] sm:$0xff] }
 0x22e   : > { %7079 = vmatprep.subr.bf16.mxu0 %v10340_v1  ;;  %7243 = vmatprep.subr.bf16.mxu1 %v10342_v5  ;;  %v1328_v1 = vld [vmem:[%s12158_s22 + $0x11c0] sm:$0xff]  ;;  %v10451_v5 = vcombine.low %v1304_v56, %v1312_v57  ;;  %v1417_v56 = vld [vmem:[%s12158_s22 + $0x1488] sm:$0xff] }
 0x22f   : > { %v10565_v4 = vcombine.low %v1417_v56, %v1425_v58 }
 0x231   : > { %7080 = vmatpush1.bf16.msra.mxu0 %v10339_v7  ;;  %7244 = vmatpush1.bf16.msra.mxu1 %v10341_v8  ;;  %v10468_v7 = vcombine.high %v1320_v0, %v1328_v1  ;;  %v1336_v8 = vld [vmem:[%s12158_s22 + $0x1200] sm:$0xff] }
 0x232   : > { %7081 = vmatprep.subr.bf16.mxu0 %v10356_v9  ;;  %7245 = vmatprep.subr.bf16.mxu1 %v10358_v13  ;;  %v1344_v9 = vld [vmem:[%s12158_s22 + $0x1240] sm:$0xff]  ;;  %v10467_v13 = vcombine.low %v1320_v0, %v1328_v1  ;;  %v1433_v0 = vld [vmem:[%s12158_s22 + $0x1508] sm:$0xff]  ;;  %v10566_v1 = vcombine.high %v1417_v56, %v1425_v58 }
 0x233   : > { %v10581_v12 = vcombine.low %v1433_v0, %v1441_v2  ;;  %v1537_v56 = vld [vmem:[%s12158_s22 + $0x1848] sm:$0xff]  ;;  %v1544_v58 = vld [vmem:[%s12158_s22 + $0x1880] sm:$0xff] }
 0x235   : > { %7082 = vmatpush1.bf16.msra.mxu0 %v10355_v15  ;;  %7246 = vmatpush1.bf16.msra.mxu1 %v10357_v17  ;;  %v10484_v15 = vcombine.high %v1336_v8, %v1344_v9  ;;  %v1352_v17 = vld [vmem:[%s12158_s22 + $0x1280] sm:$0xff] }
 0x236   : > { %7083 = vmatprep.subr.bf16.mxu0 %v10372_v18  ;;  %7247 = vmatprep.subr.bf16.mxu1 %v10374_v23  ;;  %v1360_v18 = vld [vmem:[%s12158_s22 + $0x12c0] sm:$0xff]  ;;  %v10483_v23 = vcombine.low %v1336_v8, %v1344_v9  ;;  %v1449_v8 = vld [vmem:[%s12158_s22 + $0x1588] sm:$0xff]  ;;  %v10582_v9 = vcombine.high %v1433_v0, %v1441_v2  ;;  %v12423_v2 = vcombine.low %v12341_v51, %v12341_v51 }
 0x237   : > { %v10597_v22 = vcombine.low %v1449_v8, %v1457_v10  ;;  %v1561_v51 = vld [vmem:[%s12158_s22 + $0x1908] sm:$0xff] }
 0x239   : > { %7084 = vmatpush1.bf16.msra.mxu0 %v10371_v25  ;;  %7248 = vmatpush1.bf16.msra.mxu1 %v10373_v26  ;;  %v10500_v25 = vcombine.high %v1352_v17, %v1360_v18  ;;  %v1368_v26 = vld [vmem:[%s12158_s22 + $0x1300] sm:$0xff] }
 0x23a   : > { %7085 = vmatprep.subr.bf16.mxu0 %v10388_v27  ;;  %7249 = vmatprep.subr.bf16.mxu1 %v10390_v31  ;;  %v1376_v27 = vld [vmem:[%s12158_s22 + $0x1340] sm:$0xff]  ;;  %v10499_v31 = vcombine.low %v1352_v17, %v1360_v18  ;;  %v1465_v17 = vld [vmem:[%s12158_s22 + $0x1608] sm:$0xff]  ;;  %v10598_v18 = vcombine.high %v1449_v8, %v1457_v10 }
 0x23b   : > { %v10613_v30 = vcombine.low %v1465_v17, %v1473_v19  ;;  %v1568_v8 = vld [vmem:[%s12158_s22 + $0x1940] sm:$0xff]  ;;  %v1569_v10 = vld [vmem:[%s12158_s22 + $0x1948] sm:$0xff] }
 0x23d   : > { %7086 = vmatpush1.bf16.msra.mxu0 %v10387_v33  ;;  %7250 = vmatpush1.bf16.msra.mxu1 %v10389_v34  ;;  %v10516_v33 = vcombine.high %v1368_v26, %v1376_v27  ;;  %v1384_v34 = vld [vmem:[%s12158_s22 + $0x1380] sm:$0xff] }
 0x23e   : > { %7087 = vmatprep.subr.bf16.mxu0 %v10404_v35  ;;  %7251 = vmatprep.subr.bf16.mxu1 %v10406_v40  ;;  %v1392_v35 = vld [vmem:[%s12158_s22 + $0x13c0] sm:$0xff]  ;;  %v10515_v40 = vcombine.low %v1368_v26, %v1376_v27  ;;  %v1481_v26 = vld [vmem:[%s12158_s22 + $0x1688] sm:$0xff]  ;;  %v10614_v27 = vcombine.high %v1465_v17, %v1473_v19 }
 0x23f   : > { %v10531_v49 = vcombine.low %v1384_v34, %v1392_v35  ;;  %v1584_v17 = vld [vmem:[%s12158_s22 + $0x19c0] sm:$0xff]  ;;  %v1585_v19 = vld [vmem:[%s12158_s22 + $0x19c8] sm:$0xff] }
 0x241   : > { %7088 = vmatpush1.bf16.msra.mxu0 %v10403_v43  ;;  %7252 = vmatpush1.bf16.msra.mxu1 %v10405_v45  ;;  %v10532_v43 = vcombine.high %v1384_v34, %v1392_v35  ;;  %v1408_v45 = vld [vmem:[%s12158_s22 + $0x1440] sm:$0xff]  ;;  %v1497_v34 = vld [vmem:[%s12158_s22 + $0x1708] sm:$0xff]  ;;  %v10630_v35 = vcombine.high %v1481_v26, %v1489_v28 }
 0x242   : > { %7098 = vmatprep.subr.bf16.mxu0 %v10420_v46  ;;  %7262 = vmatprep.subr.bf16.mxu1 %v10422_v16  ;;  %v1401_v46 = vld [vmem:[%s12158_s22 + $0x1408] sm:$0xff]  ;;  %v10533_v16 = vcombine.low %v1385_v36, %v1393_v38  ;;  %v10629_v38 = vcombine.low %v1481_v26, %v1489_v28  ;;  %v1600_v26 = vld [vmem:[%s12158_s22 + $0x1a40] sm:$0xff] }
 0x243   : > { %v10550_v57 = vcombine.high %v1401_v46, %v1409_v48  ;;  %v10549_v60 = vcombine.low %v1401_v46, %v1409_v48  ;;  %v1505_v36 = vld [vmem:[%s12158_s22 + $0x1748] sm:$0xff] }
 0x244   : > { %7090 = vmatmul.mubr.bf16.vlgmr.msra.gmra.mrb[0].mxu0 %v12345_v52  ;;  %7254 = vmatmul.mubr.bf16.vlgmr.msra.gmra.mrb[0].mxu1 %v12345_v52  ;;  %v1521_v46 = vld [vmem:[%s12158_s22 + $0x17c8] sm:$0xff]  ;;  %v10645_v48 = vcombine.low %v1497_v34, %v1505_v36 }
 0x245   : > { %7099 = vmatpush1.bf16.msra.mxu0 %v10419_v53  ;;  %7263 = vmatpush1.bf16.msra.mxu1 %v10421_v54  ;;  %v10548_v53 = vcombine.high %v1400_v44, %v1408_v45  ;;  %v1416_v54 = vld [vmem:[%s12158_s22 + $0x1480] sm:$0xff]  ;;  %v1601_v28 = vld [vmem:[%s12158_s22 + $0x1a48] sm:$0xff] }
 0x246   : > { %7100 = vmatprep.subr.bf16.mxu0 %v10436_v55  ;;  %7264 = vmatprep.subr.bf16.mxu1 %v10438_v59  ;;  %v1424_v55 = vld [vmem:[%s12158_s22 + $0x14c0] sm:$0xff]  ;;  %v10547_v59 = vcombine.low %v1400_v44, %v1408_v45  ;;  %v1513_v44 = vld [vmem:[%s12158_s22 + $0x1788] sm:$0xff]  ;;  %v10646_v45 = vcombine.high %v1497_v34, %v1505_v36 }
 0x247   : > { %7130 = vmatprep.mubr.bf16.mxu0 %v12353_v42  ;;  %7294 = vmatprep.mubr.bf16.mxu1 %v12353_v42  ;;  %v1616_v34 = vld [vmem:[%s12158_s22 + $0x1ac0] sm:$0xff]  ;;  %v1617_v36 = vld [vmem:[%s12158_s22 + $0x1ac8] sm:$0xff] }
 0x249   : > { %7101 = vmatpush1.bf16.msra.mxu0 %v10435_v61  ;;  %7265 = vmatpush1.bf16.msra.mxu1 %v10437_v62  ;;  %v10564_v61 = vcombine.high %v1416_v54, %v1424_v55  ;;  %v1432_v62 = vld [vmem:[%s12158_s22 + $0x1500] sm:$0xff] }
 0x24a   : > { %7102 = vmatprep.subr.bf16.mxu0 %v10452_v63  ;;  %7266 = vmatprep.subr.bf16.mxu1 %v10454_v3  ;;  %v1440_v63 = vld [vmem:[%s12158_s22 + $0x1540] sm:$0xff]  ;;  %v10563_v3 = vcombine.low %v1416_v54, %v1424_v55  ;;  %v1529_v54 = vld [vmem:[%s12158_s22 + $0x1808] sm:$0xff]  ;;  %v10662_v55 = vcombine.high %v1513_v44, %v1521_v46 }
 0x24b   : > { %v10678_v0 = vcombine.high %v1529_v54, %v1537_v56 }
 0x24d   : > { %7103 = vmatpush1.bf16.msra.mxu0 %v10451_v5  ;;  %7267 = vmatpush1.bf16.msra.mxu1 %v10453_v6  ;;  %v10580_v5 = vcombine.high %v1432_v62, %v1440_v63  ;;  %v1448_v6 = vld [vmem:[%s12158_s22 + $0x1580] sm:$0xff] }
 0x24e   : > { %7104 = vmatprep.subr.bf16.mxu0 %v10468_v7  ;;  %7268 = vmatprep.subr.bf16.mxu1 %v10470_v11  ;;  %v1456_v7 = vld [vmem:[%s12158_s22 + $0x15c0] sm:$0xff]  ;;  %v10579_v11 = vcombine.low %v1432_v62, %v1440_v63  ;;  %v1545_v62 = vld [vmem:[%s12158_s22 + $0x1888] sm:$0xff] }
 0x24f   : > { %v1553_v63 = vld [vmem:[%s12158_s22 + $0x18c8] sm:$0xff] }
 0x251   : > { %7105 = vmatpush1.bf16.msra.mxu0 %v10467_v13  ;;  %7269 = vmatpush1.bf16.msra.mxu1 %v10469_v14  ;;  %v10596_v13 = vcombine.high %v1448_v6, %v1456_v7  ;;  %v1464_v14 = vld [vmem:[%s12158_s22 + $0x1600] sm:$0xff] }
 0x252   : > { %7106 = vmatprep.subr.bf16.mxu0 %v10484_v15  ;;  %7270 = vmatprep.subr.bf16.mxu1 %v10486_v21  ;;  %v1472_v15 = vld [vmem:[%s12158_s22 + $0x1640] sm:$0xff]  ;;  %v10595_v21 = vcombine.low %v1448_v6, %v1456_v7  ;;  %v10694_v6 = vcombine.high %v1545_v62, %v1553_v63 }
 0x253   : > { %v1560_v7 = vld [vmem:[%s12158_s22 + $0x1900] sm:$0xff] }
 0x255   : > { %7107 = vmatpush1.bf16.msra.mxu0 %v10483_v23  ;;  %7271 = vmatpush1.bf16.msra.mxu1 %v10485_v24  ;;  %v10612_v23 = vcombine.high %v1464_v14, %v1472_v15  ;;  %v1480_v24 = vld [vmem:[%s12158_s22 + $0x1680] sm:$0xff] }
 0x256   : > { %7108 = vmatprep.subr.bf16.mxu0 %v10500_v25  ;;  %7272 = vmatprep.subr.bf16.mxu1 %v10502_v29  ;;  %v1488_v25 = vld [vmem:[%s12158_s22 + $0x16c0] sm:$0xff]  ;;  %v10611_v29 = vcombine.low %v1464_v14, %v1472_v15  ;;  %v10710_v14 = vcombine.high %v1561_v51, %v1569_v10 }
 0x257   : > { %v1576_v15 = vld [vmem:[%s12158_s22 + $0x1980] sm:$0xff] }
 0x259   : > { %7109 = vmatpush1.bf16.msra.mxu0 %v10499_v31  ;;  %7273 = vmatpush1.bf16.msra.mxu1 %v10501_v32  ;;  %v10628_v31 = vcombine.high %v1480_v24, %v1488_v25  ;;  %v1496_v32 = vld [vmem:[%s12158_s22 + $0x1700] sm:$0xff] }
 0x25a   : > { %7110 = vmatprep.subr.bf16.mxu0 %v10516_v33  ;;  %7274 = vmatprep.subr.bf16.mxu1 %v10518_v37  ;;  %v1504_v33 = vld [vmem:[%s12158_s22 + $0x1740] sm:$0xff]  ;;  %v10627_v37 = vcombine.low %v1480_v24, %v1488_v25 }
 0x25b   : > { %v1592_v25 = vld [vmem:[%s12158_s22 + $0x1a00] sm:$0xff] }
 0x25d   : > { %7111 = vmatpush1.bf16.msra.mxu0 %v10515_v40  ;;  %7275 = vmatpush1.bf16.msra.mxu1 %v10517_v41  ;;  %v10644_v40 = vcombine.high %v1496_v32, %v1504_v33  ;;  %v1512_v41 = vld [vmem:[%s12158_s22 + $0x1780] sm:$0xff] }
 0x25e   : > { %7112 = vmatprep.subr.bf16.mxu0 %v10532_v43  ;;  %7276 = vmatprep.subr.bf16.mxu1 %v10534_v47  ;;  %v1520_v43 = vld [vmem:[%s12158_s22 + $0x17c0] sm:$0xff]  ;;  %v10643_v47 = vcombine.low %v1496_v32, %v1504_v33 }
 0x25f   : > { %v1608_v33 = vld [vmem:[%s12158_s22 + $0x1a80] sm:$0xff] }
 0x261   : > { %7113 = vmatpush1.bf16.msra.mxu0 %v10531_v49  ;;  %7277 = vmatpush1.bf16.msra.mxu1 %v10533_v16  ;;  %v10660_v49 = vcombine.high %v1512_v41, %v1520_v43  ;;  %v1528_v16 = vld [vmem:[%s12158_s22 + $0x1800] sm:$0xff] }
 0x262   : > { %7114 = vmatprep.subr.bf16.mxu0 %v10548_v53  ;;  %7278 = vmatprep.subr.bf16.mxu1 %v10550_v57  ;;  %v1536_v53 = vld [vmem:[%s12158_s22 + $0x1840] sm:$0xff]  ;;  %v10659_v57 = vcombine.low %v1512_v41, %v1520_v43 }
 0x263   : > { %v1624_v43 = vld [vmem:[%s12158_s22 + $0x1b00] sm:$0xff] }
 0x265   : > { %7115 = vmatpush1.bf16.msra.mxu0 %v10547_v59  ;;  %7279 = vmatpush1.bf16.msra.mxu1 %v10549_v60  ;;  %v10661_v59 = vcombine.low %v1513_v44, %v1521_v46  ;;  %v10676_v60 = vcombine.high %v1528_v16, %v1536_v53  ;;  %v1632_v44 = vld [vmem:[%s12158_s22 + $0x1b40] sm:$0xff]  ;;  %v1633_v46 = vld [vmem:[%s12158_s22 + $0x1b48] sm:$0xff] }
 0x266   : > { %7116 = vmatprep.subr.bf16.mxu0 %v10564_v61  ;;  %7280 = vmatprep.subr.bf16.mxu1 %v10566_v1  ;;  %v1552_v61 = vld [vmem:[%s12158_s22 + $0x18c0] sm:$0xff]  ;;  %v12419_v1 = vld [vmem:[#allocation2 + $0x18] sm:$0xff] }
 0x269   : > { %7117 = vmatpush1.bf16.msra.mxu0 %v10563_v3  ;;  %7281 = vmatpush1.bf16.msra.mxu1 %v10565_v4  ;;  %v10675_v3 = vcombine.low %v1528_v16, %v1536_v53  ;;  %v10677_v4 = vcombine.low %v1529_v54, %v1537_v56  ;;  %v1640_v53 = vld [vmem:[%s12158_s22 + $0x1b80] sm:$0xff]  ;;  %v1649_v56 = vld [vmem:[%s12158_s22 + $0x1bc8] sm:$0xff] }
 0x26a   : > { %7118 = vmatprep.subr.bf16.mxu0 %v10580_v5  ;;  %7282 = vmatprep.subr.bf16.mxu1 %v10582_v9  ;;  %v10692_v5 = vcombine.high %v1544_v58, %v1552_v61  ;;  %v12429_v9 = vcombine.high %v12419_v1, %v12419_v1  ;;  %v1648_v54 = vld [vmem:[%s12158_s22 + $0x1bc0] sm:$0xff] }
 0x26d   : > { %7119 = vmatpush1.bf16.msra.mxu0 %v10579_v11  ;;  %7283 = vmatpush1.bf16.msra.mxu1 %v10581_v12  ;;  %v10691_v11 = vcombine.low %v1544_v58, %v1552_v61  ;;  %v10693_v12 = vcombine.low %v1545_v62, %v1553_v63  ;;  %v1656_v61 = vld [vmem:[%s12158_s22 + $0x1c00] sm:$0xff]  ;;  %v1657_v63 = vld [vmem:[%s12158_s22 + $0x1c08] sm:$0xff] }
 0x26e   : > { %7120 = vmatprep.subr.bf16.mxu0 %v10596_v13  ;;  %7284 = vmatprep.subr.bf16.mxu1 %v10598_v18  ;;  %v10708_v13 = vcombine.high %v1560_v7, %v1568_v8  ;;  %v1577_v18 = vld [vmem:[%s12158_s22 + $0x1988] sm:$0xff]  ;;  %v1664_v62 = vld [vmem:[%s12158_s22 + $0x1c40] sm:$0xff] }
 0x26f   : > { %v10726_v24 = vcombine.high %v1577_v18, %v1585_v19 }
 0x271   : > { %7121 = vmatpush1.bf16.msra.mxu0 %v10595_v21  ;;  %7285 = vmatpush1.bf16.msra.mxu1 %v10597_v22  ;;  %v10707_v21 = vcombine.low %v1560_v7, %v1568_v8  ;;  %v10709_v22 = vcombine.low %v1561_v51, %v1569_v10  ;;  %v1672_v7 = vld [vmem:[%s12158_s22 + $0x1c80] sm:$0xff]  ;;  %v1673_v51 = vld [vmem:[%s12158_s22 + $0x1c88] sm:$0xff] }
 0x272   : > { %7122 = vmatprep.subr.bf16.mxu0 %v10612_v23  ;;  %7286 = vmatprep.subr.bf16.mxu1 %v10614_v27  ;;  %v10724_v23 = vcombine.high %v1576_v15, %v1584_v17  ;;  %v1593_v27 = vld [vmem:[%s12158_s22 + $0x1a08] sm:$0xff]  ;;  %v1680_v8 = vld [vmem:[%s12158_s22 + $0x1cc0] sm:$0xff] }
 0x273   : > { %v10742_v32 = vcombine.high %v1593_v27, %v1601_v28  ;;  %v1681_v10 = vld [vmem:[%s12158_s22 + $0x1cc8] sm:$0xff] }
 0x275   : > { %7123 = vmatpush1.bf16.msra.mxu0 %v10611_v29  ;;  %7287 = vmatpush1.bf16.msra.mxu1 %v10613_v30  ;;  %v10723_v29 = vcombine.low %v1576_v15, %v1584_v17  ;;  %v10725_v30 = vcombine.low %v1577_v18, %v1585_v19  ;;  %v1688_v15 = vld [vmem:[%s12158_s22 + $0x1d00] sm:$0xff]  ;;  %v1689_v18 = vld [vmem:[%s12158_s22 + $0x1d08] sm:$0xff] }
 0x276   : > { %7124 = vmatprep.subr.bf16.mxu0 %v10628_v31  ;;  %7288 = vmatprep.subr.bf16.mxu1 %v10630_v35  ;;  %v10740_v31 = vcombine.high %v1592_v25, %v1600_v26  ;;  %v1609_v35 = vld [vmem:[%s12158_s22 + $0x1a88] sm:$0xff]  ;;  %v1696_v17 = vld [vmem:[%s12158_s22 + $0x1d40] sm:$0xff] }
 0x277   : > { %v10758_v41 = vcombine.high %v1609_v35, %v1617_v36  ;;  %v1697_v19 = vld [vmem:[%s12158_s22 + $0x1d48] sm:$0xff] }
 0x279   : > { %7125 = vmatpush1.bf16.msra.mxu0 %v10627_v37  ;;  %7289 = vmatpush1.bf16.msra.mxu1 %v10629_v38  ;;  %v10739_v37 = vcombine.low %v1592_v25, %v1600_v26  ;;  %v10741_v38 = vcombine.low %v1593_v27, %v1601_v28  ;;  %v1704_v25 = vld [vmem:[%s12158_s22 + $0x1d80] sm:$0xff]  ;;  %v1705_v27 = vld [vmem:[%s12158_s22 + $0x1d88] sm:$0xff] }
 0x27a   : > { %7126 = vmatprep.subr.bf16.mxu0 %v10644_v40  ;;  %7290 = vmatprep.subr.bf16.mxu1 %v10646_v45  ;;  %v10756_v40 = vcombine.high %v1608_v33, %v1616_v34  ;;  %v1625_v45 = vld [vmem:[%s12158_s22 + $0x1b08] sm:$0xff]  ;;  %v1712_v26 = vld [vmem:[%s12158_s22 + $0x1dc0] sm:$0xff] }
 0x27b   : > { %v10774_v16 = vcombine.high %v1625_v45, %v1633_v46  ;;  %v10773_v58 = vcombine.low %v1625_v45, %v1633_v46  ;;  %v1713_v28 = vld [vmem:[%s12158_s22 + $0x1dc8] sm:$0xff] }
 0x27c   : > { %v1737_v45 = vld [vmem:[%s12158_s22 + $0x1e88] sm:$0xff] }
 0x27d   : > { %7127 = vmatpush1.bf16.msra.mxu0 %v10643_v47  ;;  %7291 = vmatpush1.bf16.msra.mxu1 %v10645_v48  ;;  %v10755_v47 = vcombine.low %v1608_v33, %v1616_v34  ;;  %v10757_v48 = vcombine.low %v1609_v35, %v1617_v36  ;;  %v1720_v33 = vld [vmem:[%s12158_s22 + $0x1e00] sm:$0xff]  ;;  %v1721_v35 = vld [vmem:[%s12158_s22 + $0x1e08] sm:$0xff] }
 0x27e   : > { %7128 = vmatprep.subr.bf16.mxu0 %v10660_v49  ;;  %7292 = vmatprep.subr.bf16.mxu1 %v10662_v55  ;;  %v10772_v49 = vcombine.high %v1624_v43, %v1632_v44  ;;  %v1641_v55 = vld [vmem:[%s12158_s22 + $0x1b88] sm:$0xff]  ;;  %v1728_v34 = vld [vmem:[%s12158_s22 + $0x1e40] sm:$0xff] }
 0x27f   : > { %v1729_v36 = vld [vmem:[%s12158_s22 + $0x1e48] sm:$0xff] }
 0x280   : > { %v1745_v46 = vld [vmem:[%s12158_s22 + $0x1ec8] sm:$0xff] }
 0x281   : > { %7129 = vmatpush1.bf16.msra.mxu0 %v10659_v57  ;;  %7293 = vmatpush1.bf16.msra.mxu1 %v10661_v59  ;;  %v10771_v57 = vcombine.low %v1624_v43, %v1632_v44  ;;  %v10788_v59 = vcombine.high %v1640_v53, %v1648_v54  ;;  %v1736_v43 = vld [vmem:[%s12158_s22 + $0x1e80] sm:$0xff] }
 0x282   : > { %7139 = vmatprep.subr.bf16.mxu0 %v10676_v60  ;;  %7303 = vmatprep.subr.bf16.mxu1 %v10678_v0  ;;  %v10790_v60 = vcombine.high %v1641_v55, %v1649_v56  ;;  %v1665_v0 = vld [vmem:[%s12158_s22 + $0x1c48] sm:$0xff]  ;;  %v1744_v44 = vld [vmem:[%s12158_s22 + $0x1ec0] sm:$0xff] }
 0x284   : > { %7131 = vmatmul.mubr.bf16.vlgmr.msra.gmra.mrb[0].mxu0 %v12423_v2  ;;  %7295 = vmatmul.mubr.bf16.vlgmr.msra.gmra.mrb[0].mxu1 %v12423_v2 }
 0x285   : > { %7140 = vmatpush1.bf16.msra.mxu0 %v10675_v3  ;;  %7304 = vmatpush1.bf16.msra.mxu1 %v10677_v4  ;;  %v10787_v3 = vcombine.low %v1640_v53, %v1648_v54  ;;  %v10789_v4 = vcombine.low %v1641_v55, %v1649_v56  ;;  %v1752_v53 = vld [vmem:[%s12158_s22 + $0x1f00] sm:$0xff]  ;;  %v1753_v55 = vld [vmem:[%s12158_s22 + $0x1f08] sm:$0xff] }
 0x286   : > { %7141 = vmatprep.subr.bf16.mxu0 %v10692_v5  ;;  %7305 = vmatprep.subr.bf16.mxu1 %v10694_v6  ;;  %v10804_v5 = vcombine.high %v1656_v61, %v1664_v62  ;;  %v10806_v6 = vcombine.high %v1657_v63, %v1665_v0  ;;  %v1760_v54 = vld [vmem:[%s12158_s22 + $0x1f40] sm:$0xff]  ;;  %v1761_v56 = vld [vmem:[%s12158_s22 + $0x1f48] sm:$0xff] }
 0x287   : > { %7171 = vmatprep.mubr.bf16.mxu0 %v12429_v9  ;;  %7335 = vmatprep.mubr.bf16.mxu1 %v12429_v9 }
 0x289   : > { %7142 = vmatpush1.bf16.msra.mxu0 %v10691_v11  ;;  %7306 = vmatpush1.bf16.msra.mxu1 %v10693_v12  ;;  %v10803_v11 = vcombine.low %v1656_v61, %v1664_v62  ;;  %v10805_v12 = vcombine.low %v1657_v63, %v1665_v0  ;;  %v1768_v61 = vld [vmem:[%s12158_s22 + $0x1f80] sm:$0xff]  ;;  %v1769_v63 = vld [vmem:[%s12158_s22 + $0x1f88] sm:$0xff] }
 0x28a   : > { %7143 = vmatprep.subr.bf16.mxu0 %v10708_v13  ;;  %7307 = vmatprep.subr.bf16.mxu1 %v10710_v14  ;;  %v10820_v13 = vcombine.high %v1672_v7, %v1680_v8  ;;  %v10822_v14 = vcombine.high %v1673_v51, %v1681_v10  ;;  %v1776_v62 = vld [vmem:[%s12158_s22 + $0x1fc0] sm:$0xff]  ;;  %v1777_v0 = vld [vmem:[%s12158_s22 + $0x1fc8] sm:$0xff] }
 0x28d   : > { %7144 = vmatpush1.bf16.msra.mxu0 %v10707_v21  ;;  %7308 = vmatpush1.bf16.msra.mxu1 %v10709_v22  ;;  %v10819_v21 = vcombine.low %v1672_v7, %v1680_v8  ;;  %v10821_v22 = vcombine.low %v1673_v51, %v1681_v10  ;;  %v762_v7 = vld [vmem:[%s12158_s22 + $0x10] sm:$0xff]  ;;  %v763_v51 = vld [vmem:[%s12158_s22 + $0x18] sm:$0xff] }
 0x28e   : > { %7145 = vmatprep.subr.bf16.mxu0 %v10724_v23  ;;  %7309 = vmatprep.subr.bf16.mxu1 %v10726_v24  ;;  %v10836_v23 = vcombine.high %v1688_v15, %v1696_v17  ;;  %v10838_v24 = vcombine.high %v1689_v18, %v1697_v19  ;;  %v770_v8 = vld [vmem:[%s12158_s22 + $0x50] sm:$0xff]  ;;  %v771_v10 = vld [vmem:[%s12158_s22 + $0x58] sm:$0xff] }
 0x291   : > { %7146 = vmatpush1.bf16.msra.mxu0 %v10723_v29  ;;  %7310 = vmatpush1.bf16.msra.mxu1 %v10725_v30  ;;  %v10835_v29 = vcombine.low %v1688_v15, %v1696_v17  ;;  %v10837_v30 = vcombine.low %v1689_v18, %v1697_v19  ;;  %v778_v15 = vld [vmem:[%s12158_s22 + $0x90] sm:$0xff]  ;;  %v12497_v18 = vcombine.low %v12419_v1, %v12419_v1  ;;  %v779_v19 = vld [vmem:[%s12158_s22 + $0x98] sm:$0xff] }
 0x292   : > { %7147 = vmatprep.subr.bf16.mxu0 %v10740_v31  ;;  %7311 = vmatprep.subr.bf16.mxu1 %v10742_v32  ;;  %v10852_v31 = vcombine.high %v1704_v25, %v1712_v26  ;;  %v10854_v32 = vcombine.high %v1705_v27, %v1713_v28  ;;  %v786_v17 = vld [vmem:[%s12158_s22 + $0xd0] sm:$0xff]  ;;  %v795_v1 = vld [vmem:[%s12158_s22 + $0x118] sm:$0xff] }
 0x295   : > { %7148 = vmatpush1.bf16.msra.mxu0 %v10739_v37  ;;  %7312 = vmatpush1.bf16.msra.mxu1 %v10741_v38  ;;  %v10851_v37 = vcombine.low %v1704_v25, %v1712_v26  ;;  %v10853_v38 = vcombine.low %v1705_v27, %v1713_v28  ;;  %v794_v26 = vld [vmem:[%s12158_s22 + $0x110] sm:$0xff]  ;;  %v803_v28 = vld [vmem:[%s12158_s22 + $0x158] sm:$0xff] }
 0x296   : > { %7149 = vmatprep.subr.bf16.mxu0 %v10756_v40  ;;  %7313 = vmatprep.subr.bf16.mxu1 %v10758_v41  ;;  %v10868_v40 = vcombine.high %v1720_v33, %v1728_v34  ;;  %v10870_v41 = vcombine.high %v1721_v35, %v1729_v36  ;;  %v802_v27 = vld [vmem:[%s12158_s22 + $0x150] sm:$0xff] }
 0x299   : > { %7150 = vmatpush1.bf16.msra.mxu0 %v10755_v47  ;;  %7314 = vmatpush1.bf16.msra.mxu1 %v10757_v48  ;;  %v10867_v47 = vcombine.low %v1720_v33, %v1728_v34  ;;  %v10869_v48 = vcombine.low %v1721_v35, %v1729_v36  ;;  %v810_v33 = vld [vmem:[%s12158_s22 + $0x190] sm:$0xff]  ;;  %v811_v35 = vld [vmem:[%s12158_s22 + $0x198] sm:$0xff] }
 0x29a   : > { %7151 = vmatprep.subr.bf16.mxu0 %v10772_v49  ;;  %7315 = vmatprep.subr.bf16.mxu1 %v10774_v16  ;;  %v10884_v49 = vcombine.high %v1736_v43, %v1744_v44  ;;  %v10886_v16 = vcombine.high %v1737_v45, %v1745_v46  ;;  %v818_v34 = vld [vmem:[%s12158_s22 + $0x1d0] sm:$0xff]  ;;  %v819_v36 = vld [vmem:[%s12158_s22 + $0x1d8] sm:$0xff] }
 0x29d   : > { %7152 = vmatpush1.bf16.msra.mxu0 %v10771_v57  ;;  %7316 = vmatpush1.bf16.msra.mxu1 %v10773_v58  ;;  %v10883_v57 = vcombine.low %v1736_v43, %v1744_v44  ;;  %v10885_v58 = vcombine.low %v1737_v45, %v1745_v46  ;;  %v826_v43 = vld [vmem:[%s12158_s22 + $0x210] sm:$0xff]  ;;  %v827_v45 = vld [vmem:[%s12158_s22 + $0x218] sm:$0xff] }
 0x29e   : > { %7153 = vmatprep.subr.bf16.mxu0 %v10788_v59  ;;  %7317 = vmatprep.subr.bf16.mxu1 %v10790_v60  ;;  %v10900_v59 = vcombine.high %v1752_v53, %v1760_v54  ;;  %v10902_v60 = vcombine.high %v1753_v55, %v1761_v56  ;;  %v834_v44 = vld [vmem:[%s12158_s22 + $0x250] sm:$0xff]  ;;  %v835_v46 = vld [vmem:[%s12158_s22 + $0x258] sm:$0xff] }
 0x2a1   : > { %7154 = vmatpush1.bf16.msra.mxu0 %v10787_v3  ;;  %7318 = vmatpush1.bf16.msra.mxu1 %v10789_v4  ;;  %v10899_v3 = vcombine.low %v1752_v53, %v1760_v54  ;;  %v10901_v4 = vcombine.low %v1753_v55, %v1761_v56  ;;  %v842_v53 = vld [vmem:[%s12158_s22 + $0x290] sm:$0xff]  ;;  %v843_v55 = vld [vmem:[%s12158_s22 + $0x298] sm:$0xff] }
 0x2a2   : > { %7155 = vmatprep.subr.bf16.mxu0 %v10804_v5  ;;  %7319 = vmatprep.subr.bf16.mxu1 %v10806_v6  ;;  %v10916_v5 = vcombine.high %v1768_v61, %v1776_v62  ;;  %v10918_v6 = vcombine.high %v1769_v63, %v1777_v0  ;;  %v850_v54 = vld [vmem:[%s12158_s22 + $0x2d0] sm:$0xff]  ;;  %v851_v56 = vld [vmem:[%s12158_s22 + $0x2d8] sm:$0xff] }
 0x2a5   : > { %7156 = vmatpush1.bf16.msra.mxu0 %v10803_v11  ;;  %7320 = vmatpush1.bf16.msra.mxu1 %v10805_v12  ;;  %v10915_v11 = vcombine.low %v1768_v61, %v1776_v62  ;;  %v10917_v12 = vcombine.low %v1769_v63, %v1777_v0  ;;  %v858_v61 = vld [vmem:[%s12158_s22 + $0x310] sm:$0xff]  ;;  %v859_v63 = vld [vmem:[%s12158_s22 + $0x318] sm:$0xff] }
 0x2a6   : > { %7157 = vmatprep.subr.bf16.mxu0 %v10820_v13  ;;  %7321 = vmatprep.subr.bf16.mxu1 %v10822_v14  ;;  %v9912_v13 = vcombine.high %v762_v7, %v770_v8  ;;  %v9914_v14 = vcombine.high %v763_v51, %v771_v10  ;;  %v866_v62 = vld [vmem:[%s12158_s22 + $0x350] sm:$0xff]  ;;  %v867_v0 = vld [vmem:[%s12158_s22 + $0x358] sm:$0xff] }
 0x2a9   : > { %7158 = vmatpush1.bf16.msra.mxu0 %v10819_v21  ;;  %7322 = vmatpush1.bf16.msra.mxu1 %v10821_v22  ;;  %v787_v21 = vld [vmem:[%s12158_s22 + $0xd8] sm:$0xff]  ;;  %v9911_v22 = vcombine.low %v762_v7, %v770_v8  ;;  %v874_v7 = vld [vmem:[%s12158_s22 + $0x390] sm:$0xff] }
 0x2aa   : > { %7159 = vmatprep.subr.bf16.mxu0 %v10836_v23  ;;  %7323 = vmatprep.subr.bf16.mxu1 %v10838_v24  ;;  %v9913_v23 = vcombine.low %v763_v51, %v771_v10  ;;  %v9928_v24 = vcombine.high %v778_v15, %v786_v17  ;;  %v9930_v25 = vcombine.high %v779_v19, %v787_v21  ;;  %v882_v8 = vld [vmem:[%s12158_s22 + $0x3d0] sm:$0xff]  ;;  %v875_v51 = vld [vmem:[%s12158_s22 + $0x398] sm:$0xff] }
 0x2ab   : > { %v883_v10 = vld [vmem:[%s12158_s22 + $0x3d8] sm:$0xff] }
 0x2ad   : > { %7160 = vmatpush1.bf16.msra.mxu0 %v10835_v29  ;;  %7324 = vmatpush1.bf16.msra.mxu1 %v10837_v30  ;;  %v9927_v29 = vcombine.low %v778_v15, %v786_v17  ;;  %v9929_v30 = vcombine.low %v779_v19, %v787_v21  ;;  %v890_v15 = vld [vmem:[%s12158_s22 + $0x410] sm:$0xff]  ;;  %v891_v19 = vld [vmem:[%s12158_s22 + $0x418] sm:$0xff] }
 0x2ae   : > { %7161 = vmatprep.subr.bf16.mxu0 %v10852_v31  ;;  %7325 = vmatprep.subr.bf16.mxu1 %v10854_v32  ;;  %v9944_v31 = vcombine.high %v794_v26, %v802_v27  ;;  %v9946_v32 = vcombine.high %v795_v1, %v803_v28  ;;  %v898_v17 = vld [vmem:[%s12158_s22 + $0x450] sm:$0xff]  ;;  %v899_v21 = vld [vmem:[%s12158_s22 + $0x458] sm:$0xff] }
 0x2b1   : > { %7162 = vmatpush1.bf16.msra.mxu0 %v10851_v37  ;;  %7326 = vmatpush1.bf16.msra.mxu1 %v10853_v38  ;;  %v9943_v37 = vcombine.low %v794_v26, %v802_v27  ;;  %v9945_v38 = vcombine.low %v795_v1, %v803_v28  ;;  %v906_v26 = vld [vmem:[%s12158_s22 + $0x490] sm:$0xff]  ;;  %v907_v1 = vld [vmem:[%s12158_s22 + $0x498] sm:$0xff] }
 0x2b2   : > { %7163 = vmatprep.subr.bf16.mxu0 %v10868_v40  ;;  %7327 = vmatprep.subr.bf16.mxu1 %v10870_v41  ;;  %v9960_v40 = vcombine.high %v810_v33, %v818_v34  ;;  %v9962_v41 = vcombine.high %v811_v35, %v819_v36  ;;  %v914_v27 = vld [vmem:[%s12158_s22 + $0x4d0] sm:$0xff]  ;;  %v915_v28 = vld [vmem:[%s12158_s22 + $0x4d8] sm:$0xff] }
 0x2b5   : > { %7164 = vmatpush1.bf16.msra.mxu0 %v10867_v47  ;;  %7328 = vmatpush1.bf16.msra.mxu1 %v10869_v48  ;;  %v9959_v47 = vcombine.low %v810_v33, %v818_v34  ;;  %v9961_v48 = vcombine.low %v811_v35, %v819_v36  ;;  %v922_v33 = vld [vmem:[%s12158_s22 + $0x510] sm:$0xff]  ;;  %v923_v35 = vld [vmem:[%s12158_s22 + $0x518] sm:$0xff] }
 0x2b6   : > { %7165 = vmatprep.subr.bf16.mxu0 %v10884_v49  ;;  %7329 = vmatprep.subr.bf16.mxu1 %v10886_v16  ;;  %v9976_v49 = vcombine.high %v826_v43, %v834_v44  ;;  %v9978_v16 = vcombine.high %v827_v45, %v835_v46  ;;  %v930_v34 = vld [vmem:[%s12158_s22 + $0x550] sm:$0xff]  ;;  %v931_v36 = vld [vmem:[%s12158_s22 + $0x558] sm:$0xff] }
 0x2b9   : > { %7166 = vmatpush1.bf16.msra.mxu0 %v10883_v57  ;;  %7330 = vmatpush1.bf16.msra.mxu1 %v10885_v58  ;;  %v9975_v57 = vcombine.low %v826_v43, %v834_v44  ;;  %v9977_v58 = vcombine.low %v827_v45, %v835_v46  ;;  %v938_v43 = vld [vmem:[%s12158_s22 + $0x590] sm:$0xff]  ;;  %v939_v45 = vld [vmem:[%s12158_s22 + $0x598] sm:$0xff] }
 0x2ba   : > { %7167 = vmatprep.subr.bf16.mxu0 %v10900_v59  ;;  %7331 = vmatprep.subr.bf16.mxu1 %v10902_v60  ;;  %v9992_v59 = vcombine.high %v842_v53, %v850_v54  ;;  %v9994_v60 = vcombine.high %v843_v55, %v851_v56  ;;  %v946_v44 = vld [vmem:[%s12158_s22 + $0x5d0] sm:$0xff]  ;;  %v947_v46 = vld [vmem:[%s12158_s22 + $0x5d8] sm:$0xff] }
 0x2bd   : > { %7168 = vmatpush1.bf16.msra.mxu0 %v10899_v3  ;;  %7332 = vmatpush1.bf16.msra.mxu1 %v10901_v4  ;;  %v9991_v3 = vcombine.low %v842_v53, %v850_v54  ;;  %v9993_v4 = vcombine.low %v843_v55, %v851_v56  ;;  %v954_v53 = vld [vmem:[%s12158_s22 + $0x610] sm:$0xff]  ;;  %v955_v55 = vld [vmem:[%s12158_s22 + $0x618] sm:$0xff] }
 0x2be   : > { %7169 = vmatprep.subr.bf16.mxu0 %v10916_v5  ;;  %7333 = vmatprep.subr.bf16.mxu1 %v10918_v6  ;;  %v10008_v5 = vcombine.high %v858_v61, %v866_v62  ;;  %v10010_v6 = vcombine.high %v859_v63, %v867_v0  ;;  %v962_v54 = vld [vmem:[%s12158_s22 + $0x650] sm:$0xff]  ;;  %v963_v56 = vld [vmem:[%s12158_s22 + $0x658] sm:$0xff] }
 0x2c1   : > { %7170 = vmatpush1.bf16.msra.mxu0 %v10915_v11  ;;  %7334 = vmatpush1.bf16.msra.mxu1 %v10917_v12  ;;  %v10007_v11 = vcombine.low %v858_v61, %v866_v62  ;;  %v10009_v12 = vcombine.low %v859_v63, %v867_v0  ;;  %v970_v61 = vld [vmem:[%s12158_s22 + $0x690] sm:$0xff]  ;;  %v971_v63 = vld [vmem:[%s12158_s22 + $0x698] sm:$0xff] }
 0x2c2   : > { %7344 = vmatprep.subr.bf16.mxu0 %v9912_v13  ;;  %7508 = vmatprep.subr.bf16.mxu1 %v9914_v14  ;;  %v10024_v13 = vcombine.high %v874_v7, %v882_v8  ;;  %v10026_v14 = vcombine.high %v875_v51, %v883_v10  ;;  %v978_v62 = vld [vmem:[%s12158_s22 + $0x6d0] sm:$0xff]  ;;  %v979_v0 = vld [vmem:[%s12158_s22 + $0x6d8] sm:$0xff] }
 0x2c4   : > { %7172 = vmatmul.mubr.bf16.vlgmr.msra.gmra.mrb[0].mxu0 %v12497_v18  ;;  %7336 = vmatmul.mubr.bf16.vlgmr.msra.gmra.mrb[0].mxu1 %v12497_v18 }
 0x2c5   : > { %7345 = vmatpush1.bf16.msra.mxu0 %v9911_v22  ;;  %7509 = vmatpush1.bf16.msra.mxu1 %v9913_v23  ;;  %v10023_v22 = vcombine.low %v874_v7, %v882_v8  ;;  %v10025_v23 = vcombine.low %v875_v51, %v883_v10  ;;  %v986_v7 = vld [vmem:[%s12158_s22 + $0x710] sm:$0xff]  ;;  %v987_v51 = vld [vmem:[%s12158_s22 + $0x718] sm:$0xff] }
 0x2c6   : > { %7346 = vmatprep.subr.bf16.mxu0 %v9928_v24  ;;  %7510 = vmatprep.subr.bf16.mxu1 %v9930_v25  ;;  %v10040_v24 = vcombine.high %v890_v15, %v898_v17  ;;  %v10042_v25 = vcombine.high %v891_v19, %v899_v21  ;;  %v994_v8 = vld [vmem:[%s12158_s22 + $0x750] sm:$0xff]  ;;  %v995_v10 = vld [vmem:[%s12158_s22 + $0x758] sm:$0xff] }
 0x2c7   : > { %7376 = vmatprep.mubr.bf16.mxu0 %v12217_v20  ;;  %7540 = vmatprep.mubr.bf16.mxu1 %v12217_v20 }
 0x2c9   : > { %7347 = vmatpush1.bf16.msra.mxu0 %v9927_v29  ;;  %7511 = vmatpush1.bf16.msra.mxu1 %v9929_v30  ;;  %v10039_v29 = vcombine.low %v890_v15, %v898_v17  ;;  %v10041_v30 = vcombine.low %v891_v19, %v899_v21  ;;  %v1002_v15 = vld [vmem:[%s12158_s22 + $0x790] sm:$0xff]  ;;  %v1003_v19 = vld [vmem:[%s12158_s22 + $0x798] sm:$0xff] }
 0x2ca   : > { %7348 = vmatprep.subr.bf16.mxu0 %v9944_v31  ;;  %7512 = vmatprep.subr.bf16.mxu1 %v9946_v32  ;;  %v10056_v31 = vcombine.high %v906_v26, %v914_v27  ;;  %v10058_v32 = vcombine.high %v907_v1, %v915_v28  ;;  %v1010_v17 = vld [vmem:[%s12158_s22 + $0x7d0] sm:$0xff]  ;;  %v1011_v21 = vld [vmem:[%s12158_s22 + $0x7d8] sm:$0xff] }
 0x2cd   : > { %7349 = vmatpush1.bf16.msra.mxu0 %v9943_v37  ;;  %7513 = vmatpush1.bf16.msra.mxu1 %v9945_v38  ;;  %v10055_v37 = vcombine.low %v906_v26, %v914_v27  ;;  %v10057_v38 = vcombine.low %v907_v1, %v915_v28  ;;  %v1018_v26 = vld [vmem:[%s12158_s22 + $0x810] sm:$0xff]  ;;  %v1019_v1 = vld [vmem:[%s12158_s22 + $0x818] sm:$0xff] }
 0x2ce   : > { %7350 = vmatprep.subr.bf16.mxu0 %v9960_v40  ;;  %7514 = vmatprep.subr.bf16.mxu1 %v9962_v41  ;;  %v10072_v40 = vcombine.high %v922_v33, %v930_v34  ;;  %v10074_v41 = vcombine.high %v923_v35, %v931_v36  ;;  %v1026_v27 = vld [vmem:[%s12158_s22 + $0x850] sm:$0xff]  ;;  %v1027_v28 = vld [vmem:[%s12158_s22 + $0x858] sm:$0xff] }
 0x2d1   : > { %7351 = vmatpush1.bf16.msra.mxu0 %v9959_v47  ;;  %7515 = vmatpush1.bf16.msra.mxu1 %v9961_v48  ;;  %v10071_v47 = vcombine.low %v922_v33, %v930_v34  ;;  %v10073_v48 = vcombine.low %v923_v35, %v931_v36  ;;  %v1034_v33 = vld [vmem:[%s12158_s22 + $0x890] sm:$0xff]  ;;  %v1035_v35 = vld [vmem:[%s12158_s22 + $0x898] sm:$0xff] }
 0x2d2   : > { %7352 = vmatprep.subr.bf16.mxu0 %v9976_v49  ;;  %7516 = vmatprep.subr.bf16.mxu1 %v9978_v16  ;;  %v10088_v49 = vcombine.high %v938_v43, %v946_v44  ;;  %v10090_v16 = vcombine.high %v939_v45, %v947_v46  ;;  %v1042_v34 = vld [vmem:[%s12158_s22 + $0x8d0] sm:$0xff]  ;;  %v1043_v36 = vld [vmem:[%s12158_s22 + $0x8d8] sm:$0xff] }
 0x2d5   : > { %7353 = vmatpush1.bf16.msra.mxu0 %v9975_v57  ;;  %7517 = vmatpush1.bf16.msra.mxu1 %v9977_v58  ;;  %v10087_v57 = vcombine.low %v938_v43, %v946_v44  ;;  %v10089_v58 = vcombine.low %v939_v45, %v947_v46  ;;  %v1050_v43 = vld [vmem:[%s12158_s22 + $0x910] sm:$0xff]  ;;  %v1051_v45 = vld [vmem:[%s12158_s22 + $0x918] sm:$0xff] }
 0x2d6   : > { %7354 = vmatprep.subr.bf16.mxu0 %v9992_v59  ;;  %7518 = vmatprep.subr.bf16.mxu1 %v9994_v60  ;;  %v10104_v59 = vcombine.high %v954_v53, %v962_v54  ;;  %v10106_v60 = vcombine.high %v955_v55, %v963_v56  ;;  %v1058_v44 = vld [vmem:[%s12158_s22 + $0x950] sm:$0xff]  ;;  %v1059_v46 = vld [vmem:[%s12158_s22 + $0x958] sm:$0xff] }
 0x2d9   : > { %7355 = vmatpush1.bf16.msra.mxu0 %v9991_v3  ;;  %7519 = vmatpush1.bf16.msra.mxu1 %v9993_v4  ;;  %v10103_v3 = vcombine.low %v954_v53, %v962_v54  ;;  %v10105_v4 = vcombine.low %v955_v55, %v963_v56  ;;  %v1066_v53 = vld [vmem:[%s12158_s22 + $0x990] sm:$0xff]  ;;  %v1067_v55 = vld [vmem:[%s12158_s22 + $0x998] sm:$0xff] }
 0x2da   : > { %7356 = vmatprep.subr.bf16.mxu0 %v10008_v5  ;;  %7520 = vmatprep.subr.bf16.mxu1 %v10010_v6  ;;  %v10120_v5 = vcombine.high %v970_v61, %v978_v62  ;;  %v10122_v6 = vcombine.high %v971_v63, %v979_v0  ;;  %v1074_v54 = vld [vmem:[%s12158_s22 + $0x9d0] sm:$0xff]  ;;  %v1075_v56 = vld [vmem:[%s12158_s22 + $0x9d8] sm:$0xff] }
 0x2dd   : > { %7357 = vmatpush1.bf16.msra.mxu0 %v10007_v11  ;;  %7521 = vmatpush1.bf16.msra.mxu1 %v10009_v12  ;;  %v10119_v11 = vcombine.low %v970_v61, %v978_v62  ;;  %v10121_v12 = vcombine.low %v971_v63, %v979_v0  ;;  %v1082_v61 = vld [vmem:[%s12158_s22 + $0xa10] sm:$0xff]  ;;  %v1083_v63 = vld [vmem:[%s12158_s22 + $0xa18] sm:$0xff] }
 0x2de   : > { %7358 = vmatprep.subr.bf16.mxu0 %v10024_v13  ;;  %7522 = vmatprep.subr.bf16.mxu1 %v10026_v14  ;;  %v10136_v13 = vcombine.high %v986_v7, %v994_v8  ;;  %v10138_v14 = vcombine.high %v987_v51, %v995_v10  ;;  %v1090_v62 = vld [vmem:[%s12158_s22 + $0xa50] sm:$0xff]  ;;  %v1091_v0 = vld [vmem:[%s12158_s22 + $0xa58] sm:$0xff] }
 0x2e1   : > { %7359 = vmatpush1.bf16.msra.mxu0 %v10023_v22  ;;  %7523 = vmatpush1.bf16.msra.mxu1 %v10025_v23  ;;  %v10135_v22 = vcombine.low %v986_v7, %v994_v8  ;;  %v10137_v23 = vcombine.low %v987_v51, %v995_v10  ;;  %v1098_v7 = vld [vmem:[%s12158_s22 + $0xa90] sm:$0xff]  ;;  %v1099_v51 = vld [vmem:[%s12158_s22 + $0xa98] sm:$0xff] }
 0x2e2   : > { %7360 = vmatprep.subr.bf16.mxu0 %v10040_v24  ;;  %7524 = vmatprep.subr.bf16.mxu1 %v10042_v25  ;;  %v10152_v24 = vcombine.high %v1002_v15, %v1010_v17  ;;  %v10154_v25 = vcombine.high %v1003_v19, %v1011_v21  ;;  %v1106_v8 = vld [vmem:[%s12158_s22 + $0xad0] sm:$0xff]  ;;  %v1107_v10 = vld [vmem:[%s12158_s22 + $0xad8] sm:$0xff] }
 0x2e5   : > { %7361 = vmatpush1.bf16.msra.mxu0 %v10039_v29  ;;  %7525 = vmatpush1.bf16.msra.mxu1 %v10041_v30  ;;  %v10151_v29 = vcombine.low %v1002_v15, %v1010_v17  ;;  %v10153_v30 = vcombine.low %v1003_v19, %v1011_v21  ;;  %v1114_v15 = vld [vmem:[%s12158_s22 + $0xb10] sm:$0xff]  ;;  %v1115_v19 = vld [vmem:[%s12158_s22 + $0xb18] sm:$0xff] }
 0x2e6   : > { %7362 = vmatprep.subr.bf16.mxu0 %v10056_v31  ;;  %7526 = vmatprep.subr.bf16.mxu1 %v10058_v32  ;;  %v10168_v31 = vcombine.high %v1018_v26, %v1026_v27  ;;  %v10170_v32 = vcombine.high %v1019_v1, %v1027_v28  ;;  %v1122_v17 = vld [vmem:[%s12158_s22 + $0xb50] sm:$0xff]  ;;  %v1123_v21 = vld [vmem:[%s12158_s22 + $0xb58] sm:$0xff] }
 0x2e9   : > { %7363 = vmatpush1.bf16.msra.mxu0 %v10055_v37  ;;  %7527 = vmatpush1.bf16.msra.mxu1 %v10057_v38  ;;  %v10167_v37 = vcombine.low %v1018_v26, %v1026_v27  ;;  %v10169_v38 = vcombine.low %v1019_v1, %v1027_v28  ;;  %v1130_v26 = vld [vmem:[%s12158_s22 + $0xb90] sm:$0xff]  ;;  %v1131_v1 = vld [vmem:[%s12158_s22 + $0xb98] sm:$0xff] }
 0x2ea   : > { %7364 = vmatprep.subr.bf16.mxu0 %v10072_v40  ;;  %7528 = vmatprep.subr.bf16.mxu1 %v10074_v41  ;;  %v10184_v40 = vcombine.high %v1034_v33, %v1042_v34  ;;  %v10186_v41 = vcombine.high %v1035_v35, %v1043_v36  ;;  %v1138_v27 = vld [vmem:[%s12158_s22 + $0xbd0] sm:$0xff]  ;;  %v1139_v28 = vld [vmem:[%s12158_s22 + $0xbd8] sm:$0xff] }
 0x2ed   : > { %7365 = vmatpush1.bf16.msra.mxu0 %v10071_v47  ;;  %7529 = vmatpush1.bf16.msra.mxu1 %v10073_v48  ;;  %v10183_v47 = vcombine.low %v1034_v33, %v1042_v34  ;;  %v10185_v48 = vcombine.low %v1035_v35, %v1043_v36  ;;  %v1146_v33 = vld [vmem:[%s12158_s22 + $0xc10] sm:$0xff]  ;;  %v1147_v35 = vld [vmem:[%s12158_s22 + $0xc18] sm:$0xff] }
 0x2ee   : > { %7366 = vmatprep.subr.bf16.mxu0 %v10088_v49  ;;  %7530 = vmatprep.subr.bf16.mxu1 %v10090_v16  ;;  %v10200_v49 = vcombine.high %v1050_v43, %v1058_v44  ;;  %v10202_v16 = vcombine.high %v1051_v45, %v1059_v46  ;;  %v1154_v34 = vld [vmem:[%s12158_s22 + $0xc50] sm:$0xff]  ;;  %v1155_v36 = vld [vmem:[%s12158_s22 + $0xc58] sm:$0xff] }
 0x2f1   : > { %7367 = vmatpush1.bf16.msra.mxu0 %v10087_v57  ;;  %7531 = vmatpush1.bf16.msra.mxu1 %v10089_v58  ;;  %v10199_v57 = vcombine.low %v1050_v43, %v1058_v44  ;;  %v10201_v58 = vcombine.low %v1051_v45, %v1059_v46  ;;  %v1162_v43 = vld [vmem:[%s12158_s22 + $0xc90] sm:$0xff]  ;;  %v1163_v45 = vld [vmem:[%s12158_s22 + $0xc98] sm:$0xff] }
 0x2f2   : > { %7368 = vmatprep.subr.bf16.mxu0 %v10104_v59  ;;  %7532 = vmatprep.subr.bf16.mxu1 %v10106_v60  ;;  %v10216_v59 = vcombine.high %v1066_v53, %v1074_v54  ;;  %v10218_v60 = vcombine.high %v1067_v55, %v1075_v56  ;;  %v1170_v44 = vld [vmem:[%s12158_s22 + $0xcd0] sm:$0xff]  ;;  %v1171_v46 = vld [vmem:[%s12158_s22 + $0xcd8] sm:$0xff] }
 0x2f5   : > { %7369 = vmatpush1.bf16.msra.mxu0 %v10103_v3  ;;  %7533 = vmatpush1.bf16.msra.mxu1 %v10105_v4  ;;  %v10215_v3 = vcombine.low %v1066_v53, %v1074_v54  ;;  %v10217_v4 = vcombine.low %v1067_v55, %v1075_v56  ;;  %v1178_v53 = vld [vmem:[%s12158_s22 + $0xd10] sm:$0xff]  ;;  %v1179_v55 = vld [vmem:[%s12158_s22 + $0xd18] sm:$0xff] }
 0x2f6   : > { %7370 = vmatprep.subr.bf16.mxu0 %v10120_v5  ;;  %7534 = vmatprep.subr.bf16.mxu1 %v10122_v6  ;;  %v10232_v5 = vcombine.high %v1082_v61, %v1090_v62  ;;  %v10234_v6 = vcombine.high %v1083_v63, %v1091_v0  ;;  %v1186_v54 = vld [vmem:[%s12158_s22 + $0xd50] sm:$0xff]  ;;  %v1187_v56 = vld [vmem:[%s12158_s22 + $0xd58] sm:$0xff] }
 0x2f9   : > { %7371 = vmatpush1.bf16.msra.mxu0 %v10119_v11  ;;  %7535 = vmatpush1.bf16.msra.mxu1 %v10121_v12  ;;  %v10231_v11 = vcombine.low %v1082_v61, %v1090_v62  ;;  %v10233_v12 = vcombine.low %v1083_v63, %v1091_v0  ;;  %v1194_v61 = vld [vmem:[%s12158_s22 + $0xd90] sm:$0xff]  ;;  %v1195_v63 = vld [vmem:[%s12158_s22 + $0xd98] sm:$0xff] }
 0x2fa   : > { %7372 = vmatprep.subr.bf16.mxu0 %v10136_v13  ;;  %7536 = vmatprep.subr.bf16.mxu1 %v10138_v14  ;;  %v10248_v13 = vcombine.high %v1098_v7, %v1106_v8  ;;  %v10250_v14 = vcombine.high %v1099_v51, %v1107_v10  ;;  %v1202_v62 = vld [vmem:[%s12158_s22 + $0xdd0] sm:$0xff]  ;;  %v1203_v0 = vld [vmem:[%s12158_s22 + $0xdd8] sm:$0xff] }
 0x2fd   : > { %7373 = vmatpush1.bf16.msra.mxu0 %v10135_v22  ;;  %7537 = vmatpush1.bf16.msra.mxu1 %v10137_v23  ;;  %v10247_v22 = vcombine.low %v1098_v7, %v1106_v8  ;;  %v10249_v23 = vcombine.low %v1099_v51, %v1107_v10  ;;  %v1210_v7 = vld [vmem:[%s12158_s22 + $0xe10] sm:$0xff]  ;;  %v1211_v51 = vld [vmem:[%s12158_s22 + $0xe18] sm:$0xff] }
 0x2fe   : > { %7374 = vmatprep.subr.bf16.mxu0 %v10152_v24  ;;  %7538 = vmatprep.subr.bf16.mxu1 %v10154_v25  ;;  %v10264_v24 = vcombine.high %v1114_v15, %v1122_v17  ;;  %v10266_v25 = vcombine.high %v1115_v19, %v1123_v21  ;;  %v1218_v8 = vld [vmem:[%s12158_s22 + $0xe50] sm:$0xff]  ;;  %v1219_v10 = vld [vmem:[%s12158_s22 + $0xe58] sm:$0xff] }
 0x301   : > { %7375 = vmatpush1.bf16.msra.mxu0 %v10151_v29  ;;  %7539 = vmatpush1.bf16.msra.mxu1 %v10153_v30  ;;  %v10263_v29 = vcombine.low %v1114_v15, %v1122_v17  ;;  %v10265_v30 = vcombine.low %v1115_v19, %v1123_v21  ;;  %v1226_v15 = vld [vmem:[%s12158_s22 + $0xe90] sm:$0xff]  ;;  %v1227_v19 = vld [vmem:[%s12158_s22 + $0xe98] sm:$0xff] }
 0x302   : > { %7385 = vmatprep.subr.bf16.mxu0 %v10168_v31  ;;  %7549 = vmatprep.subr.bf16.mxu1 %v10170_v32  ;;  %v10280_v31 = vcombine.high %v1130_v26, %v1138_v27  ;;  %v10282_v32 = vcombine.high %v1131_v1, %v1139_v28  ;;  %v1234_v17 = vld [vmem:[%s12158_s22 + $0xed0] sm:$0xff]  ;;  %v1235_v21 = vld [vmem:[%s12158_s22 + $0xed8] sm:$0xff] }
 0x304   : > { %7377 = vmatmul.mubr.bf16.vlgmr.msra.gmra.mrb[4].mxu0 %v12263_v39  ;;  %7541 = vmatmul.mubr.bf16.vlgmr.msra.gmra.mrb[4].mxu1 %v12263_v39 }
 0x305   : > { %7386 = vmatpush1.bf16.msra.mxu0 %v10167_v37  ;;  %7550 = vmatpush1.bf16.msra.mxu1 %v10169_v38  ;;  %v10279_v37 = vcombine.low %v1130_v26, %v1138_v27  ;;  %v10281_v38 = vcombine.low %v1131_v1, %v1139_v28  ;;  %v1242_v26 = vld [vmem:[%s12158_s22 + $0xf10] sm:$0xff]  ;;  %v1243_v1 = vld [vmem:[%s12158_s22 + $0xf18] sm:$0xff] }
 0x306   : > { %7387 = vmatprep.subr.bf16.mxu0 %v10184_v40  ;;  %7551 = vmatprep.subr.bf16.mxu1 %v10186_v41  ;;  %v10296_v40 = vcombine.high %v1146_v33, %v1154_v34  ;;  %v10298_v41 = vcombine.high %v1147_v35, %v1155_v36  ;;  %v1250_v27 = vld [vmem:[%s12158_s22 + $0xf50] sm:$0xff]  ;;  %v1251_v28 = vld [vmem:[%s12158_s22 + $0xf58] sm:$0xff] }
 0x307   : > { %7417 = vmatprep.mubr.bf16.mxu0 %v12275_v50  ;;  %7581 = vmatprep.mubr.bf16.mxu1 %v12275_v50 }
 0x309   : > { %7388 = vmatpush1.bf16.msra.mxu0 %v10183_v47  ;;  %7552 = vmatpush1.bf16.msra.mxu1 %v10185_v48  ;;  %v10295_v47 = vcombine.low %v1146_v33, %v1154_v34  ;;  %v10297_v48 = vcombine.low %v1147_v35, %v1155_v36  ;;  %v1258_v33 = vld [vmem:[%s12158_s22 + $0xf90] sm:$0xff]  ;;  %v1259_v35 = vld [vmem:[%s12158_s22 + $0xf98] sm:$0xff] }
 0x30a   : > { %7389 = vmatprep.subr.bf16.mxu0 %v10200_v49  ;;  %7553 = vmatprep.subr.bf16.mxu1 %v10202_v16  ;;  %v10312_v49 = vcombine.high %v1162_v43, %v1170_v44  ;;  %v10314_v16 = vcombine.high %v1163_v45, %v1171_v46  ;;  %v1266_v34 = vld [vmem:[%s12158_s22 + $0xfd0] sm:$0xff]  ;;  %v1267_v36 = vld [vmem:[%s12158_s22 + $0xfd8] sm:$0xff] }
 0x30d   : > { %7390 = vmatpush1.bf16.msra.mxu0 %v10199_v57  ;;  %7554 = vmatpush1.bf16.msra.mxu1 %v10201_v58  ;;  %v10311_v57 = vcombine.low %v1162_v43, %v1170_v44  ;;  %v10313_v58 = vcombine.low %v1163_v45, %v1171_v46  ;;  %v1274_v43 = vld [vmem:[%s12158_s22 + $0x1010] sm:$0xff]  ;;  %v1275_v45 = vld [vmem:[%s12158_s22 + $0x1018] sm:$0xff] }
 0x30e   : > { %7391 = vmatprep.subr.bf16.mxu0 %v10216_v59  ;;  %7555 = vmatprep.subr.bf16.mxu1 %v10218_v60  ;;  %v10328_v59 = vcombine.high %v1178_v53, %v1186_v54  ;;  %v10330_v60 = vcombine.high %v1179_v55, %v1187_v56  ;;  %v1282_v44 = vld [vmem:[%s12158_s22 + $0x1050] sm:$0xff]  ;;  %v1283_v46 = vld [vmem:[%s12158_s22 + $0x1058] sm:$0xff] }
 0x311   : > { %7392 = vmatpush1.bf16.msra.mxu0 %v10215_v3  ;;  %7556 = vmatpush1.bf16.msra.mxu1 %v10217_v4  ;;  %v10327_v3 = vcombine.low %v1178_v53, %v1186_v54  ;;  %v10329_v4 = vcombine.low %v1179_v55, %v1187_v56  ;;  %v1290_v53 = vld [vmem:[%s12158_s22 + $0x1090] sm:$0xff]  ;;  %v1291_v55 = vld [vmem:[%s12158_s22 + $0x1098] sm:$0xff] }
 0x312   : > { %7393 = vmatprep.subr.bf16.mxu0 %v10232_v5  ;;  %7557 = vmatprep.subr.bf16.mxu1 %v10234_v6  ;;  %v10344_v5 = vcombine.high %v1194_v61, %v1202_v62  ;;  %v10346_v6 = vcombine.high %v1195_v63, %v1203_v0  ;;  %v1298_v54 = vld [vmem:[%s12158_s22 + $0x10d0] sm:$0xff]  ;;  %v1299_v56 = vld [vmem:[%s12158_s22 + $0x10d8] sm:$0xff] }
 0x315   : > { %7394 = vmatpush1.bf16.msra.mxu0 %v10231_v11  ;;  %7558 = vmatpush1.bf16.msra.mxu1 %v10233_v12  ;;  %v10343_v11 = vcombine.low %v1194_v61, %v1202_v62  ;;  %v10345_v12 = vcombine.low %v1195_v63, %v1203_v0  ;;  %v1306_v61 = vld [vmem:[%s12158_s22 + $0x1110] sm:$0xff]  ;;  %v1307_v63 = vld [vmem:[%s12158_s22 + $0x1118] sm:$0xff] }
 0x316   : > { %7395 = vmatprep.subr.bf16.mxu0 %v10248_v13  ;;  %7559 = vmatprep.subr.bf16.mxu1 %v10250_v14  ;;  %v10360_v13 = vcombine.high %v1210_v7, %v1218_v8  ;;  %v10362_v14 = vcombine.high %v1211_v51, %v1219_v10  ;;  %v1314_v62 = vld [vmem:[%s12158_s22 + $0x1150] sm:$0xff]  ;;  %v1315_v0 = vld [vmem:[%s12158_s22 + $0x1158] sm:$0xff] }
 0x319   : > { %7396 = vmatpush1.bf16.msra.mxu0 %v10247_v22  ;;  %7560 = vmatpush1.bf16.msra.mxu1 %v10249_v23  ;;  %v10359_v22 = vcombine.low %v1210_v7, %v1218_v8  ;;  %v10361_v23 = vcombine.low %v1211_v51, %v1219_v10  ;;  %v1322_v7 = vld [vmem:[%s12158_s22 + $0x1190] sm:$0xff]  ;;  %v1323_v51 = vld [vmem:[%s12158_s22 + $0x1198] sm:$0xff] }
 0x31a   : > { %7397 = vmatprep.subr.bf16.mxu0 %v10264_v24  ;;  %7561 = vmatprep.subr.bf16.mxu1 %v10266_v25  ;;  %v10376_v24 = vcombine.high %v1226_v15, %v1234_v17  ;;  %v10378_v25 = vcombine.high %v1227_v19, %v1235_v21  ;;  %v1330_v8 = vld [vmem:[%s12158_s22 + $0x11d0] sm:$0xff]  ;;  %v1331_v10 = vld [vmem:[%s12158_s22 + $0x11d8] sm:$0xff] }
 0x31d   : > { %7398 = vmatpush1.bf16.msra.mxu0 %v10263_v29  ;;  %7562 = vmatpush1.bf16.msra.mxu1 %v10265_v30  ;;  %v10375_v29 = vcombine.low %v1226_v15, %v1234_v17  ;;  %v10377_v30 = vcombine.low %v1227_v19, %v1235_v21  ;;  %v1338_v15 = vld [vmem:[%s12158_s22 + $0x1210] sm:$0xff]  ;;  %v1339_v19 = vld [vmem:[%s12158_s22 + $0x1218] sm:$0xff] }
 0x31e   : > { %7399 = vmatprep.subr.bf16.mxu0 %v10280_v31  ;;  %7563 = vmatprep.subr.bf16.mxu1 %v10282_v32  ;;  %v10392_v31 = vcombine.high %v1242_v26, %v1250_v27  ;;  %v10394_v32 = vcombine.high %v1243_v1, %v1251_v28  ;;  %v1346_v17 = vld [vmem:[%s12158_s22 + $0x1250] sm:$0xff]  ;;  %v1347_v21 = vld [vmem:[%s12158_s22 + $0x1258] sm:$0xff] }
 0x321   : > { %7400 = vmatpush1.bf16.msra.mxu0 %v10279_v37  ;;  %7564 = vmatpush1.bf16.msra.mxu1 %v10281_v38  ;;  %v10391_v37 = vcombine.low %v1242_v26, %v1250_v27  ;;  %v10393_v38 = vcombine.low %v1243_v1, %v1251_v28  ;;  %v1354_v26 = vld [vmem:[%s12158_s22 + $0x1290] sm:$0xff]  ;;  %v1355_v1 = vld [vmem:[%s12158_s22 + $0x1298] sm:$0xff] }
 0x322   : > { %7401 = vmatprep.subr.bf16.mxu0 %v10296_v40  ;;  %7565 = vmatprep.subr.bf16.mxu1 %v10298_v41  ;;  %v10408_v40 = vcombine.high %v1258_v33, %v1266_v34  ;;  %v10410_v41 = vcombine.high %v1259_v35, %v1267_v36  ;;  %v1362_v27 = vld [vmem:[%s12158_s22 + $0x12d0] sm:$0xff]  ;;  %v1363_v28 = vld [vmem:[%s12158_s22 + $0x12d8] sm:$0xff] }
 0x325   : > { %7402 = vmatpush1.bf16.msra.mxu0 %v10295_v47  ;;  %7566 = vmatpush1.bf16.msra.mxu1 %v10297_v48  ;;  %v10407_v47 = vcombine.low %v1258_v33, %v1266_v34  ;;  %v10409_v48 = vcombine.low %v1259_v35, %v1267_v36  ;;  %v1370_v33 = vld [vmem:[%s12158_s22 + $0x1310] sm:$0xff]  ;;  %v1371_v35 = vld [vmem:[%s12158_s22 + $0x1318] sm:$0xff] }
 0x326   : > { %7403 = vmatprep.subr.bf16.mxu0 %v10312_v49  ;;  %7567 = vmatprep.subr.bf16.mxu1 %v10314_v16  ;;  %v10424_v49 = vcombine.high %v1274_v43, %v1282_v44  ;;  %v10426_v16 = vcombine.high %v1275_v45, %v1283_v46  ;;  %v1378_v34 = vld [vmem:[%s12158_s22 + $0x1350] sm:$0xff]  ;;  %v1379_v36 = vld [vmem:[%s12158_s22 + $0x1358] sm:$0xff] }
 0x329   : > { %7404 = vmatpush1.bf16.msra.mxu0 %v10311_v57  ;;  %7568 = vmatpush1.bf16.msra.mxu1 %v10313_v58  ;;  %v10423_v57 = vcombine.low %v1274_v43, %v1282_v44  ;;  %v10425_v58 = vcombine.low %v1275_v45, %v1283_v46  ;;  %v1386_v43 = vld [vmem:[%s12158_s22 + $0x1390] sm:$0xff]  ;;  %v1387_v45 = vld [vmem:[%s12158_s22 + $0x1398] sm:$0xff] }
 0x32a   : > { %7405 = vmatprep.subr.bf16.mxu0 %v10328_v59  ;;  %7569 = vmatprep.subr.bf16.mxu1 %v10330_v60  ;;  %v10440_v59 = vcombine.high %v1290_v53, %v1298_v54  ;;  %v10442_v60 = vcombine.high %v1291_v55, %v1299_v56  ;;  %v1394_v44 = vld [vmem:[%s12158_s22 + $0x13d0] sm:$0xff]  ;;  %v1395_v46 = vld [vmem:[%s12158_s22 + $0x13d8] sm:$0xff] }
 0x32d   : > { %7406 = vmatpush1.bf16.msra.mxu0 %v10327_v3  ;;  %7570 = vmatpush1.bf16.msra.mxu1 %v10329_v4  ;;  %v10439_v3 = vcombine.low %v1290_v53, %v1298_v54  ;;  %v10441_v4 = vcombine.low %v1291_v55, %v1299_v56  ;;  %v1402_v53 = vld [vmem:[%s12158_s22 + $0x1410] sm:$0xff]  ;;  %v1403_v55 = vld [vmem:[%s12158_s22 + $0x1418] sm:$0xff] }
 0x32e   : > { %7407 = vmatprep.subr.bf16.mxu0 %v10344_v5  ;;  %7571 = vmatprep.subr.bf16.mxu1 %v10346_v6  ;;  %v10456_v5 = vcombine.high %v1306_v61, %v1314_v62  ;;  %v10458_v6 = vcombine.high %v1307_v63, %v1315_v0  ;;  %v1410_v54 = vld [vmem:[%s12158_s22 + $0x1450] sm:$0xff]  ;;  %v1411_v56 = vld [vmem:[%s12158_s22 + $0x1458] sm:$0xff] }
 0x331   : > { %7408 = vmatpush1.bf16.msra.mxu0 %v10343_v11  ;;  %7572 = vmatpush1.bf16.msra.mxu1 %v10345_v12  ;;  %v10455_v11 = vcombine.low %v1306_v61, %v1314_v62  ;;  %v10457_v12 = vcombine.low %v1307_v63, %v1315_v0  ;;  %v1418_v61 = vld [vmem:[%s12158_s22 + $0x1490] sm:$0xff]  ;;  %v1419_v63 = vld [vmem:[%s12158_s22 + $0x1498] sm:$0xff] }
 0x332   : > { %7409 = vmatprep.subr.bf16.mxu0 %v10360_v13  ;;  %7573 = vmatprep.subr.bf16.mxu1 %v10362_v14  ;;  %v10472_v13 = vcombine.high %v1322_v7, %v1330_v8  ;;  %v10474_v14 = vcombine.high %v1323_v51, %v1331_v10  ;;  %v1426_v62 = vld [vmem:[%s12158_s22 + $0x14d0] sm:$0xff]  ;;  %v1427_v0 = vld [vmem:[%s12158_s22 + $0x14d8] sm:$0xff] }
 0x335   : > { %7410 = vmatpush1.bf16.msra.mxu0 %v10359_v22  ;;  %7574 = vmatpush1.bf16.msra.mxu1 %v10361_v23  ;;  %v10471_v22 = vcombine.low %v1322_v7, %v1330_v8  ;;  %v10473_v23 = vcombine.low %v1323_v51, %v1331_v10  ;;  %v1434_v7 = vld [vmem:[%s12158_s22 + $0x1510] sm:$0xff]  ;;  %v1435_v51 = vld [vmem:[%s12158_s22 + $0x1518] sm:$0xff] }
 0x336   : > { %7411 = vmatprep.subr.bf16.mxu0 %v10376_v24  ;;  %7575 = vmatprep.subr.bf16.mxu1 %v10378_v25  ;;  %v10488_v24 = vcombine.high %v1338_v15, %v1346_v17  ;;  %v10490_v25 = vcombine.high %v1339_v19, %v1347_v21  ;;  %v1442_v8 = vld [vmem:[%s12158_s22 + $0x1550] sm:$0xff]  ;;  %v1443_v10 = vld [vmem:[%s12158_s22 + $0x1558] sm:$0xff] }
 0x339   : > { %7412 = vmatpush1.bf16.msra.mxu0 %v10375_v29  ;;  %7576 = vmatpush1.bf16.msra.mxu1 %v10377_v30  ;;  %v10487_v29 = vcombine.low %v1338_v15, %v1346_v17  ;;  %v10489_v30 = vcombine.low %v1339_v19, %v1347_v21  ;;  %v1450_v15 = vld [vmem:[%s12158_s22 + $0x1590] sm:$0xff]  ;;  %v1451_v19 = vld [vmem:[%s12158_s22 + $0x1598] sm:$0xff] }
 0x33a   : > { %7413 = vmatprep.subr.bf16.mxu0 %v10392_v31  ;;  %7577 = vmatprep.subr.bf16.mxu1 %v10394_v32  ;;  %v10504_v31 = vcombine.high %v1354_v26, %v1362_v27  ;;  %v10506_v32 = vcombine.high %v1355_v1, %v1363_v28  ;;  %v1458_v17 = vld [vmem:[%s12158_s22 + $0x15d0] sm:$0xff]  ;;  %v1459_v21 = vld [vmem:[%s12158_s22 + $0x15d8] sm:$0xff] }
 0x33d   : > { %7414 = vmatpush1.bf16.msra.mxu0 %v10391_v37  ;;  %7578 = vmatpush1.bf16.msra.mxu1 %v10393_v38  ;;  %v10503_v37 = vcombine.low %v1354_v26, %v1362_v27  ;;  %v10505_v38 = vcombine.low %v1355_v1, %v1363_v28  ;;  %v1466_v26 = vld [vmem:[%s12158_s22 + $0x1610] sm:$0xff]  ;;  %v1467_v1 = vld [vmem:[%s12158_s22 + $0x1618] sm:$0xff] }
 0x33e   : > { %7415 = vmatprep.subr.bf16.mxu0 %v10408_v40  ;;  %7579 = vmatprep.subr.bf16.mxu1 %v10410_v41  ;;  %v10520_v40 = vcombine.high %v1370_v33, %v1378_v34  ;;  %v10522_v41 = vcombine.high %v1371_v35, %v1379_v36  ;;  %v1474_v27 = vld [vmem:[%s12158_s22 + $0x1650] sm:$0xff]  ;;  %v1475_v28 = vld [vmem:[%s12158_s22 + $0x1658] sm:$0xff] }
 0x341   : > { %7416 = vmatpush1.bf16.msra.mxu0 %v10407_v47  ;;  %7580 = vmatpush1.bf16.msra.mxu1 %v10409_v48  ;;  %v10519_v47 = vcombine.low %v1370_v33, %v1378_v34  ;;  %v10521_v48 = vcombine.low %v1371_v35, %v1379_v36  ;;  %v1482_v33 = vld [vmem:[%s12158_s22 + $0x1690] sm:$0xff]  ;;  %v1483_v35 = vld [vmem:[%s12158_s22 + $0x1698] sm:$0xff] }
 0x342   : > { %7426 = vmatprep.subr.bf16.mxu0 %v10424_v49  ;;  %7590 = vmatprep.subr.bf16.mxu1 %v10426_v16  ;;  %v10536_v49 = vcombine.high %v1386_v43, %v1394_v44  ;;  %v10538_v16 = vcombine.high %v1387_v45, %v1395_v46  ;;  %v1490_v34 = vld [vmem:[%s12158_s22 + $0x16d0] sm:$0xff]  ;;  %v1491_v36 = vld [vmem:[%s12158_s22 + $0x16d8] sm:$0xff] }
 0x344   : > { %7418 = vmatmul.mubr.bf16.vlgmr.msra.gmra.mrb[4].mxu0 %v12345_v52  ;;  %7582 = vmatmul.mubr.bf16.vlgmr.msra.gmra.mrb[4].mxu1 %v12345_v52 }
 0x345   : > { %7427 = vmatpush1.bf16.msra.mxu0 %v10423_v57  ;;  %7591 = vmatpush1.bf16.msra.mxu1 %v10425_v58  ;;  %v10535_v57 = vcombine.low %v1386_v43, %v1394_v44  ;;  %v10537_v58 = vcombine.low %v1387_v45, %v1395_v46  ;;  %v1498_v43 = vld [vmem:[%s12158_s22 + $0x1710] sm:$0xff]  ;;  %v1499_v45 = vld [vmem:[%s12158_s22 + $0x1718] sm:$0xff] }
 0x346   : > { %7428 = vmatprep.subr.bf16.mxu0 %v10440_v59  ;;  %7592 = vmatprep.subr.bf16.mxu1 %v10442_v60  ;;  %v10552_v59 = vcombine.high %v1402_v53, %v1410_v54  ;;  %v10554_v60 = vcombine.high %v1403_v55, %v1411_v56  ;;  %v1506_v44 = vld [vmem:[%s12158_s22 + $0x1750] sm:$0xff]  ;;  %v1507_v46 = vld [vmem:[%s12158_s22 + $0x1758] sm:$0xff] }
 0x347   : > { %7458 = vmatprep.mubr.bf16.mxu0 %v12353_v42  ;;  %7622 = vmatprep.mubr.bf16.mxu1 %v12353_v42 }
 0x349   : > { %7429 = vmatpush1.bf16.msra.mxu0 %v10439_v3  ;;  %7593 = vmatpush1.bf16.msra.mxu1 %v10441_v4  ;;  %v10551_v3 = vcombine.low %v1402_v53, %v1410_v54  ;;  %v10553_v4 = vcombine.low %v1403_v55, %v1411_v56  ;;  %v1514_v53 = vld [vmem:[%s12158_s22 + $0x1790] sm:$0xff]  ;;  %v1515_v55 = vld [vmem:[%s12158_s22 + $0x1798] sm:$0xff] }
 0x34a   : > { %7430 = vmatprep.subr.bf16.mxu0 %v10456_v5  ;;  %7594 = vmatprep.subr.bf16.mxu1 %v10458_v6  ;;  %v10568_v5 = vcombine.high %v1418_v61, %v1426_v62  ;;  %v10570_v6 = vcombine.high %v1419_v63, %v1427_v0  ;;  %v1522_v54 = vld [vmem:[%s12158_s22 + $0x17d0] sm:$0xff]  ;;  %v1523_v56 = vld [vmem:[%s12158_s22 + $0x17d8] sm:$0xff] }
 0x34d   : > { %7431 = vmatpush1.bf16.msra.mxu0 %v10455_v11  ;;  %7595 = vmatpush1.bf16.msra.mxu1 %v10457_v12  ;;  %v10567_v11 = vcombine.low %v1418_v61, %v1426_v62  ;;  %v10569_v12 = vcombine.low %v1419_v63, %v1427_v0  ;;  %v1530_v61 = vld [vmem:[%s12158_s22 + $0x1810] sm:$0xff]  ;;  %v1531_v63 = vld [vmem:[%s12158_s22 + $0x1818] sm:$0xff] }
 0x34e   : > { %7432 = vmatprep.subr.bf16.mxu0 %v10472_v13  ;;  %7596 = vmatprep.subr.bf16.mxu1 %v10474_v14  ;;  %v10584_v13 = vcombine.high %v1434_v7, %v1442_v8  ;;  %v10586_v14 = vcombine.high %v1435_v51, %v1443_v10  ;;  %v1538_v62 = vld [vmem:[%s12158_s22 + $0x1850] sm:$0xff]  ;;  %v1539_v0 = vld [vmem:[%s12158_s22 + $0x1858] sm:$0xff] }
 0x351   : > { %7433 = vmatpush1.bf16.msra.mxu0 %v10471_v22  ;;  %7597 = vmatpush1.bf16.msra.mxu1 %v10473_v23  ;;  %v10583_v22 = vcombine.low %v1434_v7, %v1442_v8  ;;  %v10585_v23 = vcombine.low %v1435_v51, %v1443_v10  ;;  %v1546_v7 = vld [vmem:[%s12158_s22 + $0x1890] sm:$0xff]  ;;  %v1547_v51 = vld [vmem:[%s12158_s22 + $0x1898] sm:$0xff] }
 0x352   : > { %7434 = vmatprep.subr.bf16.mxu0 %v10488_v24  ;;  %7598 = vmatprep.subr.bf16.mxu1 %v10490_v25  ;;  %v10600_v24 = vcombine.high %v1450_v15, %v1458_v17  ;;  %v10602_v25 = vcombine.high %v1451_v19, %v1459_v21  ;;  %v1554_v8 = vld [vmem:[%s12158_s22 + $0x18d0] sm:$0xff]  ;;  %v1555_v10 = vld [vmem:[%s12158_s22 + $0x18d8] sm:$0xff] }
 0x355   : > { %7435 = vmatpush1.bf16.msra.mxu0 %v10487_v29  ;;  %7599 = vmatpush1.bf16.msra.mxu1 %v10489_v30  ;;  %v10599_v29 = vcombine.low %v1450_v15, %v1458_v17  ;;  %v10601_v30 = vcombine.low %v1451_v19, %v1459_v21  ;;  %v1562_v15 = vld [vmem:[%s12158_s22 + $0x1910] sm:$0xff]  ;;  %v1563_v19 = vld [vmem:[%s12158_s22 + $0x1918] sm:$0xff] }
 0x356   : > { %7436 = vmatprep.subr.bf16.mxu0 %v10504_v31  ;;  %7600 = vmatprep.subr.bf16.mxu1 %v10506_v32  ;;  %v10616_v31 = vcombine.high %v1466_v26, %v1474_v27  ;;  %v10618_v32 = vcombine.high %v1467_v1, %v1475_v28  ;;  %v1570_v17 = vld [vmem:[%s12158_s22 + $0x1950] sm:$0xff]  ;;  %v1571_v21 = vld [vmem:[%s12158_s22 + $0x1958] sm:$0xff] }
 0x359   : > { %7437 = vmatpush1.bf16.msra.mxu0 %v10503_v37  ;;  %7601 = vmatpush1.bf16.msra.mxu1 %v10505_v38  ;;  %v10615_v37 = vcombine.low %v1466_v26, %v1474_v27  ;;  %v10617_v38 = vcombine.low %v1467_v1, %v1475_v28  ;;  %v1578_v26 = vld [vmem:[%s12158_s22 + $0x1990] sm:$0xff]  ;;  %v1579_v1 = vld [vmem:[%s12158_s22 + $0x1998] sm:$0xff] }
 0x35a   : > { %7438 = vmatprep.subr.bf16.mxu0 %v10520_v40  ;;  %7602 = vmatprep.subr.bf16.mxu1 %v10522_v41  ;;  %v10632_v40 = vcombine.high %v1482_v33, %v1490_v34  ;;  %v10634_v41 = vcombine.high %v1483_v35, %v1491_v36  ;;  %v1586_v27 = vld [vmem:[%s12158_s22 + $0x19d0] sm:$0xff]  ;;  %v1587_v28 = vld [vmem:[%s12158_s22 + $0x19d8] sm:$0xff] }
 0x35d   : > { %7439 = vmatpush1.bf16.msra.mxu0 %v10519_v47  ;;  %7603 = vmatpush1.bf16.msra.mxu1 %v10521_v48  ;;  %v10631_v47 = vcombine.low %v1482_v33, %v1490_v34  ;;  %v10633_v48 = vcombine.low %v1483_v35, %v1491_v36  ;;  %v1594_v33 = vld [vmem:[%s12158_s22 + $0x1a10] sm:$0xff]  ;;  %v1595_v35 = vld [vmem:[%s12158_s22 + $0x1a18] sm:$0xff] }
 0x35e   : > { %7440 = vmatprep.subr.bf16.mxu0 %v10536_v49  ;;  %7604 = vmatprep.subr.bf16.mxu1 %v10538_v16  ;;  %v10648_v49 = vcombine.high %v1498_v43, %v1506_v44  ;;  %v10650_v16 = vcombine.high %v1499_v45, %v1507_v46  ;;  %v1602_v34 = vld [vmem:[%s12158_s22 + $0x1a50] sm:$0xff]  ;;  %v1603_v36 = vld [vmem:[%s12158_s22 + $0x1a58] sm:$0xff] }
 0x361   : > { %7441 = vmatpush1.bf16.msra.mxu0 %v10535_v57  ;;  %7605 = vmatpush1.bf16.msra.mxu1 %v10537_v58  ;;  %v10647_v57 = vcombine.low %v1498_v43, %v1506_v44  ;;  %v10649_v58 = vcombine.low %v1499_v45, %v1507_v46  ;;  %v1610_v43 = vld [vmem:[%s12158_s22 + $0x1a90] sm:$0xff]  ;;  %v1611_v45 = vld [vmem:[%s12158_s22 + $0x1a98] sm:$0xff] }
 0x362   : > { %7442 = vmatprep.subr.bf16.mxu0 %v10552_v59  ;;  %7606 = vmatprep.subr.bf16.mxu1 %v10554_v60  ;;  %v10664_v59 = vcombine.high %v1514_v53, %v1522_v54  ;;  %v10666_v60 = vcombine.high %v1515_v55, %v1523_v56  ;;  %v1618_v44 = vld [vmem:[%s12158_s22 + $0x1ad0] sm:$0xff]  ;;  %v1619_v46 = vld [vmem:[%s12158_s22 + $0x1ad8] sm:$0xff] }
 0x365   : > { %7443 = vmatpush1.bf16.msra.mxu0 %v10551_v3  ;;  %7607 = vmatpush1.bf16.msra.mxu1 %v10553_v4  ;;  %v10663_v3 = vcombine.low %v1514_v53, %v1522_v54  ;;  %v10665_v4 = vcombine.low %v1515_v55, %v1523_v56  ;;  %v1626_v53 = vld [vmem:[%s12158_s22 + $0x1b10] sm:$0xff]  ;;  %v1627_v55 = vld [vmem:[%s12158_s22 + $0x1b18] sm:$0xff] }
 0x366   : > { %7444 = vmatprep.subr.bf16.mxu0 %v10568_v5  ;;  %7608 = vmatprep.subr.bf16.mxu1 %v10570_v6  ;;  %v10680_v5 = vcombine.high %v1530_v61, %v1538_v62  ;;  %v10682_v6 = vcombine.high %v1531_v63, %v1539_v0  ;;  %v1634_v54 = vld [vmem:[%s12158_s22 + $0x1b50] sm:$0xff]  ;;  %v1635_v56 = vld [vmem:[%s12158_s22 + $0x1b58] sm:$0xff] }
 0x369   : > { %7445 = vmatpush1.bf16.msra.mxu0 %v10567_v11  ;;  %7609 = vmatpush1.bf16.msra.mxu1 %v10569_v12  ;;  %v10679_v11 = vcombine.low %v1530_v61, %v1538_v62  ;;  %v10681_v12 = vcombine.low %v1531_v63, %v1539_v0  ;;  %v10778_v61 = vcombine.high %v1627_v55, %v1635_v56  ;;  %v1642_v62 = vld [vmem:[%s12158_s22 + $0x1b90] sm:$0xff] }
 0x36a   : > { %7446 = vmatprep.subr.bf16.mxu0 %v10584_v13  ;;  %7610 = vmatprep.subr.bf16.mxu1 %v10586_v14  ;;  %v10696_v13 = vcombine.high %v1546_v7, %v1554_v8  ;;  %v10698_v14 = vcombine.high %v1547_v51, %v1555_v10  ;;  %v1650_v63 = vld [vmem:[%s12158_s22 + $0x1bd0] sm:$0xff] }
 0x36d   : > { %7447 = vmatpush1.bf16.msra.mxu0 %v10583_v22  ;;  %7611 = vmatpush1.bf16.msra.mxu1 %v10585_v23  ;;  %v10695_v22 = vcombine.low %v1546_v7, %v1554_v8  ;;  %v10697_v23 = vcombine.low %v1547_v51, %v1555_v10  ;;  %v10775_v8 = vcombine.low %v1626_v53, %v1634_v54 }
 0x36e   : > { %7448 = vmatprep.subr.bf16.mxu0 %v10600_v24  ;;  %7612 = vmatprep.subr.bf16.mxu1 %v10602_v25  ;;  %v10712_v24 = vcombine.high %v1562_v15, %v1570_v17  ;;  %v10714_v25 = vcombine.high %v1563_v19, %v1571_v21 }
 0x371   : > { %7449 = vmatpush1.bf16.msra.mxu0 %v10599_v29  ;;  %7613 = vmatpush1.bf16.msra.mxu1 %v10601_v30  ;;  %v10711_v29 = vcombine.low %v1562_v15, %v1570_v17  ;;  %v10713_v30 = vcombine.low %v1563_v19, %v1571_v21  ;;  %v1658_v15 = vld [vmem:[%s12158_s22 + $0x1c10] sm:$0xff]  ;;  %v1659_v19 = vld [vmem:[%s12158_s22 + $0x1c18] sm:$0xff] }
 0x372   : > { %7450 = vmatprep.subr.bf16.mxu0 %v10616_v31  ;;  %7614 = vmatprep.subr.bf16.mxu1 %v10618_v32  ;;  %v10728_v31 = vcombine.high %v1578_v26, %v1586_v27  ;;  %v10730_v32 = vcombine.high %v1579_v1, %v1587_v28  ;;  %v1666_v17 = vld [vmem:[%s12158_s22 + $0x1c50] sm:$0xff]  ;;  %v1667_v21 = vld [vmem:[%s12158_s22 + $0x1c58] sm:$0xff] }
 0x375   : > { %7451 = vmatpush1.bf16.msra.mxu0 %v10615_v37  ;;  %7615 = vmatpush1.bf16.msra.mxu1 %v10617_v38  ;;  %v10727_v37 = vcombine.low %v1578_v26, %v1586_v27  ;;  %v10729_v38 = vcombine.low %v1579_v1, %v1587_v28  ;;  %v1674_v26 = vld [vmem:[%s12158_s22 + $0x1c90] sm:$0xff]  ;;  %v1675_v1 = vld [vmem:[%s12158_s22 + $0x1c98] sm:$0xff] }
 0x376   : > { %7452 = vmatprep.subr.bf16.mxu0 %v10632_v40  ;;  %7616 = vmatprep.subr.bf16.mxu1 %v10634_v41  ;;  %v10744_v40 = vcombine.high %v1594_v33, %v1602_v34  ;;  %v10746_v41 = vcombine.high %v1595_v35, %v1603_v36  ;;  %v1682_v27 = vld [vmem:[%s12158_s22 + $0x1cd0] sm:$0xff]  ;;  %v1683_v28 = vld [vmem:[%s12158_s22 + $0x1cd8] sm:$0xff] }
 0x379   : > { %7453 = vmatpush1.bf16.msra.mxu0 %v10631_v47  ;;  %7617 = vmatpush1.bf16.msra.mxu1 %v10633_v48  ;;  %v10743_v47 = vcombine.low %v1594_v33, %v1602_v34  ;;  %v10745_v48 = vcombine.low %v1595_v35, %v1603_v36  ;;  %v1690_v33 = vld [vmem:[%s12158_s22 + $0x1d10] sm:$0xff]  ;;  %v1691_v35 = vld [vmem:[%s12158_s22 + $0x1d18] sm:$0xff] }
 0x37a   : > { %7454 = vmatprep.subr.bf16.mxu0 %v10648_v49  ;;  %7618 = vmatprep.subr.bf16.mxu1 %v10650_v16  ;;  %v10760_v49 = vcombine.high %v1610_v43, %v1618_v44  ;;  %v10762_v16 = vcombine.high %v1611_v45, %v1619_v46  ;;  %v1698_v34 = vld [vmem:[%s12158_s22 + $0x1d50] sm:$0xff]  ;;  %v1699_v36 = vld [vmem:[%s12158_s22 + $0x1d58] sm:$0xff] }
 0x37d   : > { %7455 = vmatpush1.bf16.msra.mxu0 %v10647_v57  ;;  %7619 = vmatpush1.bf16.msra.mxu1 %v10649_v58  ;;  %v10759_v57 = vcombine.low %v1610_v43, %v1618_v44  ;;  %v10761_v58 = vcombine.low %v1611_v45, %v1619_v46  ;;  %v1706_v43 = vld [vmem:[%s12158_s22 + $0x1d90] sm:$0xff]  ;;  %v1707_v45 = vld [vmem:[%s12158_s22 + $0x1d98] sm:$0xff] }
 0x37e   : > { %7456 = vmatprep.subr.bf16.mxu0 %v10664_v59  ;;  %7620 = vmatprep.subr.bf16.mxu1 %v10666_v60  ;;  %v10776_v59 = vcombine.high %v1626_v53, %v1634_v54  ;;  %v1714_v44 = vld [vmem:[%s12158_s22 + $0x1dd0] sm:$0xff]  ;;  %v1715_v46 = vld [vmem:[%s12158_s22 + $0x1dd8] sm:$0xff] }
 0x37f   : > { %v1722_v53 = vld [vmem:[%s12158_s22 + $0x1e10] sm:$0xff] }
 0x380   : > { %v1730_v54 = vld [vmem:[%s12158_s22 + $0x1e50] sm:$0xff] }
 0x381   : > { %7457 = vmatpush1.bf16.msra.mxu0 %v10663_v3  ;;  %7621 = vmatpush1.bf16.msra.mxu1 %v10665_v4  ;;  %v1643_v4 = vld [vmem:[%s12158_s22 + $0x1b98] sm:$0xff] }
 0x382   : > { %7467 = vmatprep.subr.bf16.mxu0 %v10680_v5  ;;  %7631 = vmatprep.subr.bf16.mxu1 %v10682_v6  ;;  %v1651_v5 = vld [vmem:[%s12158_s22 + $0x1bd8] sm:$0xff] }
 0x384   : > { %7459 = vmatmul.mubr.bf16.vlgmr.msra.gmra.mrb[4].mxu0 %v12423_v2  ;;  %7623 = vmatmul.mubr.bf16.vlgmr.msra.gmra.mrb[4].mxu1 %v12423_v2 }
 0x385   : > { %7468 = vmatpush1.bf16.msra.mxu0 %v10679_v11  ;;  %7632 = vmatpush1.bf16.msra.mxu1 %v10681_v12  ;;  %v10777_v11 = vcombine.low %v1627_v55, %v1635_v56  ;;  %v10792_v12 = vcombine.high %v1642_v62, %v1650_v63  ;;  %v1723_v55 = vld [vmem:[%s12158_s22 + $0x1e18] sm:$0xff] }
 0x386   : > { %7469 = vmatprep.subr.bf16.mxu0 %v10696_v13  ;;  %7633 = vmatprep.subr.bf16.mxu1 %v10698_v14  ;;  %v10794_v14 = vcombine.high %v1643_v4, %v1651_v5  ;;  %v1731_v56 = vld [vmem:[%s12158_s22 + $0x1e58] sm:$0xff] }
 0x387   : > { %7499 = vmatprep.mubr.bf16.mxu0 %v12429_v9  ;;  %7663 = vmatprep.mubr.bf16.mxu1 %v12429_v9 }
 0x389   : > { %7470 = vmatpush1.bf16.msra.mxu0 %v10695_v22  ;;  %7634 = vmatpush1.bf16.msra.mxu1 %v10697_v23  ;;  %v10791_v22 = vcombine.low %v1642_v62, %v1650_v63  ;;  %v10793_v23 = vcombine.low %v1643_v4, %v1651_v5  ;;  %v1738_v62 = vld [vmem:[%s12158_s22 + $0x1e90] sm:$0xff]  ;;  %v1739_v4 = vld [vmem:[%s12158_s22 + $0x1e98] sm:$0xff] }
 0x38a   : > { %7471 = vmatprep.subr.bf16.mxu0 %v10712_v24  ;;  %7635 = vmatprep.subr.bf16.mxu1 %v10714_v25  ;;  %v10808_v24 = vcombine.high %v1658_v15, %v1666_v17  ;;  %v10810_v25 = vcombine.high %v1659_v19, %v1667_v21  ;;  %v1746_v63 = vld [vmem:[%s12158_s22 + $0x1ed0] sm:$0xff]  ;;  %v1747_v5 = vld [vmem:[%s12158_s22 + $0x1ed8] sm:$0xff] }
 0x38d   : > { %7472 = vmatpush1.bf16.msra.mxu0 %v10711_v29  ;;  %7636 = vmatpush1.bf16.msra.mxu1 %v10713_v30  ;;  %v10807_v29 = vcombine.low %v1658_v15, %v1666_v17  ;;  %v10809_v30 = vcombine.low %v1659_v19, %v1667_v21  ;;  %v10887_v15 = vcombine.low %v1738_v62, %v1746_v63 }
 0x38e   : > { %7473 = vmatprep.subr.bf16.mxu0 %v10728_v31  ;;  %7637 = vmatprep.subr.bf16.mxu1 %v10730_v32  ;;  %v10824_v31 = vcombine.high %v1674_v26, %v1682_v27  ;;  %v10826_v32 = vcombine.high %v1675_v1, %v1683_v28  ;;  %v10889_v17 = vcombine.low %v1739_v4, %v1747_v5 }
 0x391   : > { %7474 = vmatpush1.bf16.msra.mxu0 %v10727_v37  ;;  %7638 = vmatpush1.bf16.msra.mxu1 %v10729_v38  ;;  %v10823_v37 = vcombine.low %v1674_v26, %v1682_v27  ;;  %v10825_v38 = vcombine.low %v1675_v1, %v1683_v28 }
 0x392   : > { %7475 = vmatprep.subr.bf16.mxu0 %v10744_v40  ;;  %7639 = vmatprep.subr.bf16.mxu1 %v10746_v41  ;;  %v10840_v40 = vcombine.high %v1690_v33, %v1698_v34  ;;  %v10842_v41 = vcombine.high %v1691_v35, %v1699_v36 }
 0x395   : > { %7476 = vmatpush1.bf16.msra.mxu0 %v10743_v47  ;;  %7640 = vmatpush1.bf16.msra.mxu1 %v10745_v48  ;;  %v10839_v47 = vcombine.low %v1690_v33, %v1698_v34  ;;  %v10841_v48 = vcombine.low %v1691_v35, %v1699_v36 }
 0x396   : > { %7477 = vmatprep.subr.bf16.mxu0 %v10760_v49  ;;  %7641 = vmatprep.subr.bf16.mxu1 %v10762_v16  ;;  %v10856_v49 = vcombine.high %v1706_v43, %v1714_v44  ;;  %v10858_v16 = vcombine.high %v1707_v45, %v1715_v46 }
 0x397   : > { %v12729_v60 = vpop.f32.mrb[0].mxu0  ;;  %v12733_v0 = vpop.f32.mrb[0].mxu1 }
 0x398   : > { %v12735_v3 = vpop.f32.mrb[1].mxu0  ;;  %v12739_v6 = vpop.f32.mrb[1].mxu1 }
 0x399   : > { %v7177_v7 = vpop.f32.mrb[2].mxu0  ;;  %7478 = vmatpush1.bf16.msra.mxu0 %v10759_v57  ;;  %v7341_v51 = vpop.f32.mrb[2].mxu1  ;;  %7642 = vmatpush1.bf16.msra.mxu1 %v10761_v58  ;;  %v10855_v57 = vcombine.low %v1706_v43, %v1714_v44  ;;  %v10857_v58 = vcombine.low %v1707_v45, %v1715_v46 }
 0x39a   : > { %v7178_v10 = vpop.f32.mrb[3].mxu0  ;;  %7479 = vmatprep.subr.bf16.mxu0 %v10776_v59  ;;  %v7342_v13 = vpop.f32.mrb[3].mxu1  ;;  %7643 = vmatprep.subr.bf16.mxu1 %v10778_v61  ;;  %v10872_v59 = vcombine.high %v1722_v53, %v1730_v54  ;;  %v10874_v61 = vcombine.high %v1723_v55, %v1731_v56  ;;  %v10871_v7 = vcombine.low %v1722_v53, %v1730_v54 }
 0x39b   : > { %v10888_v51 = vcombine.high %v1738_v62, %v1746_v63  ;;  %v10890_v10 = vcombine.high %v1739_v4, %v1747_v5  ;;  %v1755_v13 = vld [vmem:[%s12158_s22 + $0x1f18] sm:$0xff] }
 0x39d   : > { %7480 = vmatpush1.bf16.msra.mxu0 %v10775_v8  ;;  %7644 = vmatpush1.bf16.msra.mxu1 %v10777_v11  ;;  %v10873_v8 = vcombine.low %v1723_v55, %v1731_v56  ;;  %v1754_v11 = vld [vmem:[%s12158_s22 + $0x1f10] sm:$0xff] }
 0x39e   : > { %7481 = vmatprep.subr.bf16.mxu0 %v10792_v12  ;;  %7645 = vmatprep.subr.bf16.mxu1 %v10794_v14  ;;  %v1762_v12 = vld [vmem:[%s12158_s22 + $0x1f50] sm:$0xff]  ;;  %v1763_v14 = vld [vmem:[%s12158_s22 + $0x1f58] sm:$0xff] }
 0x39f   : > { %v10904_v19 = vcombine.high %v1754_v11, %v1762_v12  ;;  %v10906_v21 = vcombine.high %v1755_v13, %v1763_v14  ;;  %v10903_v26 = vcombine.low %v1754_v11, %v1762_v12  ;;  %v10905_v27 = vcombine.low %v1755_v13, %v1763_v14 }
 0x3a1   : > { %7482 = vmatpush1.bf16.msra.mxu0 %v10791_v22  ;;  %7646 = vmatpush1.bf16.msra.mxu1 %v10793_v23  ;;  %v1770_v22 = vld [vmem:[%s12158_s22 + $0x1f90] sm:$0xff] }
 0x3a2   : > { %7483 = vmatprep.subr.bf16.mxu0 %v10808_v24  ;;  %7647 = vmatprep.subr.bf16.mxu1 %v10810_v25  ;;  %v1778_v23 = vld [vmem:[%s12158_s22 + $0x1fd0] sm:$0xff]  ;;  %v1771_v24 = vld [vmem:[%s12158_s22 + $0x1f98] sm:$0xff] }
 0x3a3   : > { %v1779_v25 = vld [vmem:[%s12158_s22 + $0x1fd8] sm:$0xff]  ;;  %v10920_v1 = vcombine.high %v1770_v22, %v1778_v23  ;;  %v10919_v33 = vcombine.low %v1770_v22, %v1778_v23 }
 0x3a4   : > { %v10922_v28 = vcombine.high %v1771_v24, %v1779_v25  ;;  %v10921_v34 = vcombine.low %v1771_v24, %v1779_v25 }
 0x3a5   : > { %7484 = vmatpush1.bf16.msra.mxu0 %v10807_v29  ;;  %7648 = vmatpush1.bf16.msra.mxu1 %v10809_v30  ;;  %v764_v29 = vld [vmem:[%s12158_s22 + $0x20] sm:$0xff] }
 0x3a6   : > { %7485 = vmatprep.subr.bf16.mxu0 %v10824_v31  ;;  %7649 = vmatprep.subr.bf16.mxu1 %v10826_v32  ;;  %v772_v30 = vld [vmem:[%s12158_s22 + $0x60] sm:$0xff]  ;;  %v765_v31 = vld [vmem:[%s12158_s22 + $0x28] sm:$0xff] }
 0x3a7   : > { %v773_v32 = vld [vmem:[%s12158_s22 + $0x68] sm:$0xff]  ;;  %v9916_v35 = vcombine.high %v764_v29, %v772_v30  ;;  %v9915_v43 = vcombine.low %v764_v29, %v772_v30 }
 0x3a8   : > { %v9918_v36 = vcombine.high %v765_v31, %v773_v32  ;;  %v9917_v44 = vcombine.low %v765_v31, %v773_v32 }
 0x3a9   : > { %7486 = vmatpush1.bf16.msra.mxu0 %v10823_v37  ;;  %7650 = vmatpush1.bf16.msra.mxu1 %v10825_v38  ;;  %v780_v37 = vld [vmem:[%s12158_s22 + $0xa0] sm:$0xff] }
 0x3aa   : > { %7487 = vmatprep.subr.bf16.mxu0 %v10840_v40  ;;  %7651 = vmatprep.subr.bf16.mxu1 %v10842_v41  ;;  %v788_v38 = vld [vmem:[%s12158_s22 + $0xe0] sm:$0xff]  ;;  %v781_v40 = vld [vmem:[%s12158_s22 + $0xa8] sm:$0xff] }
 0x3ab   : > { %v789_v41 = vld [vmem:[%s12158_s22 + $0xe8] sm:$0xff]  ;;  %v9932_v45 = vcombine.high %v780_v37, %v788_v38  ;;  %v9931_v53 = vcombine.low %v780_v37, %v788_v38 }
 0x3ac   : > { %v9934_v46 = vcombine.high %v781_v40, %v789_v41  ;;  %v9933_v54 = vcombine.low %v781_v40, %v789_v41 }
 0x3ad   : > { %7488 = vmatpush1.bf16.msra.mxu0 %v10839_v47  ;;  %7652 = vmatpush1.bf16.msra.mxu1 %v10841_v48  ;;  %v796_v47 = vld [vmem:[%s12158_s22 + $0x120] sm:$0xff] }
 0x3ae   : > { %7489 = vmatprep.subr.bf16.mxu0 %v10856_v49  ;;  %7653 = vmatprep.subr.bf16.mxu1 %v10858_v16  ;;  %v804_v48 = vld [vmem:[%s12158_s22 + $0x160] sm:$0xff]  ;;  %v797_v49 = vld [vmem:[%s12158_s22 + $0x128] sm:$0xff] }
 0x3af   : > { %v805_v16 = vld [vmem:[%s12158_s22 + $0x168] sm:$0xff]  ;;  %v9948_v55 = vcombine.high %v796_v47, %v804_v48  ;;  %v9947_v62 = vcombine.low %v796_v47, %v804_v48 }
 0x3b0   : > { %v9950_v56 = vcombine.high %v797_v49, %v805_v16  ;;  %v9949_v63 = vcombine.low %v797_v49, %v805_v16 }
 0x3b1   : > { %7490 = vmatpush1.bf16.msra.mxu0 %v10855_v57  ;;  %7654 = vmatpush1.bf16.msra.mxu1 %v10857_v58  ;;  %v812_v57 = vld [vmem:[%s12158_s22 + $0x1a0] sm:$0xff] }
 0x3b2   : > { %7491 = vmatprep.subr.bf16.mxu0 %v10872_v59  ;;  %7655 = vmatprep.subr.bf16.mxu1 %v10874_v61  ;;  %v820_v58 = vld [vmem:[%s12158_s22 + $0x1e0] sm:$0xff]  ;;  %v813_v59 = vld [vmem:[%s12158_s22 + $0x1a8] sm:$0xff] }
 0x3b3   : > { %v821_v61 = vld [vmem:[%s12158_s22 + $0x1e8] sm:$0xff]  ;;  %v9964_v4 = vcombine.high %v812_v57, %v820_v58  ;;  %v9963_v11 = vcombine.low %v812_v57, %v820_v58 }
 0x3b4   : > { %v9966_v5 = vcombine.high %v813_v59, %v821_v61  ;;  %v9965_v12 = vcombine.low %v813_v59, %v821_v61 }
 0x3b5   : > { %7492 = vmatpush1.bf16.msra.mxu0 %v10871_v7  ;;  %7656 = vmatpush1.bf16.msra.mxu1 %v10873_v8  ;;  %v828_v7 = vld [vmem:[%s12158_s22 + $0x220] sm:$0xff] }
 0x3b6   : > { %7493 = vmatprep.subr.bf16.mxu0 %v10888_v51  ;;  %7657 = vmatprep.subr.bf16.mxu1 %v10890_v10  ;;  %v836_v8 = vld [vmem:[%s12158_s22 + $0x260] sm:$0xff]  ;;  %v829_v51 = vld [vmem:[%s12158_s22 + $0x228] sm:$0xff] }
 0x3b7   : > { %v837_v10 = vld [vmem:[%s12158_s22 + $0x268] sm:$0xff]  ;;  %v9980_v13 = vcombine.high %v828_v7, %v836_v8  ;;  %v9979_v22 = vcombine.low %v828_v7, %v836_v8 }
 0x3b8   : > { %v9982_v14 = vcombine.high %v829_v51, %v837_v10  ;;  %v9981_v23 = vcombine.low %v829_v51, %v837_v10 }
 0x3b9   : > { %7494 = vmatpush1.bf16.msra.mxu0 %v10887_v15  ;;  %7658 = vmatpush1.bf16.msra.mxu1 %v10889_v17  ;;  %v844_v15 = vld [vmem:[%s12158_s22 + $0x2a0] sm:$0xff] }
 0x3ba   : > { %7495 = vmatprep.subr.bf16.mxu0 %v10904_v19  ;;  %7659 = vmatprep.subr.bf16.mxu1 %v10906_v21  ;;  %v852_v17 = vld [vmem:[%s12158_s22 + $0x2e0] sm:$0xff]  ;;  %v845_v19 = vld [vmem:[%s12158_s22 + $0x2a8] sm:$0xff] }
 0x3bb   : > { %v853_v21 = vld [vmem:[%s12158_s22 + $0x2e8] sm:$0xff]  ;;  %v9996_v24 = vcombine.high %v844_v15, %v852_v17  ;;  %v9995_v29 = vcombine.low %v844_v15, %v852_v17 }
 0x3bc   : > { %v9998_v25 = vcombine.high %v845_v19, %v853_v21  ;;  %v9997_v30 = vcombine.low %v845_v19, %v853_v21 }
 0x3bd   : > { %7496 = vmatpush1.bf16.msra.mxu0 %v10903_v26  ;;  %7660 = vmatpush1.bf16.msra.mxu1 %v10905_v27  ;;  %v860_v26 = vld [vmem:[%s12158_s22 + $0x320] sm:$0xff] }
 0x3be   : > { %7497 = vmatprep.subr.bf16.mxu0 %v10920_v1  ;;  %7661 = vmatprep.subr.bf16.mxu1 %v10922_v28  ;;  %v868_v27 = vld [vmem:[%s12158_s22 + $0x360] sm:$0xff]  ;;  %v861_v1 = vld [vmem:[%s12158_s22 + $0x328] sm:$0xff] }
 0x3bf   : > { %v869_v28 = vld [vmem:[%s12158_s22 + $0x368] sm:$0xff]  ;;  %v10012_v31 = vcombine.high %v860_v26, %v868_v27  ;;  %v10011_v37 = vcombine.low %v860_v26, %v868_v27 }
 0x3c0   : > { %v10014_v32 = vcombine.high %v861_v1, %v869_v28  ;;  %v10013_v38 = vcombine.low %v861_v1, %v869_v28 }
 0x3c1   : > { %7498 = vmatpush1.bf16.msra.mxu0 %v10919_v33  ;;  %7662 = vmatpush1.bf16.msra.mxu1 %v10921_v34  ;;  %v876_v33 = vld [vmem:[%s12158_s22 + $0x3a0] sm:$0xff] }
 0x3c2   : > { %7672 = vmatprep.subr.bf16.mxu0 %v9916_v35  ;;  %7836 = vmatprep.subr.bf16.mxu1 %v9918_v36  ;;  %v884_v34 = vld [vmem:[%s12158_s22 + $0x3e0] sm:$0xff]  ;;  %v877_v35 = vld [vmem:[%s12158_s22 + $0x3a8] sm:$0xff] }
 0x3c3   : > { %v885_v36 = vld [vmem:[%s12158_s22 + $0x3e8] sm:$0xff]  ;;  %v10028_v40 = vcombine.high %v876_v33, %v884_v34  ;;  %v10027_v47 = vcombine.low %v876_v33, %v884_v34 }
 0x3c4   : > { %7500 = vmatmul.mubr.bf16.vlgmr.msra.gmra.mrb[4].mxu0 %v12497_v18  ;;  %7664 = vmatmul.mubr.bf16.vlgmr.msra.gmra.mrb[4].mxu1 %v12497_v18  ;;  %v10030_v41 = vcombine.high %v877_v35, %v885_v36  ;;  %v10029_v48 = vcombine.low %v877_v35, %v885_v36 }
 0x3c5   : > { %7673 = vmatpush1.bf16.msra.mxu0 %v9915_v43  ;;  %7837 = vmatpush1.bf16.msra.mxu1 %v9917_v44  ;;  %v892_v43 = vld [vmem:[%s12158_s22 + $0x420] sm:$0xff] }
 0x3c6   : > { %7674 = vmatprep.subr.bf16.mxu0 %v9932_v45  ;;  %7838 = vmatprep.subr.bf16.mxu1 %v9934_v46  ;;  %v900_v44 = vld [vmem:[%s12158_s22 + $0x460] sm:$0xff]  ;;  %v893_v45 = vld [vmem:[%s12158_s22 + $0x428] sm:$0xff] }
 0x3c7   : > { %7704 = vmatprep.mubr.bf16.mxu0 %v12217_v20  ;;  %7868 = vmatprep.mubr.bf16.mxu1 %v12217_v20  ;;  %v901_v46 = vld [vmem:[%s12158_s22 + $0x468] sm:$0xff]  ;;  %v10044_v49 = vcombine.high %v892_v43, %v900_v44  ;;  %v10043_v57 = vcombine.low %v892_v43, %v900_v44 }
 0x3c8   : > { %v10046_v16 = vcombine.high %v893_v45, %v901_v46  ;;  %v10045_v58 = vcombine.low %v893_v45, %v901_v46 }
 0x3c9   : > { %7675 = vmatpush1.bf16.msra.mxu0 %v9931_v53  ;;  %7839 = vmatpush1.bf16.msra.mxu1 %v9933_v54  ;;  %v908_v53 = vld [vmem:[%s12158_s22 + $0x4a0] sm:$0xff] }
 0x3ca   : > { %7676 = vmatprep.subr.bf16.mxu0 %v9948_v55  ;;  %7840 = vmatprep.subr.bf16.mxu1 %v9950_v56  ;;  %v916_v54 = vld [vmem:[%s12158_s22 + $0x4e0] sm:$0xff]  ;;  %v909_v55 = vld [vmem:[%s12158_s22 + $0x4a8] sm:$0xff] }
 0x3cb   : > { %v917_v56 = vld [vmem:[%s12158_s22 + $0x4e8] sm:$0xff]  ;;  %v10060_v59 = vcombine.high %v908_v53, %v916_v54  ;;  %v10059_v7 = vcombine.low %v908_v53, %v916_v54 }
 0x3cc   : > { %v10062_v61 = vcombine.high %v909_v55, %v917_v56  ;;  %v10061_v8 = vcombine.low %v909_v55, %v917_v56 }
 0x3cd   : > { %7677 = vmatpush1.bf16.msra.mxu0 %v9947_v62  ;;  %7841 = vmatpush1.bf16.msra.mxu1 %v9949_v63  ;;  %v924_v62 = vld [vmem:[%s12158_s22 + $0x520] sm:$0xff] }
 0x3ce   : > { %7678 = vmatprep.subr.bf16.mxu0 %v9964_v4  ;;  %7842 = vmatprep.subr.bf16.mxu1 %v9966_v5  ;;  %v932_v63 = vld [vmem:[%s12158_s22 + $0x560] sm:$0xff]  ;;  %v925_v4 = vld [vmem:[%s12158_s22 + $0x528] sm:$0xff] }
 0x3cf   : > { %v933_v5 = vld [vmem:[%s12158_s22 + $0x568] sm:$0xff]  ;;  %v10076_v51 = vcombine.high %v924_v62, %v932_v63  ;;  %v10075_v15 = vcombine.low %v924_v62, %v932_v63 }
 0x3d0   : > { %v10078_v10 = vcombine.high %v925_v4, %v933_v5  ;;  %v10077_v17 = vcombine.low %v925_v4, %v933_v5 }
 0x3d1   : > { %7679 = vmatpush1.bf16.msra.mxu0 %v9963_v11  ;;  %7843 = vmatpush1.bf16.msra.mxu1 %v9965_v12  ;;  %v940_v11 = vld [vmem:[%s12158_s22 + $0x5a0] sm:$0xff] }
 0x3d2   : > { %7680 = vmatprep.subr.bf16.mxu0 %v9980_v13  ;;  %7844 = vmatprep.subr.bf16.mxu1 %v9982_v14  ;;  %v948_v12 = vld [vmem:[%s12158_s22 + $0x5e0] sm:$0xff]  ;;  %v941_v13 = vld [vmem:[%s12158_s22 + $0x5a8] sm:$0xff] }
 0x3d3   : > { %v949_v14 = vld [vmem:[%s12158_s22 + $0x5e8] sm:$0xff]  ;;  %v10092_v19 = vcombine.high %v940_v11, %v948_v12  ;;  %v10091_v26 = vcombine.low %v940_v11, %v948_v12 }
 0x3d4   : > { %v10094_v21 = vcombine.high %v941_v13, %v949_v14  ;;  %v10093_v27 = vcombine.low %v941_v13, %v949_v14 }
 0x3d5   : > { %7681 = vmatpush1.bf16.msra.mxu0 %v9979_v22  ;;  %7845 = vmatpush1.bf16.msra.mxu1 %v9981_v23  ;;  %v956_v22 = vld [vmem:[%s12158_s22 + $0x620] sm:$0xff] }
 0x3d6   : > { %7682 = vmatprep.subr.bf16.mxu0 %v9996_v24  ;;  %7846 = vmatprep.subr.bf16.mxu1 %v9998_v25  ;;  %v964_v23 = vld [vmem:[%s12158_s22 + $0x660] sm:$0xff]  ;;  %v957_v24 = vld [vmem:[%s12158_s22 + $0x628] sm:$0xff] }
 0x3d7   : > { %v965_v25 = vld [vmem:[%s12158_s22 + $0x668] sm:$0xff]  ;;  %v10108_v1 = vcombine.high %v956_v22, %v964_v23  ;;  %v10107_v33 = vcombine.low %v956_v22, %v964_v23 }
 0x3d8   : > { %v10110_v28 = vcombine.high %v957_v24, %v965_v25  ;;  %v10109_v34 = vcombine.low %v957_v24, %v965_v25 }
 0x3d9   : > { %7683 = vmatpush1.bf16.msra.mxu0 %v9995_v29  ;;  %7847 = vmatpush1.bf16.msra.mxu1 %v9997_v30  ;;  %v972_v29 = vld [vmem:[%s12158_s22 + $0x6a0] sm:$0xff] }
 0x3da   : > { %7684 = vmatprep.subr.bf16.mxu0 %v10012_v31  ;;  %7848 = vmatprep.subr.bf16.mxu1 %v10014_v32  ;;  %v980_v30 = vld [vmem:[%s12158_s22 + $0x6e0] sm:$0xff]  ;;  %v973_v31 = vld [vmem:[%s12158_s22 + $0x6a8] sm:$0xff] }
 0x3db   : > { %v981_v32 = vld [vmem:[%s12158_s22 + $0x6e8] sm:$0xff]  ;;  %v10124_v35 = vcombine.high %v972_v29, %v980_v30  ;;  %v10123_v43 = vcombine.low %v972_v29, %v980_v30 }
 0x3dc   : > { %v10126_v36 = vcombine.high %v973_v31, %v981_v32  ;;  %v10125_v44 = vcombine.low %v973_v31, %v981_v32 }
 0x3dd   : > { %7685 = vmatpush1.bf16.msra.mxu0 %v10011_v37  ;;  %7849 = vmatpush1.bf16.msra.mxu1 %v10013_v38  ;;  %v988_v37 = vld [vmem:[%s12158_s22 + $0x720] sm:$0xff] }
 0x3de   : > { %7686 = vmatprep.subr.bf16.mxu0 %v10028_v40  ;;  %7850 = vmatprep.subr.bf16.mxu1 %v10030_v41  ;;  %v996_v38 = vld [vmem:[%s12158_s22 + $0x760] sm:$0xff]  ;;  %v989_v40 = vld [vmem:[%s12158_s22 + $0x728] sm:$0xff] }
 0x3df   : > { %v997_v41 = vld [vmem:[%s12158_s22 + $0x768] sm:$0xff]  ;;  %v10140_v45 = vcombine.high %v988_v37, %v996_v38  ;;  %v10139_v53 = vcombine.low %v988_v37, %v996_v38 }
 0x3e0   : > { %v10142_v46 = vcombine.high %v989_v40, %v997_v41  ;;  %v10141_v54 = vcombine.low %v989_v40, %v997_v41 }
 0x3e1   : > { %7687 = vmatpush1.bf16.msra.mxu0 %v10027_v47  ;;  %7851 = vmatpush1.bf16.msra.mxu1 %v10029_v48  ;;  %v1004_v47 = vld [vmem:[%s12158_s22 + $0x7a0] sm:$0xff] }
 0x3e2   : > { %7688 = vmatprep.subr.bf16.mxu0 %v10044_v49  ;;  %7852 = vmatprep.subr.bf16.mxu1 %v10046_v16  ;;  %v1012_v48 = vld [vmem:[%s12158_s22 + $0x7e0] sm:$0xff]  ;;  %v1005_v49 = vld [vmem:[%s12158_s22 + $0x7a8] sm:$0xff] }
 0x3e3   : > { %v1013_v16 = vld [vmem:[%s12158_s22 + $0x7e8] sm:$0xff]  ;;  %v10156_v55 = vcombine.high %v1004_v47, %v1012_v48  ;;  %v10155_v62 = vcombine.low %v1004_v47, %v1012_v48 }
 0x3e4   : > { %v10158_v56 = vcombine.high %v1005_v49, %v1013_v16  ;;  %v10157_v63 = vcombine.low %v1005_v49, %v1013_v16 }
 0x3e5   : > { %7689 = vmatpush1.bf16.msra.mxu0 %v10043_v57  ;;  %7853 = vmatpush1.bf16.msra.mxu1 %v10045_v58  ;;  %v1020_v57 = vld [vmem:[%s12158_s22 + $0x820] sm:$0xff] }
 0x3e6   : > { %7690 = vmatprep.subr.bf16.mxu0 %v10060_v59  ;;  %7854 = vmatprep.subr.bf16.mxu1 %v10062_v61  ;;  %v1028_v58 = vld [vmem:[%s12158_s22 + $0x860] sm:$0xff]  ;;  %v1021_v59 = vld [vmem:[%s12158_s22 + $0x828] sm:$0xff] }
 0x3e7   : > { %v1029_v61 = vld [vmem:[%s12158_s22 + $0x868] sm:$0xff]  ;;  %v10172_v4 = vcombine.high %v1020_v57, %v1028_v58  ;;  %v10171_v11 = vcombine.low %v1020_v57, %v1028_v58 }
 0x3e8   : > { %v10174_v5 = vcombine.high %v1021_v59, %v1029_v61  ;;  %v10173_v12 = vcombine.low %v1021_v59, %v1029_v61 }
 0x3e9   : > { %7691 = vmatpush1.bf16.msra.mxu0 %v10059_v7  ;;  %7855 = vmatpush1.bf16.msra.mxu1 %v10061_v8  ;;  %v1036_v7 = vld [vmem:[%s12158_s22 + $0x8a0] sm:$0xff] }
 0x3ea   : > { %7692 = vmatprep.subr.bf16.mxu0 %v10076_v51  ;;  %7856 = vmatprep.subr.bf16.mxu1 %v10078_v10  ;;  %v1044_v8 = vld [vmem:[%s12158_s22 + $0x8e0] sm:$0xff]  ;;  %v1037_v51 = vld [vmem:[%s12158_s22 + $0x8a8] sm:$0xff] }
 0x3eb   : > { %v1045_v10 = vld [vmem:[%s12158_s22 + $0x8e8] sm:$0xff]  ;;  %v10188_v13 = vcombine.high %v1036_v7, %v1044_v8  ;;  %v10187_v22 = vcombine.low %v1036_v7, %v1044_v8 }
 0x3ec   : > { %v10190_v14 = vcombine.high %v1037_v51, %v1045_v10  ;;  %v10189_v23 = vcombine.low %v1037_v51, %v1045_v10 }
 0x3ed   : > { %7693 = vmatpush1.bf16.msra.mxu0 %v10075_v15  ;;  %7857 = vmatpush1.bf16.msra.mxu1 %v10077_v17  ;;  %v1052_v15 = vld [vmem:[%s12158_s22 + $0x920] sm:$0xff] }
 0x3ee   : > { %7694 = vmatprep.subr.bf16.mxu0 %v10092_v19  ;;  %7858 = vmatprep.subr.bf16.mxu1 %v10094_v21  ;;  %v1060_v17 = vld [vmem:[%s12158_s22 + $0x960] sm:$0xff]  ;;  %v1053_v19 = vld [vmem:[%s12158_s22 + $0x928] sm:$0xff] }
 0x3ef   : > { %v1061_v21 = vld [vmem:[%s12158_s22 + $0x968] sm:$0xff]  ;;  %v10204_v24 = vcombine.high %v1052_v15, %v1060_v17  ;;  %v10203_v29 = vcombine.low %v1052_v15, %v1060_v17 }
 0x3f0   : > { %v10206_v25 = vcombine.high %v1053_v19, %v1061_v21  ;;  %v10205_v30 = vcombine.low %v1053_v19, %v1061_v21 }
 0x3f1   : > { %7695 = vmatpush1.bf16.msra.mxu0 %v10091_v26  ;;  %7859 = vmatpush1.bf16.msra.mxu1 %v10093_v27  ;;  %v1068_v26 = vld [vmem:[%s12158_s22 + $0x9a0] sm:$0xff] }
 0x3f2   : > { %7696 = vmatprep.subr.bf16.mxu0 %v10108_v1  ;;  %7860 = vmatprep.subr.bf16.mxu1 %v10110_v28  ;;  %v1076_v27 = vld [vmem:[%s12158_s22 + $0x9e0] sm:$0xff]  ;;  %v1069_v1 = vld [vmem:[%s12158_s22 + $0x9a8] sm:$0xff] }
 0x3f3   : > { %v1077_v28 = vld [vmem:[%s12158_s22 + $0x9e8] sm:$0xff]  ;;  %v10220_v31 = vcombine.high %v1068_v26, %v1076_v27  ;;  %v10219_v37 = vcombine.low %v1068_v26, %v1076_v27 }
 0x3f4   : > { %v10222_v32 = vcombine.high %v1069_v1, %v1077_v28  ;;  %v10221_v38 = vcombine.low %v1069_v1, %v1077_v28 }
 0x3f5   : > { %7697 = vmatpush1.bf16.msra.mxu0 %v10107_v33  ;;  %7861 = vmatpush1.bf16.msra.mxu1 %v10109_v34  ;;  %v1084_v33 = vld [vmem:[%s12158_s22 + $0xa20] sm:$0xff] }
 0x3f6   : > { %7698 = vmatprep.subr.bf16.mxu0 %v10124_v35  ;;  %7862 = vmatprep.subr.bf16.mxu1 %v10126_v36  ;;  %v1092_v34 = vld [vmem:[%s12158_s22 + $0xa60] sm:$0xff]  ;;  %v1085_v35 = vld [vmem:[%s12158_s22 + $0xa28] sm:$0xff] }
 0x3f7   : > { %v1093_v36 = vld [vmem:[%s12158_s22 + $0xa68] sm:$0xff]  ;;  %v10236_v40 = vcombine.high %v1084_v33, %v1092_v34  ;;  %v10235_v47 = vcombine.low %v1084_v33, %v1092_v34 }
 0x3f8   : > { %v10238_v41 = vcombine.high %v1085_v35, %v1093_v36  ;;  %v10237_v48 = vcombine.low %v1085_v35, %v1093_v36 }
 0x3f9   : > { %7699 = vmatpush1.bf16.msra.mxu0 %v10123_v43  ;;  %7863 = vmatpush1.bf16.msra.mxu1 %v10125_v44  ;;  %v1100_v43 = vld [vmem:[%s12158_s22 + $0xaa0] sm:$0xff] }
 0x3fa   : > { %7700 = vmatprep.subr.bf16.mxu0 %v10140_v45  ;;  %7864 = vmatprep.subr.bf16.mxu1 %v10142_v46  ;;  %v1108_v44 = vld [vmem:[%s12158_s22 + $0xae0] sm:$0xff]  ;;  %v1101_v45 = vld [vmem:[%s12158_s22 + $0xaa8] sm:$0xff] }
 0x3fb   : > { %v1109_v46 = vld [vmem:[%s12158_s22 + $0xae8] sm:$0xff]  ;;  %v10252_v49 = vcombine.high %v1100_v43, %v1108_v44  ;;  %v10251_v57 = vcombine.low %v1100_v43, %v1108_v44 }
 0x3fc   : > { %v10254_v16 = vcombine.high %v1101_v45, %v1109_v46  ;;  %v10253_v58 = vcombine.low %v1101_v45, %v1109_v46 }
 0x3fd   : > { %7701 = vmatpush1.bf16.msra.mxu0 %v10139_v53  ;;  %7865 = vmatpush1.bf16.msra.mxu1 %v10141_v54  ;;  %v1116_v53 = vld [vmem:[%s12158_s22 + $0xb20] sm:$0xff] }
 0x3fe   : > { %7702 = vmatprep.subr.bf16.mxu0 %v10156_v55  ;;  %7866 = vmatprep.subr.bf16.mxu1 %v10158_v56  ;;  %v1124_v54 = vld [vmem:[%s12158_s22 + $0xb60] sm:$0xff]  ;;  %v1117_v55 = vld [vmem:[%s12158_s22 + $0xb28] sm:$0xff] }
 0x3ff   : > { %v1125_v56 = vld [vmem:[%s12158_s22 + $0xb68] sm:$0xff]  ;;  %v10268_v59 = vcombine.high %v1116_v53, %v1124_v54  ;;  %v10267_v7 = vcombine.low %v1116_v53, %v1124_v54 }
 0x400   : > { %v10270_v61 = vcombine.high %v1117_v55, %v1125_v56  ;;  %v10269_v8 = vcombine.low %v1117_v55, %v1125_v56 }
 0x401   : > { %7703 = vmatpush1.bf16.msra.mxu0 %v10155_v62  ;;  %7867 = vmatpush1.bf16.msra.mxu1 %v10157_v63  ;;  %v1132_v62 = vld [vmem:[%s12158_s22 + $0xba0] sm:$0xff] }
 0x402   : > { %7713 = vmatprep.subr.bf16.mxu0 %v10172_v4  ;;  %7877 = vmatprep.subr.bf16.mxu1 %v10174_v5  ;;  %v1140_v63 = vld [vmem:[%s12158_s22 + $0xbe0] sm:$0xff]  ;;  %v1133_v4 = vld [vmem:[%s12158_s22 + $0xba8] sm:$0xff] }
 0x403   : > { %v1141_v5 = vld [vmem:[%s12158_s22 + $0xbe8] sm:$0xff]  ;;  %v10284_v51 = vcombine.high %v1132_v62, %v1140_v63  ;;  %v10283_v15 = vcombine.low %v1132_v62, %v1140_v63 }
 0x404   : > { %7705 = vmatmul.mubr.bf16.vlgmr.msra.gmra.mrb[8].mxu0 %v12263_v39  ;;  %7869 = vmatmul.mubr.bf16.vlgmr.msra.gmra.mrb[8].mxu1 %v12263_v39  ;;  %v10286_v10 = vcombine.high %v1133_v4, %v1141_v5  ;;  %v10285_v17 = vcombine.low %v1133_v4, %v1141_v5 }
 0x405   : > { %7714 = vmatpush1.bf16.msra.mxu0 %v10171_v11  ;;  %7878 = vmatpush1.bf16.msra.mxu1 %v10173_v12  ;;  %v1148_v11 = vld [vmem:[%s12158_s22 + $0xc20] sm:$0xff] }
 0x406   : > { %7715 = vmatprep.subr.bf16.mxu0 %v10188_v13  ;;  %7879 = vmatprep.subr.bf16.mxu1 %v10190_v14  ;;  %v1156_v12 = vld [vmem:[%s12158_s22 + $0xc60] sm:$0xff]  ;;  %v1149_v13 = vld [vmem:[%s12158_s22 + $0xc28] sm:$0xff] }
 0x407   : > { %7745 = vmatprep.mubr.bf16.mxu0 %v12275_v50  ;;  %7909 = vmatprep.mubr.bf16.mxu1 %v12275_v50  ;;  %v1157_v14 = vld [vmem:[%s12158_s22 + $0xc68] sm:$0xff]  ;;  %v10300_v19 = vcombine.high %v1148_v11, %v1156_v12  ;;  %v10299_v26 = vcombine.low %v1148_v11, %v1156_v12 }
 0x408   : > { %v10302_v21 = vcombine.high %v1149_v13, %v1157_v14  ;;  %v10301_v27 = vcombine.low %v1149_v13, %v1157_v14 }
 0x409   : > { %7716 = vmatpush1.bf16.msra.mxu0 %v10187_v22  ;;  %7880 = vmatpush1.bf16.msra.mxu1 %v10189_v23  ;;  %v1164_v22 = vld [vmem:[%s12158_s22 + $0xca0] sm:$0xff] }
 0x40a   : > { %7717 = vmatprep.subr.bf16.mxu0 %v10204_v24  ;;  %7881 = vmatprep.subr.bf16.mxu1 %v10206_v25  ;;  %v1172_v23 = vld [vmem:[%s12158_s22 + $0xce0] sm:$0xff]  ;;  %v1165_v24 = vld [vmem:[%s12158_s22 + $0xca8] sm:$0xff] }
 0x40b   : > { %v1173_v25 = vld [vmem:[%s12158_s22 + $0xce8] sm:$0xff]  ;;  %v10316_v1 = vcombine.high %v1164_v22, %v1172_v23  ;;  %v10315_v33 = vcombine.low %v1164_v22, %v1172_v23 }
 0x40c   : > { %v10318_v28 = vcombine.high %v1165_v24, %v1173_v25  ;;  %v10317_v34 = vcombine.low %v1165_v24, %v1173_v25 }
 0x40d   : > { %7718 = vmatpush1.bf16.msra.mxu0 %v10203_v29  ;;  %7882 = vmatpush1.bf16.msra.mxu1 %v10205_v30  ;;  %v1180_v29 = vld [vmem:[%s12158_s22 + $0xd20] sm:$0xff] }
 0x40e   : > { %7719 = vmatprep.subr.bf16.mxu0 %v10220_v31  ;;  %7883 = vmatprep.subr.bf16.mxu1 %v10222_v32  ;;  %v1188_v30 = vld [vmem:[%s12158_s22 + $0xd60] sm:$0xff]  ;;  %v1181_v31 = vld [vmem:[%s12158_s22 + $0xd28] sm:$0xff] }
 0x40f   : > { %v1189_v32 = vld [vmem:[%s12158_s22 + $0xd68] sm:$0xff]  ;;  %v10332_v35 = vcombine.high %v1180_v29, %v1188_v30  ;;  %v10331_v43 = vcombine.low %v1180_v29, %v1188_v30 }
 0x410   : > { %v10334_v36 = vcombine.high %v1181_v31, %v1189_v32  ;;  %v10333_v44 = vcombine.low %v1181_v31, %v1189_v32 }
 0x411   : > { %7720 = vmatpush1.bf16.msra.mxu0 %v10219_v37  ;;  %7884 = vmatpush1.bf16.msra.mxu1 %v10221_v38  ;;  %v1196_v37 = vld [vmem:[%s12158_s22 + $0xda0] sm:$0xff] }
 0x412   : > { %7721 = vmatprep.subr.bf16.mxu0 %v10236_v40  ;;  %7885 = vmatprep.subr.bf16.mxu1 %v10238_v41  ;;  %v1204_v38 = vld [vmem:[%s12158_s22 + $0xde0] sm:$0xff]  ;;  %v1197_v40 = vld [vmem:[%s12158_s22 + $0xda8] sm:$0xff] }
 0x413   : > { %v1205_v41 = vld [vmem:[%s12158_s22 + $0xde8] sm:$0xff]  ;;  %v10348_v45 = vcombine.high %v1196_v37, %v1204_v38  ;;  %v10347_v53 = vcombine.low %v1196_v37, %v1204_v38 }
 0x414   : > { %v10350_v46 = vcombine.high %v1197_v40, %v1205_v41  ;;  %v10349_v54 = vcombine.low %v1197_v40, %v1205_v41 }
 0x415   : > { %7722 = vmatpush1.bf16.msra.mxu0 %v10235_v47  ;;  %7886 = vmatpush1.bf16.msra.mxu1 %v10237_v48  ;;  %v1212_v47 = vld [vmem:[%s12158_s22 + $0xe20] sm:$0xff] }
 0x416   : > { %7723 = vmatprep.subr.bf16.mxu0 %v10252_v49  ;;  %7887 = vmatprep.subr.bf16.mxu1 %v10254_v16  ;;  %v1220_v48 = vld [vmem:[%s12158_s22 + $0xe60] sm:$0xff]  ;;  %v1213_v49 = vld [vmem:[%s12158_s22 + $0xe28] sm:$0xff] }
 0x417   : > { %v1221_v16 = vld [vmem:[%s12158_s22 + $0xe68] sm:$0xff]  ;;  %v10364_v55 = vcombine.high %v1212_v47, %v1220_v48  ;;  %v10363_v62 = vcombine.low %v1212_v47, %v1220_v48 }
 0x418   : > { %v10366_v56 = vcombine.high %v1213_v49, %v1221_v16  ;;  %v10365_v63 = vcombine.low %v1213_v49, %v1221_v16 }
 0x419   : > { %7724 = vmatpush1.bf16.msra.mxu0 %v10251_v57  ;;  %7888 = vmatpush1.bf16.msra.mxu1 %v10253_v58  ;;  %v1228_v57 = vld [vmem:[%s12158_s22 + $0xea0] sm:$0xff] }
 0x41a   : > { %7725 = vmatprep.subr.bf16.mxu0 %v10268_v59  ;;  %7889 = vmatprep.subr.bf16.mxu1 %v10270_v61  ;;  %v1236_v58 = vld [vmem:[%s12158_s22 + $0xee0] sm:$0xff]  ;;  %v1229_v59 = vld [vmem:[%s12158_s22 + $0xea8] sm:$0xff] }
 0x41b   : > { %v1237_v61 = vld [vmem:[%s12158_s22 + $0xee8] sm:$0xff]  ;;  %v10380_v4 = vcombine.high %v1228_v57, %v1236_v58  ;;  %v10379_v11 = vcombine.low %v1228_v57, %v1236_v58 }
 0x41c   : > { %v10382_v5 = vcombine.high %v1229_v59, %v1237_v61  ;;  %v10381_v12 = vcombine.low %v1229_v59, %v1237_v61 }
 0x41d   : > { %7726 = vmatpush1.bf16.msra.mxu0 %v10267_v7  ;;  %7890 = vmatpush1.bf16.msra.mxu1 %v10269_v8  ;;  %v1244_v7 = vld [vmem:[%s12158_s22 + $0xf20] sm:$0xff] }
 0x41e   : > { %7727 = vmatprep.subr.bf16.mxu0 %v10284_v51  ;;  %7891 = vmatprep.subr.bf16.mxu1 %v10286_v10  ;;  %v1252_v8 = vld [vmem:[%s12158_s22 + $0xf60] sm:$0xff]  ;;  %v1245_v51 = vld [vmem:[%s12158_s22 + $0xf28] sm:$0xff] }
 0x41f   : > { %v1253_v10 = vld [vmem:[%s12158_s22 + $0xf68] sm:$0xff]  ;;  %v10396_v13 = vcombine.high %v1244_v7, %v1252_v8  ;;  %v10395_v22 = vcombine.low %v1244_v7, %v1252_v8 }
 0x420   : > { %v10398_v14 = vcombine.high %v1245_v51, %v1253_v10  ;;  %v10397_v23 = vcombine.low %v1245_v51, %v1253_v10 }
 0x421   : > { %7728 = vmatpush1.bf16.msra.mxu0 %v10283_v15  ;;  %7892 = vmatpush1.bf16.msra.mxu1 %v10285_v17  ;;  %v1260_v15 = vld [vmem:[%s12158_s22 + $0xfa0] sm:$0xff] }
 0x422   : > { %7729 = vmatprep.subr.bf16.mxu0 %v10300_v19  ;;  %7893 = vmatprep.subr.bf16.mxu1 %v10302_v21  ;;  %v1268_v17 = vld [vmem:[%s12158_s22 + $0xfe0] sm:$0xff]  ;;  %v1261_v19 = vld [vmem:[%s12158_s22 + $0xfa8] sm:$0xff] }
 0x423   : > { %v1269_v21 = vld [vmem:[%s12158_s22 + $0xfe8] sm:$0xff]  ;;  %v10412_v24 = vcombine.high %v1260_v15, %v1268_v17  ;;  %v10411_v29 = vcombine.low %v1260_v15, %v1268_v17 }
 0x424   : > { %v10414_v25 = vcombine.high %v1261_v19, %v1269_v21  ;;  %v10413_v30 = vcombine.low %v1261_v19, %v1269_v21 }
 0x425   : > { %7730 = vmatpush1.bf16.msra.mxu0 %v10299_v26  ;;  %7894 = vmatpush1.bf16.msra.mxu1 %v10301_v27  ;;  %v1276_v26 = vld [vmem:[%s12158_s22 + $0x1020] sm:$0xff] }
 0x426   : > { %7731 = vmatprep.subr.bf16.mxu0 %v10316_v1  ;;  %7895 = vmatprep.subr.bf16.mxu1 %v10318_v28  ;;  %v1284_v27 = vld [vmem:[%s12158_s22 + $0x1060] sm:$0xff]  ;;  %v1277_v1 = vld [vmem:[%s12158_s22 + $0x1028] sm:$0xff] }
 0x427   : > { %v1285_v28 = vld [vmem:[%s12158_s22 + $0x1068] sm:$0xff]  ;;  %v10428_v31 = vcombine.high %v1276_v26, %v1284_v27  ;;  %v10427_v37 = vcombine.low %v1276_v26, %v1284_v27 }
 0x428   : > { %v10430_v32 = vcombine.high %v1277_v1, %v1285_v28  ;;  %v10429_v38 = vcombine.low %v1277_v1, %v1285_v28 }
 0x429   : > { %7732 = vmatpush1.bf16.msra.mxu0 %v10315_v33  ;;  %7896 = vmatpush1.bf16.msra.mxu1 %v10317_v34  ;;  %v1292_v33 = vld [vmem:[%s12158_s22 + $0x10a0] sm:$0xff] }
 0x42a   : > { %7733 = vmatprep.subr.bf16.mxu0 %v10332_v35  ;;  %7897 = vmatprep.subr.bf16.mxu1 %v10334_v36  ;;  %v1300_v34 = vld [vmem:[%s12158_s22 + $0x10e0] sm:$0xff]  ;;  %v1293_v35 = vld [vmem:[%s12158_s22 + $0x10a8] sm:$0xff] }
 0x42b   : > { %v1301_v36 = vld [vmem:[%s12158_s22 + $0x10e8] sm:$0xff]  ;;  %v10444_v40 = vcombine.high %v1292_v33, %v1300_v34  ;;  %v10443_v47 = vcombine.low %v1292_v33, %v1300_v34 }
 0x42c   : > { %v10446_v41 = vcombine.high %v1293_v35, %v1301_v36  ;;  %v10445_v48 = vcombine.low %v1293_v35, %v1301_v36 }
 0x42d   : > { %7734 = vmatpush1.bf16.msra.mxu0 %v10331_v43  ;;  %7898 = vmatpush1.bf16.msra.mxu1 %v10333_v44  ;;  %v1308_v43 = vld [vmem:[%s12158_s22 + $0x1120] sm:$0xff] }
 0x42e   : > { %7735 = vmatprep.subr.bf16.mxu0 %v10348_v45  ;;  %7899 = vmatprep.subr.bf16.mxu1 %v10350_v46  ;;  %v1316_v44 = vld [vmem:[%s12158_s22 + $0x1160] sm:$0xff]  ;;  %v1309_v45 = vld [vmem:[%s12158_s22 + $0x1128] sm:$0xff] }
 0x42f   : > { %v1317_v46 = vld [vmem:[%s12158_s22 + $0x1168] sm:$0xff]  ;;  %v10460_v49 = vcombine.high %v1308_v43, %v1316_v44  ;;  %v10459_v57 = vcombine.low %v1308_v43, %v1316_v44 }
 0x430   : > { %v10462_v16 = vcombine.high %v1309_v45, %v1317_v46  ;;  %v10461_v58 = vcombine.low %v1309_v45, %v1317_v46 }
 0x431   : > { %7736 = vmatpush1.bf16.msra.mxu0 %v10347_v53  ;;  %7900 = vmatpush1.bf16.msra.mxu1 %v10349_v54  ;;  %v1324_v53 = vld [vmem:[%s12158_s22 + $0x11a0] sm:$0xff] }
 0x432   : > { %7737 = vmatprep.subr.bf16.mxu0 %v10364_v55  ;;  %7901 = vmatprep.subr.bf16.mxu1 %v10366_v56  ;;  %v1332_v54 = vld [vmem:[%s12158_s22 + $0x11e0] sm:$0xff]  ;;  %v1325_v55 = vld [vmem:[%s12158_s22 + $0x11a8] sm:$0xff] }
 0x433   : > { %v1333_v56 = vld [vmem:[%s12158_s22 + $0x11e8] sm:$0xff]  ;;  %v10476_v59 = vcombine.high %v1324_v53, %v1332_v54  ;;  %v10475_v7 = vcombine.low %v1324_v53, %v1332_v54 }
 0x434   : > { %v10478_v61 = vcombine.high %v1325_v55, %v1333_v56  ;;  %v10477_v8 = vcombine.low %v1325_v55, %v1333_v56 }
 0x435   : > { %7738 = vmatpush1.bf16.msra.mxu0 %v10363_v62  ;;  %7902 = vmatpush1.bf16.msra.mxu1 %v10365_v63  ;;  %v1340_v62 = vld [vmem:[%s12158_s22 + $0x1220] sm:$0xff] }
 0x436   : > { %7739 = vmatprep.subr.bf16.mxu0 %v10380_v4  ;;  %7903 = vmatprep.subr.bf16.mxu1 %v10382_v5  ;;  %v1348_v63 = vld [vmem:[%s12158_s22 + $0x1260] sm:$0xff]  ;;  %v1341_v4 = vld [vmem:[%s12158_s22 + $0x1228] sm:$0xff] }
 0x437   : > { %v1349_v5 = vld [vmem:[%s12158_s22 + $0x1268] sm:$0xff]  ;;  %v10492_v51 = vcombine.high %v1340_v62, %v1348_v63  ;;  %v10491_v15 = vcombine.low %v1340_v62, %v1348_v63 }
 0x438   : > { %v10494_v10 = vcombine.high %v1341_v4, %v1349_v5  ;;  %v10493_v17 = vcombine.low %v1341_v4, %v1349_v5 }
 0x439   : > { %7740 = vmatpush1.bf16.msra.mxu0 %v10379_v11  ;;  %7904 = vmatpush1.bf16.msra.mxu1 %v10381_v12  ;;  %v1356_v11 = vld [vmem:[%s12158_s22 + $0x12a0] sm:$0xff] }
 0x43a   : > { %7741 = vmatprep.subr.bf16.mxu0 %v10396_v13  ;;  %7905 = vmatprep.subr.bf16.mxu1 %v10398_v14  ;;  %v1364_v12 = vld [vmem:[%s12158_s22 + $0x12e0] sm:$0xff]  ;;  %v1357_v13 = vld [vmem:[%s12158_s22 + $0x12a8] sm:$0xff] }
 0x43b   : > { %v1365_v14 = vld [vmem:[%s12158_s22 + $0x12e8] sm:$0xff]  ;;  %v10508_v19 = vcombine.high %v1356_v11, %v1364_v12  ;;  %v10507_v26 = vcombine.low %v1356_v11, %v1364_v12 }
 0x43c   : > { %v10510_v21 = vcombine.high %v1357_v13, %v1365_v14  ;;  %v10509_v27 = vcombine.low %v1357_v13, %v1365_v14 }
 0x43d   : > { %7742 = vmatpush1.bf16.msra.mxu0 %v10395_v22  ;;  %7906 = vmatpush1.bf16.msra.mxu1 %v10397_v23  ;;  %v1372_v22 = vld [vmem:[%s12158_s22 + $0x1320] sm:$0xff] }
 0x43e   : > { %7743 = vmatprep.subr.bf16.mxu0 %v10412_v24  ;;  %7907 = vmatprep.subr.bf16.mxu1 %v10414_v25  ;;  %v1380_v23 = vld [vmem:[%s12158_s22 + $0x1360] sm:$0xff]  ;;  %v1373_v24 = vld [vmem:[%s12158_s22 + $0x1328] sm:$0xff] }
 0x43f   : > { %v1381_v25 = vld [vmem:[%s12158_s22 + $0x1368] sm:$0xff]  ;;  %v10524_v1 = vcombine.high %v1372_v22, %v1380_v23  ;;  %v10523_v33 = vcombine.low %v1372_v22, %v1380_v23 }
 0x440   : > { %v10526_v28 = vcombine.high %v1373_v24, %v1381_v25  ;;  %v10525_v34 = vcombine.low %v1373_v24, %v1381_v25 }
 0x441   : > { %7744 = vmatpush1.bf16.msra.mxu0 %v10411_v29  ;;  %7908 = vmatpush1.bf16.msra.mxu1 %v10413_v30  ;;  %v1388_v29 = vld [vmem:[%s12158_s22 + $0x13a0] sm:$0xff] }
 0x442   : > { %7754 = vmatprep.subr.bf16.mxu0 %v10428_v31  ;;  %7918 = vmatprep.subr.bf16.mxu1 %v10430_v32  ;;  %v1396_v30 = vld [vmem:[%s12158_s22 + $0x13e0] sm:$0xff]  ;;  %v1389_v31 = vld [vmem:[%s12158_s22 + $0x13a8] sm:$0xff] }
 0x443   : > { %v1397_v32 = vld [vmem:[%s12158_s22 + $0x13e8] sm:$0xff]  ;;  %v10540_v35 = vcombine.high %v1388_v29, %v1396_v30  ;;  %v10539_v43 = vcombine.low %v1388_v29, %v1396_v30 }
 0x444   : > { %7746 = vmatmul.mubr.bf16.vlgmr.msra.gmra.mrb[8].mxu0 %v12345_v52  ;;  %7910 = vmatmul.mubr.bf16.vlgmr.msra.gmra.mrb[8].mxu1 %v12345_v52  ;;  %v10542_v36 = vcombine.high %v1389_v31, %v1397_v32  ;;  %v10541_v44 = vcombine.low %v1389_v31, %v1397_v32 }
 0x445   : > { %7755 = vmatpush1.bf16.msra.mxu0 %v10427_v37  ;;  %7919 = vmatpush1.bf16.msra.mxu1 %v10429_v38  ;;  %v1404_v37 = vld [vmem:[%s12158_s22 + $0x1420] sm:$0xff] }
 0x446   : > { %7756 = vmatprep.subr.bf16.mxu0 %v10444_v40  ;;  %7920 = vmatprep.subr.bf16.mxu1 %v10446_v41  ;;  %v1412_v38 = vld [vmem:[%s12158_s22 + $0x1460] sm:$0xff]  ;;  %v1405_v40 = vld [vmem:[%s12158_s22 + $0x1428] sm:$0xff] }
 0x447   : > { %7786 = vmatprep.mubr.bf16.mxu0 %v12353_v42  ;;  %7950 = vmatprep.mubr.bf16.mxu1 %v12353_v42  ;;  %v1413_v41 = vld [vmem:[%s12158_s22 + $0x1468] sm:$0xff]  ;;  %v10556_v45 = vcombine.high %v1404_v37, %v1412_v38  ;;  %v10555_v53 = vcombine.low %v1404_v37, %v1412_v38 }
 0x448   : > { %v10558_v46 = vcombine.high %v1405_v40, %v1413_v41  ;;  %v10557_v54 = vcombine.low %v1405_v40, %v1413_v41 }
 0x449   : > { %7757 = vmatpush1.bf16.msra.mxu0 %v10443_v47  ;;  %7921 = vmatpush1.bf16.msra.mxu1 %v10445_v48  ;;  %v1420_v47 = vld [vmem:[%s12158_s22 + $0x14a0] sm:$0xff] }
 0x44a   : > { %7758 = vmatprep.subr.bf16.mxu0 %v10460_v49  ;;  %7922 = vmatprep.subr.bf16.mxu1 %v10462_v16  ;;  %v1428_v48 = vld [vmem:[%s12158_s22 + $0x14e0] sm:$0xff]  ;;  %v1421_v49 = vld [vmem:[%s12158_s22 + $0x14a8] sm:$0xff] }
 0x44b   : > { %v1429_v16 = vld [vmem:[%s12158_s22 + $0x14e8] sm:$0xff]  ;;  %v10572_v55 = vcombine.high %v1420_v47, %v1428_v48  ;;  %v10571_v62 = vcombine.low %v1420_v47, %v1428_v48 }
 0x44c   : > { %v10574_v56 = vcombine.high %v1421_v49, %v1429_v16  ;;  %v10573_v63 = vcombine.low %v1421_v49, %v1429_v16 }
 0x44d   : > { %7759 = vmatpush1.bf16.msra.mxu0 %v10459_v57  ;;  %7923 = vmatpush1.bf16.msra.mxu1 %v10461_v58  ;;  %v1436_v57 = vld [vmem:[%s12158_s22 + $0x1520] sm:$0xff] }
 0x44e   : > { %7760 = vmatprep.subr.bf16.mxu0 %v10476_v59  ;;  %7924 = vmatprep.subr.bf16.mxu1 %v10478_v61  ;;  %v1444_v58 = vld [vmem:[%s12158_s22 + $0x1560] sm:$0xff]  ;;  %v1437_v59 = vld [vmem:[%s12158_s22 + $0x1528] sm:$0xff] }
 0x44f   : > { %v1445_v61 = vld [vmem:[%s12158_s22 + $0x1568] sm:$0xff]  ;;  %v10588_v4 = vcombine.high %v1436_v57, %v1444_v58  ;;  %v10587_v11 = vcombine.low %v1436_v57, %v1444_v58 }
 0x450   : > { %v10590_v5 = vcombine.high %v1437_v59, %v1445_v61  ;;  %v10589_v12 = vcombine.low %v1437_v59, %v1445_v61 }
 0x451   : > { %7761 = vmatpush1.bf16.msra.mxu0 %v10475_v7  ;;  %7925 = vmatpush1.bf16.msra.mxu1 %v10477_v8  ;;  %v1452_v7 = vld [vmem:[%s12158_s22 + $0x15a0] sm:$0xff] }
 0x452   : > { %7762 = vmatprep.subr.bf16.mxu0 %v10492_v51  ;;  %7926 = vmatprep.subr.bf16.mxu1 %v10494_v10  ;;  %v1460_v8 = vld [vmem:[%s12158_s22 + $0x15e0] sm:$0xff]  ;;  %v1453_v51 = vld [vmem:[%s12158_s22 + $0x15a8] sm:$0xff] }
 0x453   : > { %v1461_v10 = vld [vmem:[%s12158_s22 + $0x15e8] sm:$0xff]  ;;  %v10604_v13 = vcombine.high %v1452_v7, %v1460_v8  ;;  %v10603_v22 = vcombine.low %v1452_v7, %v1460_v8 }
 0x454   : > { %v10606_v14 = vcombine.high %v1453_v51, %v1461_v10  ;;  %v10605_v23 = vcombine.low %v1453_v51, %v1461_v10 }
 0x455   : > { %7763 = vmatpush1.bf16.msra.mxu0 %v10491_v15  ;;  %7927 = vmatpush1.bf16.msra.mxu1 %v10493_v17  ;;  %v1468_v15 = vld [vmem:[%s12158_s22 + $0x1620] sm:$0xff] }
 0x456   : > { %7764 = vmatprep.subr.bf16.mxu0 %v10508_v19  ;;  %7928 = vmatprep.subr.bf16.mxu1 %v10510_v21  ;;  %v1476_v17 = vld [vmem:[%s12158_s22 + $0x1660] sm:$0xff]  ;;  %v1469_v19 = vld [vmem:[%s12158_s22 + $0x1628] sm:$0xff] }
 0x457   : > { %v1477_v21 = vld [vmem:[%s12158_s22 + $0x1668] sm:$0xff]  ;;  %v10620_v24 = vcombine.high %v1468_v15, %v1476_v17  ;;  %v10619_v29 = vcombine.low %v1468_v15, %v1476_v17 }
 0x458   : > { %v10622_v25 = vcombine.high %v1469_v19, %v1477_v21  ;;  %v10621_v30 = vcombine.low %v1469_v19, %v1477_v21 }
 0x459   : > { %7765 = vmatpush1.bf16.msra.mxu0 %v10507_v26  ;;  %7929 = vmatpush1.bf16.msra.mxu1 %v10509_v27  ;;  %v1484_v26 = vld [vmem:[%s12158_s22 + $0x16a0] sm:$0xff] }
 0x45a   : > { %7766 = vmatprep.subr.bf16.mxu0 %v10524_v1  ;;  %7930 = vmatprep.subr.bf16.mxu1 %v10526_v28  ;;  %v1492_v27 = vld [vmem:[%s12158_s22 + $0x16e0] sm:$0xff]  ;;  %v1485_v1 = vld [vmem:[%s12158_s22 + $0x16a8] sm:$0xff] }
 0x45b   : > { %v1493_v28 = vld [vmem:[%s12158_s22 + $0x16e8] sm:$0xff]  ;;  %v10636_v31 = vcombine.high %v1484_v26, %v1492_v27  ;;  %v10635_v37 = vcombine.low %v1484_v26, %v1492_v27 }
 0x45c   : > { %v10638_v32 = vcombine.high %v1485_v1, %v1493_v28  ;;  %v10637_v38 = vcombine.low %v1485_v1, %v1493_v28 }
 0x45d   : > { %7767 = vmatpush1.bf16.msra.mxu0 %v10523_v33  ;;  %7931 = vmatpush1.bf16.msra.mxu1 %v10525_v34  ;;  %v1500_v33 = vld [vmem:[%s12158_s22 + $0x1720] sm:$0xff] }
 0x45e   : > { %7768 = vmatprep.subr.bf16.mxu0 %v10540_v35  ;;  %7932 = vmatprep.subr.bf16.mxu1 %v10542_v36  ;;  %v1508_v34 = vld [vmem:[%s12158_s22 + $0x1760] sm:$0xff]  ;;  %v1501_v35 = vld [vmem:[%s12158_s22 + $0x1728] sm:$0xff] }
 0x45f   : > { %v1509_v36 = vld [vmem:[%s12158_s22 + $0x1768] sm:$0xff]  ;;  %v10652_v40 = vcombine.high %v1500_v33, %v1508_v34  ;;  %v10651_v47 = vcombine.low %v1500_v33, %v1508_v34 }
 0x460   : > { %v10654_v41 = vcombine.high %v1501_v35, %v1509_v36  ;;  %v10653_v48 = vcombine.low %v1501_v35, %v1509_v36 }
 0x461   : > { %7769 = vmatpush1.bf16.msra.mxu0 %v10539_v43  ;;  %7933 = vmatpush1.bf16.msra.mxu1 %v10541_v44  ;;  %v1516_v43 = vld [vmem:[%s12158_s22 + $0x17a0] sm:$0xff] }
 0x462   : > { %7770 = vmatprep.subr.bf16.mxu0 %v10556_v45  ;;  %7934 = vmatprep.subr.bf16.mxu1 %v10558_v46  ;;  %v1524_v44 = vld [vmem:[%s12158_s22 + $0x17e0] sm:$0xff]  ;;  %v1517_v45 = vld [vmem:[%s12158_s22 + $0x17a8] sm:$0xff] }
 0x463   : > { %v1525_v46 = vld [vmem:[%s12158_s22 + $0x17e8] sm:$0xff]  ;;  %v10668_v49 = vcombine.high %v1516_v43, %v1524_v44  ;;  %v10667_v57 = vcombine.low %v1516_v43, %v1524_v44 }
 0x464   : > { %v10670_v16 = vcombine.high %v1517_v45, %v1525_v46  ;;  %v10669_v58 = vcombine.low %v1517_v45, %v1525_v46 }
 0x465   : > { %7771 = vmatpush1.bf16.msra.mxu0 %v10555_v53  ;;  %7935 = vmatpush1.bf16.msra.mxu1 %v10557_v54  ;;  %v1532_v53 = vld [vmem:[%s12158_s22 + $0x1820] sm:$0xff] }
 0x466   : > { %7772 = vmatprep.subr.bf16.mxu0 %v10572_v55  ;;  %7936 = vmatprep.subr.bf16.mxu1 %v10574_v56  ;;  %v1540_v54 = vld [vmem:[%s12158_s22 + $0x1860] sm:$0xff]  ;;  %v1533_v55 = vld [vmem:[%s12158_s22 + $0x1828] sm:$0xff] }
 0x467   : > { %v1541_v56 = vld [vmem:[%s12158_s22 + $0x1868] sm:$0xff]  ;;  %v10684_v59 = vcombine.high %v1532_v53, %v1540_v54  ;;  %v10683_v7 = vcombine.low %v1532_v53, %v1540_v54 }
 0x468   : > { %v10686_v61 = vcombine.high %v1533_v55, %v1541_v56  ;;  %v10685_v8 = vcombine.low %v1533_v55, %v1541_v56 }
 0x469   : > { %7773 = vmatpush1.bf16.msra.mxu0 %v10571_v62  ;;  %7937 = vmatpush1.bf16.msra.mxu1 %v10573_v63  ;;  %v1548_v62 = vld [vmem:[%s12158_s22 + $0x18a0] sm:$0xff] }
 0x46a   : > { %7774 = vmatprep.subr.bf16.mxu0 %v10588_v4  ;;  %7938 = vmatprep.subr.bf16.mxu1 %v10590_v5  ;;  %v1556_v63 = vld [vmem:[%s12158_s22 + $0x18e0] sm:$0xff]  ;;  %v1549_v4 = vld [vmem:[%s12158_s22 + $0x18a8] sm:$0xff] }
 0x46b   : > { %v1557_v5 = vld [vmem:[%s12158_s22 + $0x18e8] sm:$0xff]  ;;  %v10700_v51 = vcombine.high %v1548_v62, %v1556_v63  ;;  %v10699_v15 = vcombine.low %v1548_v62, %v1556_v63 }
 0x46c   : > { %v10702_v10 = vcombine.high %v1549_v4, %v1557_v5  ;;  %v10701_v17 = vcombine.low %v1549_v4, %v1557_v5  ;;  %v1645_v63 = vld [vmem:[%s12158_s22 + $0x1ba8] sm:$0xff] }
 0x46d   : > { %7775 = vmatpush1.bf16.msra.mxu0 %v10587_v11  ;;  %7939 = vmatpush1.bf16.msra.mxu1 %v10589_v12  ;;  %v1564_v11 = vld [vmem:[%s12158_s22 + $0x1920] sm:$0xff]  ;;  %v1653_v4 = vld [vmem:[%s12158_s22 + $0x1be8] sm:$0xff] }
 0x46e   : > { %7776 = vmatprep.subr.bf16.mxu0 %v10604_v13  ;;  %7940 = vmatprep.subr.bf16.mxu1 %v10606_v14  ;;  %v1572_v12 = vld [vmem:[%s12158_s22 + $0x1960] sm:$0xff]  ;;  %v1565_v13 = vld [vmem:[%s12158_s22 + $0x1928] sm:$0xff] }
 0x46f   : > { %v1573_v14 = vld [vmem:[%s12158_s22 + $0x1968] sm:$0xff]  ;;  %v10716_v19 = vcombine.high %v1564_v11, %v1572_v12  ;;  %v10715_v26 = vcombine.low %v1564_v11, %v1572_v12 }
 0x470   : > { %v10718_v21 = vcombine.high %v1565_v13, %v1573_v14  ;;  %v10717_v27 = vcombine.low %v1565_v13, %v1573_v14  ;;  %v10798_v14 = vcombine.high %v1645_v63, %v1653_v4 }
 0x471   : > { %7777 = vmatpush1.bf16.msra.mxu0 %v10603_v22  ;;  %7941 = vmatpush1.bf16.msra.mxu1 %v10605_v23  ;;  %v1580_v22 = vld [vmem:[%s12158_s22 + $0x19a0] sm:$0xff] }
 0x472   : > { %7778 = vmatprep.subr.bf16.mxu0 %v10620_v24  ;;  %7942 = vmatprep.subr.bf16.mxu1 %v10622_v25  ;;  %v1588_v23 = vld [vmem:[%s12158_s22 + $0x19e0] sm:$0xff]  ;;  %v1581_v24 = vld [vmem:[%s12158_s22 + $0x19a8] sm:$0xff] }
 0x473   : > { %v1589_v25 = vld [vmem:[%s12158_s22 + $0x19e8] sm:$0xff]  ;;  %v10732_v1 = vcombine.high %v1580_v22, %v1588_v23  ;;  %v10731_v33 = vcombine.low %v1580_v22, %v1588_v23  ;;  %v10797_v23 = vcombine.low %v1645_v63, %v1653_v4 }
 0x474   : > { %v10734_v28 = vcombine.high %v1581_v24, %v1589_v25  ;;  %v10733_v34 = vcombine.low %v1581_v24, %v1589_v25 }
 0x475   : > { %7779 = vmatpush1.bf16.msra.mxu0 %v10619_v29  ;;  %7943 = vmatpush1.bf16.msra.mxu1 %v10621_v30  ;;  %v1596_v29 = vld [vmem:[%s12158_s22 + $0x1a20] sm:$0xff] }
 0x476   : > { %7780 = vmatprep.subr.bf16.mxu0 %v10636_v31  ;;  %7944 = vmatprep.subr.bf16.mxu1 %v10638_v32  ;;  %v1604_v30 = vld [vmem:[%s12158_s22 + $0x1a60] sm:$0xff]  ;;  %v1597_v31 = vld [vmem:[%s12158_s22 + $0x1a28] sm:$0xff] }
 0x477   : > { %v1605_v32 = vld [vmem:[%s12158_s22 + $0x1a68] sm:$0xff]  ;;  %v10748_v35 = vcombine.high %v1596_v29, %v1604_v30  ;;  %v10747_v43 = vcombine.low %v1596_v29, %v1604_v30 }
 0x478   : > { %v10750_v36 = vcombine.high %v1597_v31, %v1605_v32  ;;  %v10749_v44 = vcombine.low %v1597_v31, %v1605_v32 }
 0x479   : > { %7781 = vmatpush1.bf16.msra.mxu0 %v10635_v37  ;;  %7945 = vmatpush1.bf16.msra.mxu1 %v10637_v38  ;;  %v1612_v37 = vld [vmem:[%s12158_s22 + $0x1aa0] sm:$0xff] }
 0x47a   : > { %7782 = vmatprep.subr.bf16.mxu0 %v10652_v40  ;;  %7946 = vmatprep.subr.bf16.mxu1 %v10654_v41  ;;  %v1620_v38 = vld [vmem:[%s12158_s22 + $0x1ae0] sm:$0xff]  ;;  %v1613_v40 = vld [vmem:[%s12158_s22 + $0x1aa8] sm:$0xff] }
 0x47b   : > { %v1621_v41 = vld [vmem:[%s12158_s22 + $0x1ae8] sm:$0xff]  ;;  %v10764_v45 = vcombine.high %v1612_v37, %v1620_v38  ;;  %v10763_v53 = vcombine.low %v1612_v37, %v1620_v38 }
 0x47c   : > { %v10766_v46 = vcombine.high %v1613_v40, %v1621_v41  ;;  %v10765_v54 = vcombine.low %v1613_v40, %v1621_v41 }
 0x47d   : > { %7783 = vmatpush1.bf16.msra.mxu0 %v10651_v47  ;;  %7947 = vmatpush1.bf16.msra.mxu1 %v10653_v48  ;;  %v1628_v47 = vld [vmem:[%s12158_s22 + $0x1b20] sm:$0xff] }
 0x47e   : > { %7784 = vmatprep.subr.bf16.mxu0 %v10668_v49  ;;  %7948 = vmatprep.subr.bf16.mxu1 %v10670_v16  ;;  %v1636_v48 = vld [vmem:[%s12158_s22 + $0x1b60] sm:$0xff]  ;;  %v1629_v49 = vld [vmem:[%s12158_s22 + $0x1b28] sm:$0xff] }
 0x47f   : > { %v1637_v16 = vld [vmem:[%s12158_s22 + $0x1b68] sm:$0xff]  ;;  %v10780_v55 = vcombine.high %v1628_v47, %v1636_v48 }
 0x480   : > { %v10781_v11 = vcombine.low %v1629_v49, %v1637_v16 }
 0x481   : > { %7785 = vmatpush1.bf16.msra.mxu0 %v10667_v57  ;;  %7949 = vmatpush1.bf16.msra.mxu1 %v10669_v58  ;;  %v10782_v57 = vcombine.high %v1629_v49, %v1637_v16  ;;  %v1644_v58 = vld [vmem:[%s12158_s22 + $0x1ba0] sm:$0xff] }
 0x482   : > { %7795 = vmatprep.subr.bf16.mxu0 %v10684_v59  ;;  %7959 = vmatprep.subr.bf16.mxu1 %v10686_v61  ;;  %v1652_v59 = vld [vmem:[%s12158_s22 + $0x1be0] sm:$0xff] }
 0x483   : > { %v10796_v12 = vcombine.high %v1644_v58, %v1652_v59  ;;  %v10795_v22 = vcombine.low %v1644_v58, %v1652_v59 }
 0x484   : > { %7787 = vmatmul.mubr.bf16.vlgmr.msra.gmra.mrb[8].mxu0 %v12423_v2  ;;  %7951 = vmatmul.mubr.bf16.vlgmr.msra.gmra.mrb[8].mxu1 %v12423_v2 }
 0x485   : > { %7796 = vmatpush1.bf16.msra.mxu0 %v10683_v7  ;;  %7960 = vmatpush1.bf16.msra.mxu1 %v10685_v8  ;;  %v10779_v8 = vcombine.low %v1628_v47, %v1636_v48 }
 0x486   : > { %7797 = vmatprep.subr.bf16.mxu0 %v10700_v51  ;;  %7961 = vmatprep.subr.bf16.mxu1 %v10702_v10 }
 0x487   : > { %7827 = vmatprep.mubr.bf16.mxu0 %v12429_v9  ;;  %7991 = vmatprep.mubr.bf16.mxu1 %v12429_v9 }
 0x489   : > { %7798 = vmatpush1.bf16.msra.mxu0 %v10699_v15  ;;  %7962 = vmatpush1.bf16.msra.mxu1 %v10701_v17  ;;  %v1660_v15 = vld [vmem:[%s12158_s22 + $0x1c20] sm:$0xff] }
 0x48a   : > { %7799 = vmatprep.subr.bf16.mxu0 %v10716_v19  ;;  %7963 = vmatprep.subr.bf16.mxu1 %v10718_v21  ;;  %v1668_v17 = vld [vmem:[%s12158_s22 + $0x1c60] sm:$0xff]  ;;  %v1661_v19 = vld [vmem:[%s12158_s22 + $0x1c28] sm:$0xff] }
 0x48b   : > { %v1669_v21 = vld [vmem:[%s12158_s22 + $0x1c68] sm:$0xff]  ;;  %v10812_v24 = vcombine.high %v1660_v15, %v1668_v17  ;;  %v10811_v29 = vcombine.low %v1660_v15, %v1668_v17  ;;  %v1756_v15 = vld [vmem:[%s12158_s22 + $0x1f20] sm:$0xff] }
 0x48c   : > { %v10814_v25 = vcombine.high %v1661_v19, %v1669_v21  ;;  %v10813_v30 = vcombine.low %v1661_v19, %v1669_v21  ;;  %v1764_v17 = vld [vmem:[%s12158_s22 + $0x1f60] sm:$0xff]  ;;  %v1757_v19 = vld [vmem:[%s12158_s22 + $0x1f28] sm:$0xff] }
 0x48d   : > { %7800 = vmatpush1.bf16.msra.mxu0 %v10715_v26  ;;  %7964 = vmatpush1.bf16.msra.mxu1 %v10717_v27  ;;  %v1676_v26 = vld [vmem:[%s12158_s22 + $0x1ca0] sm:$0xff]  ;;  %v1765_v21 = vld [vmem:[%s12158_s22 + $0x1f68] sm:$0xff] }
 0x48e   : > { %7801 = vmatprep.subr.bf16.mxu0 %v10732_v1  ;;  %7965 = vmatprep.subr.bf16.mxu1 %v10734_v28  ;;  %v1684_v27 = vld [vmem:[%s12158_s22 + $0x1ce0] sm:$0xff]  ;;  %v1677_v1 = vld [vmem:[%s12158_s22 + $0x1ca8] sm:$0xff] }
 0x48f   : > { %v1685_v28 = vld [vmem:[%s12158_s22 + $0x1ce8] sm:$0xff]  ;;  %v10828_v31 = vcombine.high %v1676_v26, %v1684_v27  ;;  %v10827_v37 = vcombine.low %v1676_v26, %v1684_v27  ;;  %v1772_v26 = vld [vmem:[%s12158_s22 + $0x1fa0] sm:$0xff] }
 0x490   : > { %v10830_v32 = vcombine.high %v1677_v1, %v1685_v28  ;;  %v10829_v38 = vcombine.low %v1677_v1, %v1685_v28  ;;  %v1780_v27 = vld [vmem:[%s12158_s22 + $0x1fe0] sm:$0xff]  ;;  %v1773_v1 = vld [vmem:[%s12158_s22 + $0x1fa8] sm:$0xff] }
 0x491   : > { %7802 = vmatpush1.bf16.msra.mxu0 %v10731_v33  ;;  %7966 = vmatpush1.bf16.msra.mxu1 %v10733_v34  ;;  %v1692_v33 = vld [vmem:[%s12158_s22 + $0x1d20] sm:$0xff]  ;;  %v1781_v28 = vld [vmem:[%s12158_s22 + $0x1fe8] sm:$0xff] }
 0x492   : > { %7803 = vmatprep.subr.bf16.mxu0 %v10748_v35  ;;  %7967 = vmatprep.subr.bf16.mxu1 %v10750_v36  ;;  %v1700_v34 = vld [vmem:[%s12158_s22 + $0x1d60] sm:$0xff]  ;;  %v1693_v35 = vld [vmem:[%s12158_s22 + $0x1d28] sm:$0xff] }
 0x493   : > { %v1701_v36 = vld [vmem:[%s12158_s22 + $0x1d68] sm:$0xff]  ;;  %v10844_v40 = vcombine.high %v1692_v33, %v1700_v34  ;;  %v10843_v47 = vcombine.low %v1692_v33, %v1700_v34  ;;  %v766_v33 = vld [vmem:[%s12158_s22 + $0x30] sm:$0xff] }
 0x494   : > { %v10846_v41 = vcombine.high %v1693_v35, %v1701_v36  ;;  %v10845_v48 = vcombine.low %v1693_v35, %v1701_v36  ;;  %v774_v34 = vld [vmem:[%s12158_s22 + $0x70] sm:$0xff]  ;;  %v767_v35 = vld [vmem:[%s12158_s22 + $0x38] sm:$0xff] }
 0x495   : > { %7804 = vmatpush1.bf16.msra.mxu0 %v10747_v43  ;;  %7968 = vmatpush1.bf16.msra.mxu1 %v10749_v44  ;;  %v1708_v43 = vld [vmem:[%s12158_s22 + $0x1da0] sm:$0xff]  ;;  %v775_v36 = vld [vmem:[%s12158_s22 + $0x78] sm:$0xff] }
 0x496   : > { %7805 = vmatprep.subr.bf16.mxu0 %v10764_v45  ;;  %7969 = vmatprep.subr.bf16.mxu1 %v10766_v46  ;;  %v1716_v44 = vld [vmem:[%s12158_s22 + $0x1de0] sm:$0xff]  ;;  %v1709_v45 = vld [vmem:[%s12158_s22 + $0x1da8] sm:$0xff] }
 0x497   : > { %v13009_v56 = vpop.f32.mrb[4].mxu0  ;;  %v13013_v61 = vpop.f32.mrb[4].mxu1  ;;  %v1717_v46 = vld [vmem:[%s12158_s22 + $0x1de8] sm:$0xff]  ;;  %v10860_v49 = vcombine.high %v1708_v43, %v1716_v44  ;;  %v10859_v58 = vcombine.low %v1708_v43, %v1716_v44  ;;  %v782_v43 = vld [vmem:[%s12158_s22 + $0xb0] sm:$0xff] }
 0x498   : > { %v13015_v62 = vpop.f32.mrb[5].mxu0  ;;  %v13019_v5 = vpop.f32.mrb[5].mxu1  ;;  %v10862_v16 = vcombine.high %v1709_v45, %v1717_v46  ;;  %v10861_v59 = vcombine.low %v1709_v45, %v1717_v46  ;;  %v790_v44 = vld [vmem:[%s12158_s22 + $0xf0] sm:$0xff]  ;;  %v783_v45 = vld [vmem:[%s12158_s22 + $0xb8] sm:$0xff] }
 0x499   : > { %v7505_v7 = vpop.f32.mrb[6].mxu0  ;;  %7806 = vmatpush1.bf16.msra.mxu0 %v10763_v53  ;;  %v7669_v51 = vpop.f32.mrb[6].mxu1  ;;  %7970 = vmatpush1.bf16.msra.mxu1 %v10765_v54  ;;  %v1724_v53 = vld [vmem:[%s12158_s22 + $0x1e20] sm:$0xff]  ;;  %v791_v46 = vld [vmem:[%s12158_s22 + $0xf8] sm:$0xff] }
 0x49a   : > { %v7506_v10 = vpop.f32.mrb[7].mxu0  ;;  %7807 = vmatprep.subr.bf16.mxu0 %v10780_v55  ;;  %v7670_v13 = vpop.f32.mrb[7].mxu1  ;;  %7971 = vmatprep.subr.bf16.mxu1 %v10782_v57  ;;  %v1732_v54 = vld [vmem:[%s12158_s22 + $0x1e60] sm:$0xff]  ;;  %v1725_v55 = vld [vmem:[%s12158_s22 + $0x1e28] sm:$0xff] }
 0x49b   : > { %v1733_v57 = vld [vmem:[%s12158_s22 + $0x1e68] sm:$0xff]  ;;  %v10876_v63 = vcombine.high %v1724_v53, %v1732_v54  ;;  %v1740_v7 = vld [vmem:[%s12158_s22 + $0x1ea0] sm:$0xff] }
 0x49c   : > { %v10878_v4 = vcombine.high %v1725_v55, %v1733_v57  ;;  %v1741_v51 = vld [vmem:[%s12158_s22 + $0x1ea8] sm:$0xff] }
 0x49d   : > { %7808 = vmatpush1.bf16.msra.mxu0 %v10779_v8  ;;  %7972 = vmatpush1.bf16.msra.mxu1 %v10781_v11  ;;  %v1748_v8 = vld [vmem:[%s12158_s22 + $0x1ee0] sm:$0xff]  ;;  %v1749_v10 = vld [vmem:[%s12158_s22 + $0x1ee8] sm:$0xff]  ;;  %v10875_v11 = vcombine.low %v1724_v53, %v1732_v54  ;;  %v798_v53 = vld [vmem:[%s12158_s22 + $0x130] sm:$0xff] }
 0x49e   : > { %7809 = vmatprep.subr.bf16.mxu0 %v10796_v12  ;;  %7973 = vmatprep.subr.bf16.mxu1 %v10798_v14  ;;  %v10877_v12 = vcombine.low %v1725_v55, %v1733_v57  ;;  %v10892_v13 = vcombine.high %v1740_v7, %v1748_v8  ;;  %v10894_v14 = vcombine.high %v1741_v51, %v1749_v10  ;;  %v806_v54 = vld [vmem:[%s12158_s22 + $0x170] sm:$0xff]  ;;  %v799_v55 = vld [vmem:[%s12158_s22 + $0x138] sm:$0xff] }
 0x49f   : > { %v807_v57 = vld [vmem:[%s12158_s22 + $0x178] sm:$0xff] }
 0x4a1   : > { %7810 = vmatpush1.bf16.msra.mxu0 %v10795_v22  ;;  %7974 = vmatpush1.bf16.msra.mxu1 %v10797_v23  ;;  %v10891_v22 = vcombine.low %v1740_v7, %v1748_v8  ;;  %v10893_v23 = vcombine.low %v1741_v51, %v1749_v10  ;;  %v814_v7 = vld [vmem:[%s12158_s22 + $0x1b0] sm:$0xff]  ;;  %v815_v51 = vld [vmem:[%s12158_s22 + $0x1b8] sm:$0xff] }
 0x4a2   : > { %7811 = vmatprep.subr.bf16.mxu0 %v10812_v24  ;;  %7975 = vmatprep.subr.bf16.mxu1 %v10814_v25  ;;  %v10908_v24 = vcombine.high %v1756_v15, %v1764_v17  ;;  %v10910_v25 = vcombine.high %v1757_v19, %v1765_v21  ;;  %v822_v8 = vld [vmem:[%s12158_s22 + $0x1f0] sm:$0xff]  ;;  %v823_v10 = vld [vmem:[%s12158_s22 + $0x1f8] sm:$0xff] }
 0x4a5   : > { %7812 = vmatpush1.bf16.msra.mxu0 %v10811_v29  ;;  %7976 = vmatpush1.bf16.msra.mxu1 %v10813_v30  ;;  %v10907_v29 = vcombine.low %v1756_v15, %v1764_v17  ;;  %v10909_v30 = vcombine.low %v1757_v19, %v1765_v21  ;;  %v830_v15 = vld [vmem:[%s12158_s22 + $0x230] sm:$0xff]  ;;  %v831_v19 = vld [vmem:[%s12158_s22 + $0x238] sm:$0xff] }
 0x4a6   : > { %7813 = vmatprep.subr.bf16.mxu0 %v10828_v31  ;;  %7977 = vmatprep.subr.bf16.mxu1 %v10830_v32  ;;  %v10924_v31 = vcombine.high %v1772_v26, %v1780_v27  ;;  %v10926_v32 = vcombine.high %v1773_v1, %v1781_v28  ;;  %v838_v17 = vld [vmem:[%s12158_s22 + $0x270] sm:$0xff]  ;;  %v839_v21 = vld [vmem:[%s12158_s22 + $0x278] sm:$0xff] }
 0x4a9   : > { %7814 = vmatpush1.bf16.msra.mxu0 %v10827_v37  ;;  %7978 = vmatpush1.bf16.msra.mxu1 %v10829_v38  ;;  %v10923_v37 = vcombine.low %v1772_v26, %v1780_v27  ;;  %v10925_v38 = vcombine.low %v1773_v1, %v1781_v28  ;;  %v854_v26 = vld [vmem:[%s12158_s22 + $0x2f0] sm:$0xff]  ;;  %v847_v27 = vld [vmem:[%s12158_s22 + $0x2b8] sm:$0xff]  ;;  %v9983_v28 = vcombine.low %v830_v15, %v838_v17 }
 0x4aa   : > { %7815 = vmatprep.subr.bf16.mxu0 %v10844_v40  ;;  %7979 = vmatprep.subr.bf16.mxu1 %v10846_v41  ;;  %v9920_v40 = vcombine.high %v766_v33, %v774_v34  ;;  %v9922_v41 = vcombine.high %v767_v35, %v775_v36  ;;  %v855_v1 = vld [vmem:[%s12158_s22 + $0x2f8] sm:$0xff] }
 0x4ad   : > { %7816 = vmatpush1.bf16.msra.mxu0 %v10843_v47  ;;  %7980 = vmatpush1.bf16.msra.mxu1 %v10845_v48  ;;  %v9919_v47 = vcombine.low %v766_v33, %v774_v34  ;;  %v9921_v48 = vcombine.low %v767_v35, %v775_v36  ;;  %v870_v33 = vld [vmem:[%s12158_s22 + $0x370] sm:$0xff]  ;;  %v863_v34 = vld [vmem:[%s12158_s22 + $0x338] sm:$0xff] }
 0x4ae   : > { %7817 = vmatprep.subr.bf16.mxu0 %v10860_v49  ;;  %7981 = vmatprep.subr.bf16.mxu1 %v10862_v16  ;;  %v9936_v49 = vcombine.high %v782_v43, %v790_v44  ;;  %v9938_v16 = vcombine.high %v783_v45, %v791_v46  ;;  %v871_v35 = vld [vmem:[%s12158_s22 + $0x378] sm:$0xff] }
 0x4b1   : > { %7818 = vmatpush1.bf16.msra.mxu0 %v10859_v58  ;;  %7982 = vmatpush1.bf16.msra.mxu1 %v10861_v59  ;;  %v9935_v58 = vcombine.low %v782_v43, %v790_v44  ;;  %v9937_v59 = vcombine.low %v783_v45, %v791_v46  ;;  %v886_v43 = vld [vmem:[%s12158_s22 + $0x3f0] sm:$0xff]  ;;  %v879_v44 = vld [vmem:[%s12158_s22 + $0x3b8] sm:$0xff] }
 0x4b2   : > { %7819 = vmatprep.subr.bf16.mxu0 %v10876_v63  ;;  %7983 = vmatprep.subr.bf16.mxu1 %v10878_v4  ;;  %v9952_v63 = vcombine.high %v798_v53, %v806_v54  ;;  %v9954_v4 = vcombine.high %v799_v55, %v807_v57  ;;  %v887_v45 = vld [vmem:[%s12158_s22 + $0x3f8] sm:$0xff] }
 0x4b5   : > { %7820 = vmatpush1.bf16.msra.mxu0 %v10875_v11  ;;  %7984 = vmatpush1.bf16.msra.mxu1 %v10877_v12  ;;  %v9951_v11 = vcombine.low %v798_v53, %v806_v54  ;;  %v9953_v12 = vcombine.low %v799_v55, %v807_v57  ;;  %v902_v53 = vld [vmem:[%s12158_s22 + $0x470] sm:$0xff]  ;;  %v895_v54 = vld [vmem:[%s12158_s22 + $0x438] sm:$0xff] }
 0x4b6   : > { %7821 = vmatprep.subr.bf16.mxu0 %v10892_v13  ;;  %7985 = vmatprep.subr.bf16.mxu1 %v10894_v14  ;;  %v9968_v13 = vcombine.high %v814_v7, %v822_v8  ;;  %v9970_v14 = vcombine.high %v815_v51, %v823_v10  ;;  %v903_v55 = vld [vmem:[%s12158_s22 + $0x478] sm:$0xff] }
 0x4b9   : > { %7822 = vmatpush1.bf16.msra.mxu0 %v10891_v22  ;;  %7986 = vmatpush1.bf16.msra.mxu1 %v10893_v23  ;;  %v9967_v22 = vcombine.low %v814_v7, %v822_v8  ;;  %v9984_v23 = vcombine.high %v830_v15, %v838_v17  ;;  %v918_v7 = vld [vmem:[%s12158_s22 + $0x4f0] sm:$0xff]  ;;  %v911_v8 = vld [vmem:[%s12158_s22 + $0x4b8] sm:$0xff] }
 0x4ba   : > { %7823 = vmatprep.subr.bf16.mxu0 %v10908_v24  ;;  %7987 = vmatprep.subr.bf16.mxu1 %v10910_v25  ;;  %v9986_v24 = vcombine.high %v831_v19, %v839_v21  ;;  %v846_v25 = vld [vmem:[%s12158_s22 + $0x2b0] sm:$0xff]  ;;  %v927_v17 = vld [vmem:[%s12158_s22 + $0x538] sm:$0xff] }
 0x4bb   : > { %v9999_v36 = vcombine.low %v846_v25, %v854_v26  ;;  %v934_v15 = vld [vmem:[%s12158_s22 + $0x570] sm:$0xff] }
 0x4bd   : > { %7824 = vmatpush1.bf16.msra.mxu0 %v10907_v29  ;;  %7988 = vmatpush1.bf16.msra.mxu1 %v10909_v30  ;;  %v9985_v29 = vcombine.low %v831_v19, %v839_v21  ;;  %v10000_v30 = vcombine.high %v846_v25, %v854_v26  ;;  %v935_v19 = vld [vmem:[%s12158_s22 + $0x578] sm:$0xff]  ;;  %v950_v25 = vld [vmem:[%s12158_s22 + $0x5f0] sm:$0xff] }
 0x4be   : > { %7825 = vmatprep.subr.bf16.mxu0 %v10924_v31  ;;  %7989 = vmatprep.subr.bf16.mxu1 %v10926_v32  ;;  %v10002_v31 = vcombine.high %v847_v27, %v855_v1  ;;  %v862_v32 = vld [vmem:[%s12158_s22 + $0x330] sm:$0xff]  ;;  %v943_v26 = vld [vmem:[%s12158_s22 + $0x5b8] sm:$0xff] }
 0x4bf   : > { %v10015_v46 = vcombine.low %v862_v32, %v870_v33 }
 0x4c1   : > { %7826 = vmatpush1.bf16.msra.mxu0 %v10923_v37  ;;  %7990 = vmatpush1.bf16.msra.mxu1 %v10925_v38  ;;  %v10001_v37 = vcombine.low %v847_v27, %v855_v1  ;;  %v10016_v38 = vcombine.high %v862_v32, %v870_v33  ;;  %v951_v27 = vld [vmem:[%s12158_s22 + $0x5f8] sm:$0xff]  ;;  %v966_v32 = vld [vmem:[%s12158_s22 + $0x670] sm:$0xff] }
 0x4c2   : > { %8000 = vmatprep.subr.bf16.mxu0 %v9920_v40  ;;  %8164 = vmatprep.subr.bf16.mxu1 %v9922_v41  ;;  %v10018_v40 = vcombine.high %v863_v34, %v871_v35  ;;  %v878_v41 = vld [vmem:[%s12158_s22 + $0x3b0] sm:$0xff]  ;;  %v959_v33 = vld [vmem:[%s12158_s22 + $0x638] sm:$0xff] }
 0x4c3   : > { %v10031_v57 = vcombine.low %v878_v41, %v886_v43 }
 0x4c4   : > { %7828 = vmatmul.mubr.bf16.vlgmr.msra.gmra.mrb[8].mxu0 %v12497_v18  ;;  %7992 = vmatmul.mubr.bf16.vlgmr.msra.gmra.mrb[8].mxu1 %v12497_v18 }
 0x4c5   : > { %8001 = vmatpush1.bf16.msra.mxu0 %v9919_v47  ;;  %8165 = vmatpush1.bf16.msra.mxu1 %v9921_v48  ;;  %v10017_v47 = vcombine.low %v863_v34, %v871_v35  ;;  %v10032_v48 = vcombine.high %v878_v41, %v886_v43  ;;  %v967_v34 = vld [vmem:[%s12158_s22 + $0x678] sm:$0xff]  ;;  %v982_v41 = vld [vmem:[%s12158_s22 + $0x6f0] sm:$0xff] }
 0x4c6   : > { %8002 = vmatprep.subr.bf16.mxu0 %v9936_v49  ;;  %8166 = vmatprep.subr.bf16.mxu1 %v9938_v16  ;;  %v10034_v49 = vcombine.high %v879_v44, %v887_v45  ;;  %v894_v16 = vld [vmem:[%s12158_s22 + $0x430] sm:$0xff]  ;;  %v975_v43 = vld [vmem:[%s12158_s22 + $0x6b8] sm:$0xff] }
 0x4c7   : > { %8032 = vmatprep.mubr.bf16.mxu0 %v12217_v20  ;;  %8196 = vmatprep.mubr.bf16.mxu1 %v12217_v20  ;;  %v9969_v20 = vcombine.low %v815_v51, %v823_v10  ;;  %v919_v51 = vld [vmem:[%s12158_s22 + $0x4f8] sm:$0xff]  ;;  %v10047_v10 = vcombine.low %v894_v16, %v902_v53 }
 0x4c9   : > { %8003 = vmatpush1.bf16.msra.mxu0 %v9935_v58  ;;  %8167 = vmatpush1.bf16.msra.mxu1 %v9937_v59  ;;  %v10033_v58 = vcombine.low %v879_v44, %v887_v45  ;;  %v10048_v59 = vcombine.high %v894_v16, %v902_v53  ;;  %v983_v44 = vld [vmem:[%s12158_s22 + $0x6f8] sm:$0xff]  ;;  %v998_v16 = vld [vmem:[%s12158_s22 + $0x770] sm:$0xff] }
 0x4ca   : > { %8004 = vmatprep.subr.bf16.mxu0 %v9952_v63  ;;  %8168 = vmatprep.subr.bf16.mxu1 %v9954_v4  ;;  %v10050_v63 = vcombine.high %v895_v54, %v903_v55  ;;  %v910_v4 = vld [vmem:[%s12158_s22 + $0x4b0] sm:$0xff]  ;;  %v991_v53 = vld [vmem:[%s12158_s22 + $0x738] sm:$0xff] }
 0x4cb   : > { %v10063_v21 = vcombine.low %v910_v4, %v918_v7 }
 0x4cd   : > { %8005 = vmatpush1.bf16.msra.mxu0 %v9951_v11  ;;  %8169 = vmatpush1.bf16.msra.mxu1 %v9953_v12  ;;  %v10049_v11 = vcombine.low %v895_v54, %v903_v55  ;;  %v10064_v12 = vcombine.high %v910_v4, %v918_v7  ;;  %v999_v54 = vld [vmem:[%s12158_s22 + $0x778] sm:$0xff]  ;;  %v1014_v4 = vld [vmem:[%s12158_s22 + $0x7f0] sm:$0xff] }
 0x4ce   : > { %8006 = vmatprep.subr.bf16.mxu0 %v9968_v13  ;;  %8170 = vmatprep.subr.bf16.mxu1 %v9970_v14  ;;  %v10066_v13 = vcombine.high %v911_v8, %v919_v51  ;;  %v926_v14 = vld [vmem:[%s12158_s22 + $0x530] sm:$0xff]  ;;  %v1007_v7 = vld [vmem:[%s12158_s22 + $0x7b8] sm:$0xff] }
 0x4cf   : > { %v10079_v1 = vcombine.low %v926_v14, %v934_v15 }
 0x4d1   : > { %8007 = vmatpush1.bf16.msra.mxu0 %v9967_v22  ;;  %8171 = vmatpush1.bf16.msra.mxu1 %v9969_v20  ;;  %v10065_v22 = vcombine.low %v911_v8, %v919_v51  ;;  %v10080_v20 = vcombine.high %v926_v14, %v934_v15  ;;  %v1015_v8 = vld [vmem:[%s12158_s22 + $0x7f8] sm:$0xff]  ;;  %v1030_v14 = vld [vmem:[%s12158_s22 + $0x870] sm:$0xff] }
 0x4d2   : > { %8008 = vmatprep.subr.bf16.mxu0 %v9984_v23  ;;  %8172 = vmatprep.subr.bf16.mxu1 %v9986_v24  ;;  %v10082_v23 = vcombine.high %v927_v17, %v935_v19  ;;  %v942_v24 = vld [vmem:[%s12158_s22 + $0x5b0] sm:$0xff]  ;;  %v1023_v15 = vld [vmem:[%s12158_s22 + $0x838] sm:$0xff] }
 0x4d3   : > { %v10095_v35 = vcombine.low %v942_v24, %v950_v25 }
 0x4d5   : > { %8009 = vmatpush1.bf16.msra.mxu0 %v9983_v28  ;;  %8173 = vmatpush1.bf16.msra.mxu1 %v9985_v29  ;;  %v10081_v28 = vcombine.low %v927_v17, %v935_v19  ;;  %v10096_v29 = vcombine.high %v942_v24, %v950_v25  ;;  %v1031_v17 = vld [vmem:[%s12158_s22 + $0x878] sm:$0xff]  ;;  %v1046_v24 = vld [vmem:[%s12158_s22 + $0x8f0] sm:$0xff] }
 0x4d6   : > { %8010 = vmatprep.subr.bf16.mxu0 %v10000_v30  ;;  %8174 = vmatprep.subr.bf16.mxu1 %v10002_v31  ;;  %v10098_v30 = vcombine.high %v943_v26, %v951_v27  ;;  %v958_v31 = vld [vmem:[%s12158_s22 + $0x630] sm:$0xff]  ;;  %v1039_v25 = vld [vmem:[%s12158_s22 + $0x8b8] sm:$0xff] }
 0x4d7   : > { %v10111_v45 = vcombine.low %v958_v31, %v966_v32 }
 0x4d9   : > { %8011 = vmatpush1.bf16.msra.mxu0 %v9999_v36  ;;  %8175 = vmatpush1.bf16.msra.mxu1 %v10001_v37  ;;  %v10097_v36 = vcombine.low %v943_v26, %v951_v27  ;;  %v10112_v37 = vcombine.high %v958_v31, %v966_v32  ;;  %v1047_v26 = vld [vmem:[%s12158_s22 + $0x8f8] sm:$0xff]  ;;  %v1062_v31 = vld [vmem:[%s12158_s22 + $0x970] sm:$0xff] }
 0x4da   : > { %8012 = vmatprep.subr.bf16.mxu0 %v10016_v38  ;;  %8176 = vmatprep.subr.bf16.mxu1 %v10018_v40  ;;  %v10114_v38 = vcombine.high %v959_v33, %v967_v34  ;;  %v974_v40 = vld [vmem:[%s12158_s22 + $0x6b0] sm:$0xff]  ;;  %v1055_v32 = vld [vmem:[%s12158_s22 + $0x938] sm:$0xff] }
 0x4db   : > { %v10127_v55 = vcombine.low %v974_v40, %v982_v41 }
 0x4dd   : > { %8013 = vmatpush1.bf16.msra.mxu0 %v10015_v46  ;;  %8177 = vmatpush1.bf16.msra.mxu1 %v10017_v47  ;;  %v10113_v46 = vcombine.low %v959_v33, %v967_v34  ;;  %v10128_v47 = vcombine.high %v974_v40, %v982_v41  ;;  %v1063_v33 = vld [vmem:[%s12158_s22 + $0x978] sm:$0xff]  ;;  %v1078_v40 = vld [vmem:[%s12158_s22 + $0x9f0] sm:$0xff] }
 0x4de   : > { %8014 = vmatprep.subr.bf16.mxu0 %v10032_v48  ;;  %8178 = vmatprep.subr.bf16.mxu1 %v10034_v49  ;;  %v10130_v48 = vcombine.high %v975_v43, %v983_v44  ;;  %v990_v49 = vld [vmem:[%s12158_s22 + $0x730] sm:$0xff]  ;;  %v1071_v41 = vld [vmem:[%s12158_s22 + $0x9b8] sm:$0xff] }
 0x4df   : > { %v10143_v51 = vcombine.low %v990_v49, %v998_v16 }
 0x4e1   : > { %8015 = vmatpush1.bf16.msra.mxu0 %v10031_v57  ;;  %8179 = vmatpush1.bf16.msra.mxu1 %v10033_v58  ;;  %v10129_v57 = vcombine.low %v975_v43, %v983_v44  ;;  %v10144_v58 = vcombine.high %v990_v49, %v998_v16  ;;  %v1079_v43 = vld [vmem:[%s12158_s22 + $0x9f8] sm:$0xff]  ;;  %v10209_v44 = vcombine.low %v1055_v32, %v1063_v33 }
 0x4e2   : > { %8016 = vmatprep.subr.bf16.mxu0 %v10048_v59  ;;  %8180 = vmatprep.subr.bf16.mxu1 %v10050_v63  ;;  %v10146_v59 = vcombine.high %v991_v53, %v999_v54  ;;  %v1006_v63 = vld [vmem:[%s12158_s22 + $0x7b0] sm:$0xff]  ;;  %v1087_v49 = vld [vmem:[%s12158_s22 + $0xa38] sm:$0xff] }
 0x4e3   : > { %v10159_v19 = vcombine.low %v1006_v63, %v1014_v4  ;;  %v1095_v16 = vld [vmem:[%s12158_s22 + $0xa78] sm:$0xff] }
 0x4e5   : > { %8017 = vmatpush1.bf16.msra.mxu0 %v10047_v10  ;;  %8181 = vmatpush1.bf16.msra.mxu1 %v10049_v11  ;;  %v10145_v10 = vcombine.low %v991_v53, %v999_v54  ;;  %v10160_v11 = vcombine.high %v1006_v63, %v1014_v4  ;;  %v1111_v63 = vld [vmem:[%s12158_s22 + $0xaf8] sm:$0xff] }
 0x4e6   : > { %8018 = vmatprep.subr.bf16.mxu0 %v10064_v12  ;;  %8182 = vmatprep.subr.bf16.mxu1 %v10066_v13  ;;  %v10162_v12 = vcombine.high %v1007_v7, %v1015_v8  ;;  %v1022_v13 = vld [vmem:[%s12158_s22 + $0x830] sm:$0xff] }
 0x4e7   : > { %v10175_v27 = vcombine.low %v1022_v13, %v1030_v14 }
 0x4e9   : > { %8019 = vmatpush1.bf16.msra.mxu0 %v10063_v21  ;;  %8183 = vmatpush1.bf16.msra.mxu1 %v10065_v22  ;;  %v10161_v21 = vcombine.low %v1007_v7, %v1015_v8  ;;  %v10176_v22 = vcombine.high %v1022_v13, %v1030_v14  ;;  %v10241_v7 = vcombine.low %v1087_v49, %v1095_v16  ;;  %v1127_v13 = vld [vmem:[%s12158_s22 + $0xb78] sm:$0xff] }
 0x4ea   : > { %8020 = vmatprep.subr.bf16.mxu0 %v10080_v20  ;;  %8184 = vmatprep.subr.bf16.mxu1 %v10082_v23  ;;  %v10178_v20 = vcombine.high %v1023_v15, %v1031_v17  ;;  %v1038_v23 = vld [vmem:[%s12158_s22 + $0x8b0] sm:$0xff] }
 0x4eb   : > { %v10191_v34 = vcombine.low %v1038_v23, %v1046_v24 }
 0x4ed   : > { %8021 = vmatpush1.bf16.msra.mxu0 %v10079_v1  ;;  %8185 = vmatpush1.bf16.msra.mxu1 %v10081_v28  ;;  %v10177_v1 = vcombine.low %v1023_v15, %v1031_v17  ;;  %v10192_v28 = vcombine.high %v1038_v23, %v1046_v24  ;;  %v1143_v23 = vld [vmem:[%s12158_s22 + $0xbf8] sm:$0xff] }
 0x4ee   : > { %8022 = vmatprep.subr.bf16.mxu0 %v10096_v29  ;;  %8186 = vmatprep.subr.bf16.mxu1 %v10098_v30  ;;  %v10194_v29 = vcombine.high %v1039_v25, %v1047_v26  ;;  %v1054_v30 = vld [vmem:[%s12158_s22 + $0x930] sm:$0xff] }
 0x4f1   : > { %8023 = vmatpush1.bf16.msra.mxu0 %v10095_v35  ;;  %8187 = vmatpush1.bf16.msra.mxu1 %v10097_v36  ;;  %v10193_v35 = vcombine.low %v1039_v25, %v1047_v26  ;;  %v10208_v36 = vcombine.high %v1054_v30, %v1062_v31 }
 0x4f2   : > { %8024 = vmatprep.subr.bf16.mxu0 %v10112_v37  ;;  %8188 = vmatprep.subr.bf16.mxu1 %v10114_v38  ;;  %v10210_v37 = vcombine.high %v1055_v32, %v1063_v33  ;;  %v1070_v38 = vld [vmem:[%s12158_s22 + $0x9b0] sm:$0xff] }
 0x4f3   : > { %v10223_v53 = vcombine.low %v1070_v38, %v1078_v40 }
 0x4f5   : > { %8025 = vmatpush1.bf16.msra.mxu0 %v10111_v45  ;;  %8189 = vmatpush1.bf16.msra.mxu1 %v10113_v46  ;;  %v10224_v45 = vcombine.high %v1070_v38, %v1078_v40  ;;  %v10226_v46 = vcombine.high %v1071_v41, %v1079_v43  ;;  %v1175_v38 = vld [vmem:[%s12158_s22 + $0xcf8] sm:$0xff] }
 0x4f6   : > { %8026 = vmatprep.subr.bf16.mxu0 %v10128_v47  ;;  %8190 = vmatprep.subr.bf16.mxu1 %v10130_v48  ;;  %v1086_v47 = vld [vmem:[%s12158_s22 + $0xa30] sm:$0xff] }
 0x4f7   : > { %v1094_v48 = vld [vmem:[%s12158_s22 + $0xa70] sm:$0xff] }
 0x4f8   : > { %v10240_v54 = vcombine.high %v1086_v47, %v1094_v48  ;;  %v10239_v4 = vcombine.low %v1086_v47, %v1094_v48  ;;  %v1191_v47 = vld [vmem:[%s12158_s22 + $0xd78] sm:$0xff] }
 0x4f9   : > { %8027 = vmatpush1.bf16.msra.mxu0 %v10127_v55  ;;  %8191 = vmatpush1.bf16.msra.mxu1 %v10129_v57  ;;  %v10242_v55 = vcombine.high %v1087_v49, %v1095_v16  ;;  %v1102_v57 = vld [vmem:[%s12158_s22 + $0xab0] sm:$0xff] }
 0x4fa   : > { %8028 = vmatprep.subr.bf16.mxu0 %v10144_v58  ;;  %8192 = vmatprep.subr.bf16.mxu1 %v10146_v59  ;;  %v1110_v58 = vld [vmem:[%s12158_s22 + $0xaf0] sm:$0xff]  ;;  %v1103_v59 = vld [vmem:[%s12158_s22 + $0xab8] sm:$0xff] }
 0x4fb   : > { %v10256_v8 = vcombine.high %v1102_v57, %v1110_v58  ;;  %v10255_v14 = vcombine.low %v1102_v57, %v1110_v58  ;;  %v10257_v15 = vcombine.low %v1103_v59, %v1111_v63  ;;  %v1207_v57 = vld [vmem:[%s12158_s22 + $0xdf8] sm:$0xff] }
 0x4fd   : > { %8029 = vmatpush1.bf16.msra.mxu0 %v10143_v51  ;;  %8193 = vmatpush1.bf16.msra.mxu1 %v10145_v10  ;;  %v10258_v51 = vcombine.high %v1103_v59, %v1111_v63  ;;  %v1118_v10 = vld [vmem:[%s12158_s22 + $0xb30] sm:$0xff] }
 0x4fe   : > { %8030 = vmatprep.subr.bf16.mxu0 %v10160_v11  ;;  %8194 = vmatprep.subr.bf16.mxu1 %v10162_v12  ;;  %v1126_v11 = vld [vmem:[%s12158_s22 + $0xb70] sm:$0xff]  ;;  %v1119_v12 = vld [vmem:[%s12158_s22 + $0xb38] sm:$0xff] }
 0x4ff   : > { %v10272_v17 = vcombine.high %v1118_v10, %v1126_v11  ;;  %v10271_v24 = vcombine.low %v1118_v10, %v1126_v11  ;;  %v10273_v25 = vcombine.low %v1119_v12, %v1127_v13  ;;  %v1223_v10 = vld [vmem:[%s12158_s22 + $0xe78] sm:$0xff] }
 0x501   : > { %8031 = vmatpush1.bf16.msra.mxu0 %v10159_v19  ;;  %8195 = vmatpush1.bf16.msra.mxu1 %v10161_v21  ;;  %v10274_v19 = vcombine.high %v1119_v12, %v1127_v13  ;;  %v1134_v21 = vld [vmem:[%s12158_s22 + $0xbb0] sm:$0xff] }
 0x502   : > { %8041 = vmatprep.subr.bf16.mxu0 %v10176_v22  ;;  %8205 = vmatprep.subr.bf16.mxu1 %v10178_v20  ;;  %v1142_v22 = vld [vmem:[%s12158_s22 + $0xbf0] sm:$0xff]  ;;  %v1135_v20 = vld [vmem:[%s12158_s22 + $0xbb8] sm:$0xff] }
 0x503   : > { %v10288_v26 = vcombine.high %v1134_v21, %v1142_v22  ;;  %v10289_v32 = vcombine.low %v1135_v20, %v1143_v23 }
 0x504   : > { %8033 = vmatmul.mubr.bf16.vlgmr.msra.gmra.mrb[12].mxu0 %v12263_v39  ;;  %8197 = vmatmul.mubr.bf16.vlgmr.msra.gmra.mrb[12].mxu1 %v12263_v39  ;;  %v10207_v39 = vcombine.low %v1054_v30, %v1062_v31  ;;  %v1159_v30 = vld [vmem:[%s12158_s22 + $0xc78] sm:$0xff]  ;;  %v10287_v31 = vcombine.low %v1134_v21, %v1142_v22 }
 0x505   : > { %8042 = vmatpush1.bf16.msra.mxu0 %v10175_v27  ;;  %8206 = vmatpush1.bf16.msra.mxu1 %v10177_v1  ;;  %v10290_v27 = vcombine.high %v1135_v20, %v1143_v23  ;;  %v1150_v1 = vld [vmem:[%s12158_s22 + $0xc30] sm:$0xff]  ;;  %v1239_v21 = vld [vmem:[%s12158_s22 + $0xef8] sm:$0xff] }
 0x506   : > { %8043 = vmatprep.subr.bf16.mxu0 %v10192_v28  ;;  %8207 = vmatprep.subr.bf16.mxu1 %v10194_v29  ;;  %v1158_v28 = vld [vmem:[%s12158_s22 + $0xc70] sm:$0xff]  ;;  %v1151_v29 = vld [vmem:[%s12158_s22 + $0xc38] sm:$0xff] }
 0x507   : > { %8073 = vmatprep.mubr.bf16.mxu0 %v12275_v50  ;;  %8237 = vmatprep.mubr.bf16.mxu1 %v12275_v50  ;;  %v10225_v50 = vcombine.low %v1071_v41, %v1079_v43  ;;  %v10304_v33 = vcombine.high %v1150_v1, %v1158_v28  ;;  %v10303_v40 = vcombine.low %v1150_v1, %v1158_v28  ;;  %v1255_v1 = vld [vmem:[%s12158_s22 + $0xf78] sm:$0xff] }
 0x508   : > { %v10305_v41 = vcombine.low %v1151_v29, %v1159_v30 }
 0x509   : > { %8044 = vmatpush1.bf16.msra.mxu0 %v10191_v34  ;;  %8208 = vmatpush1.bf16.msra.mxu1 %v10193_v35  ;;  %v10306_v34 = vcombine.high %v1151_v29, %v1159_v30  ;;  %v1166_v35 = vld [vmem:[%s12158_s22 + $0xcb0] sm:$0xff] }
 0x50a   : > { %8045 = vmatprep.subr.bf16.mxu0 %v10208_v36  ;;  %8209 = vmatprep.subr.bf16.mxu1 %v10210_v37  ;;  %v1174_v36 = vld [vmem:[%s12158_s22 + $0xcf0] sm:$0xff]  ;;  %v1167_v37 = vld [vmem:[%s12158_s22 + $0xcb8] sm:$0xff] }
 0x50b   : > { %v10320_v43 = vcombine.high %v1166_v35, %v1174_v36  ;;  %v10319_v48 = vcombine.low %v1166_v35, %v1174_v36  ;;  %v10321_v49 = vcombine.low %v1167_v37, %v1175_v38  ;;  %v1271_v35 = vld [vmem:[%s12158_s22 + $0xff8] sm:$0xff] }
 0x50d   : > { %8046 = vmatpush1.bf16.msra.mxu0 %v10207_v39  ;;  %8210 = vmatpush1.bf16.msra.mxu1 %v10209_v44  ;;  %v10322_v39 = vcombine.high %v1167_v37, %v1175_v38  ;;  %v1182_v44 = vld [vmem:[%s12158_s22 + $0xd30] sm:$0xff] }
 0x50e   : > { %8047 = vmatprep.subr.bf16.mxu0 %v10224_v45  ;;  %8211 = vmatprep.subr.bf16.mxu1 %v10226_v46  ;;  %v1190_v45 = vld [vmem:[%s12158_s22 + $0xd70] sm:$0xff]  ;;  %v1183_v46 = vld [vmem:[%s12158_s22 + $0xd38] sm:$0xff] }
 0x50f   : > { %v10336_v16 = vcombine.high %v1182_v44, %v1190_v45  ;;  %v10335_v58 = vcombine.low %v1182_v44, %v1190_v45  ;;  %v10337_v59 = vcombine.low %v1183_v46, %v1191_v47  ;;  %v1287_v44 = vld [vmem:[%s12158_s22 + $0x1078] sm:$0xff] }
 0x511   : > { %8048 = vmatpush1.bf16.msra.mxu0 %v10223_v53  ;;  %8212 = vmatpush1.bf16.msra.mxu1 %v10225_v50  ;;  %v10338_v53 = vcombine.high %v1183_v46, %v1191_v47  ;;  %v1198_v50 = vld [vmem:[%s12158_s22 + $0xdb0] sm:$0xff] }
 0x512   : > { %8049 = vmatprep.subr.bf16.mxu0 %v10240_v54  ;;  %8213 = vmatprep.subr.bf16.mxu1 %v10242_v55  ;;  %v1206_v54 = vld [vmem:[%s12158_s22 + $0xdf0] sm:$0xff]  ;;  %v1199_v55 = vld [vmem:[%s12158_s22 + $0xdb8] sm:$0xff] }
 0x513   : > { %v10352_v63 = vcombine.high %v1198_v50, %v1206_v54  ;;  %v10351_v11 = vcombine.low %v1198_v50, %v1206_v54  ;;  %v10353_v12 = vcombine.low %v1199_v55, %v1207_v57  ;;  %v1303_v50 = vld [vmem:[%s12158_s22 + $0x10f8] sm:$0xff] }
 0x515   : > { %8050 = vmatpush1.bf16.msra.mxu0 %v10239_v4  ;;  %8214 = vmatpush1.bf16.msra.mxu1 %v10241_v7  ;;  %v10354_v4 = vcombine.high %v1199_v55, %v1207_v57  ;;  %v1214_v7 = vld [vmem:[%s12158_s22 + $0xe30] sm:$0xff] }
 0x516   : > { %8051 = vmatprep.subr.bf16.mxu0 %v10256_v8  ;;  %8215 = vmatprep.subr.bf16.mxu1 %v10258_v51  ;;  %v1222_v8 = vld [vmem:[%s12158_s22 + $0xe70] sm:$0xff]  ;;  %v1215_v51 = vld [vmem:[%s12158_s22 + $0xe38] sm:$0xff] }
 0x517   : > { %v10368_v13 = vcombine.high %v1214_v7, %v1222_v8  ;;  %v10367_v22 = vcombine.low %v1214_v7, %v1222_v8  ;;  %v10369_v20 = vcombine.low %v1215_v51, %v1223_v10  ;;  %v1319_v7 = vld [vmem:[%s12158_s22 + $0x1178] sm:$0xff] }
 0x519   : > { %8052 = vmatpush1.bf16.msra.mxu0 %v10255_v14  ;;  %8216 = vmatpush1.bf16.msra.mxu1 %v10257_v15  ;;  %v10370_v14 = vcombine.high %v1215_v51, %v1223_v10  ;;  %v1230_v15 = vld [vmem:[%s12158_s22 + $0xeb0] sm:$0xff] }
 0x51a   : > { %8053 = vmatprep.subr.bf16.mxu0 %v10272_v17  ;;  %8217 = vmatprep.subr.bf16.mxu1 %v10274_v19  ;;  %v1238_v17 = vld [vmem:[%s12158_s22 + $0xef0] sm:$0xff]  ;;  %v1231_v19 = vld [vmem:[%s12158_s22 + $0xeb8] sm:$0xff] }
 0x51b   : > { %v10384_v23 = vcombine.high %v1230_v15, %v1238_v17  ;;  %v10383_v28 = vcombine.low %v1230_v15, %v1238_v17  ;;  %v10385_v29 = vcombine.low %v1231_v19, %v1239_v21  ;;  %v1335_v15 = vld [vmem:[%s12158_s22 + $0x11f8] sm:$0xff] }
 0x51d   : > { %8054 = vmatpush1.bf16.msra.mxu0 %v10271_v24  ;;  %8218 = vmatpush1.bf16.msra.mxu1 %v10273_v25  ;;  %v10386_v24 = vcombine.high %v1231_v19, %v1239_v21  ;;  %v1246_v25 = vld [vmem:[%s12158_s22 + $0xf30] sm:$0xff] }
 0x51e   : > { %8055 = vmatprep.subr.bf16.mxu0 %v10288_v26  ;;  %8219 = vmatprep.subr.bf16.mxu1 %v10290_v27  ;;  %v1254_v26 = vld [vmem:[%s12158_s22 + $0xf70] sm:$0xff]  ;;  %v1247_v27 = vld [vmem:[%s12158_s22 + $0xf38] sm:$0xff] }
 0x51f   : > { %v10400_v30 = vcombine.high %v1246_v25, %v1254_v26  ;;  %v10399_v36 = vcombine.low %v1246_v25, %v1254_v26  ;;  %v10401_v37 = vcombine.low %v1247_v27, %v1255_v1 }
 0x521   : > { %8056 = vmatpush1.bf16.msra.mxu0 %v10287_v31  ;;  %8220 = vmatpush1.bf16.msra.mxu1 %v10289_v32  ;;  %v10402_v31 = vcombine.high %v1247_v27, %v1255_v1  ;;  %v1262_v32 = vld [vmem:[%s12158_s22 + $0xfb0] sm:$0xff] }
 0x522   : > { %8057 = vmatprep.subr.bf16.mxu0 %v10304_v33  ;;  %8221 = vmatprep.subr.bf16.mxu1 %v10306_v34  ;;  %v1270_v33 = vld [vmem:[%s12158_s22 + $0xff0] sm:$0xff]  ;;  %v1263_v34 = vld [vmem:[%s12158_s22 + $0xfb8] sm:$0xff] }
 0x523   : > { %v10416_v38 = vcombine.high %v1262_v32, %v1270_v33  ;;  %v10415_v45 = vcombine.low %v1262_v32, %v1270_v33  ;;  %v10417_v46 = vcombine.low %v1263_v34, %v1271_v35  ;;  %v1358_v1 = vld [vmem:[%s12158_s22 + $0x12b0] sm:$0xff] }
 0x525   : > { %8058 = vmatpush1.bf16.msra.mxu0 %v10303_v40  ;;  %8222 = vmatpush1.bf16.msra.mxu1 %v10305_v41  ;;  %v10418_v40 = vcombine.high %v1263_v34, %v1271_v35  ;;  %v1278_v41 = vld [vmem:[%s12158_s22 + $0x1030] sm:$0xff] }
 0x526   : > { %8059 = vmatprep.subr.bf16.mxu0 %v10320_v43  ;;  %8223 = vmatprep.subr.bf16.mxu1 %v10322_v39  ;;  %v1286_v43 = vld [vmem:[%s12158_s22 + $0x1070] sm:$0xff]  ;;  %v1279_v39 = vld [vmem:[%s12158_s22 + $0x1038] sm:$0xff] }
 0x527   : > { %v10432_v47 = vcombine.high %v1278_v41, %v1286_v43  ;;  %v10431_v54 = vcombine.low %v1278_v41, %v1286_v43  ;;  %v10433_v55 = vcombine.low %v1279_v39, %v1287_v44  ;;  %v1374_v35 = vld [vmem:[%s12158_s22 + $0x1330] sm:$0xff] }
 0x529   : > { %8060 = vmatpush1.bf16.msra.mxu0 %v10319_v48  ;;  %8224 = vmatpush1.bf16.msra.mxu1 %v10321_v49  ;;  %v10434_v48 = vcombine.high %v1279_v39, %v1287_v44  ;;  %v1294_v49 = vld [vmem:[%s12158_s22 + $0x10b0] sm:$0xff] }
 0x52a   : > { %8061 = vmatprep.subr.bf16.mxu0 %v10336_v16  ;;  %8225 = vmatprep.subr.bf16.mxu1 %v10338_v53  ;;  %v1302_v16 = vld [vmem:[%s12158_s22 + $0x10f0] sm:$0xff]  ;;  %v1295_v53 = vld [vmem:[%s12158_s22 + $0x10b8] sm:$0xff] }
 0x52b   : > { %v10448_v57 = vcombine.high %v1294_v49, %v1302_v16  ;;  %v10447_v8 = vcombine.low %v1294_v49, %v1302_v16  ;;  %v10449_v51 = vcombine.low %v1295_v53, %v1303_v50  ;;  %v1390_v44 = vld [vmem:[%s12158_s22 + $0x13b0] sm:$0xff] }
 0x52d   : > { %8062 = vmatpush1.bf16.msra.mxu0 %v10335_v58  ;;  %8226 = vmatpush1.bf16.msra.mxu1 %v10337_v59  ;;  %v10450_v58 = vcombine.high %v1295_v53, %v1303_v50  ;;  %v1310_v59 = vld [vmem:[%s12158_s22 + $0x1130] sm:$0xff] }
 0x52e   : > { %8063 = vmatprep.subr.bf16.mxu0 %v10352_v63  ;;  %8227 = vmatprep.subr.bf16.mxu1 %v10354_v4  ;;  %v1318_v63 = vld [vmem:[%s12158_s22 + $0x1170] sm:$0xff]  ;;  %v1311_v4 = vld [vmem:[%s12158_s22 + $0x1138] sm:$0xff] }
 0x52f   : > { %v10464_v10 = vcombine.high %v1310_v59, %v1318_v63  ;;  %v10465_v17 = vcombine.low %v1311_v4, %v1319_v7  ;;  %v1406_v50 = vld [vmem:[%s12158_s22 + $0x1430] sm:$0xff] }
 0x531   : > { %8064 = vmatpush1.bf16.msra.mxu0 %v10351_v11  ;;  %8228 = vmatpush1.bf16.msra.mxu1 %v10353_v12  ;;  %v10466_v11 = vcombine.high %v1311_v4, %v1319_v7  ;;  %v1326_v12 = vld [vmem:[%s12158_s22 + $0x11b0] sm:$0xff] }
 0x532   : > { %8065 = vmatprep.subr.bf16.mxu0 %v10368_v13  ;;  %8229 = vmatprep.subr.bf16.mxu1 %v10370_v14  ;;  %v1334_v13 = vld [vmem:[%s12158_s22 + $0x11f0] sm:$0xff]  ;;  %v1327_v14 = vld [vmem:[%s12158_s22 + $0x11b8] sm:$0xff] }
 0x533   : > { %v10480_v19 = vcombine.high %v1326_v12, %v1334_v13  ;;  %v10482_v21 = vcombine.high %v1327_v14, %v1335_v15  ;;  %v10479_v25 = vcombine.low %v1326_v12, %v1334_v13  ;;  %v1422_v7 = vld [vmem:[%s12158_s22 + $0x14b0] sm:$0xff] }
 0x535   : > { %8066 = vmatpush1.bf16.msra.mxu0 %v10367_v22  ;;  %8230 = vmatpush1.bf16.msra.mxu1 %v10369_v20  ;;  %v1342_v22 = vld [vmem:[%s12158_s22 + $0x1230] sm:$0xff] }
 0x536   : > { %8067 = vmatprep.subr.bf16.mxu0 %v10384_v23  ;;  %8231 = vmatprep.subr.bf16.mxu1 %v10386_v24  ;;  %v1350_v20 = vld [vmem:[%s12158_s22 + $0x1270] sm:$0xff]  ;;  %v1343_v23 = vld [vmem:[%s12158_s22 + $0x1238] sm:$0xff] }
 0x537   : > { %v1351_v24 = vld [vmem:[%s12158_s22 + $0x1278] sm:$0xff]  ;;  %v10496_v26 = vcombine.high %v1342_v22, %v1350_v20 }
 0x538   : > { %v10498_v27 = vcombine.high %v1343_v23, %v1351_v24  ;;  %v10497_v32 = vcombine.low %v1343_v23, %v1351_v24  ;;  %v1454_v24 = vld [vmem:[%s12158_s22 + $0x15b0] sm:$0xff] }
 0x539   : > { %8068 = vmatpush1.bf16.msra.mxu0 %v10383_v28  ;;  %8232 = vmatpush1.bf16.msra.mxu1 %v10385_v29  ;;  %v1366_v28 = vld [vmem:[%s12158_s22 + $0x12f0] sm:$0xff]  ;;  %v1359_v29 = vld [vmem:[%s12158_s22 + $0x12b8] sm:$0xff] }
 0x53a   : > { %8069 = vmatprep.subr.bf16.mxu0 %v10400_v30  ;;  %8233 = vmatprep.subr.bf16.mxu1 %v10402_v31  ;;  %v1367_v30 = vld [vmem:[%s12158_s22 + $0x12f8] sm:$0xff]  ;;  %v10495_v31 = vcombine.low %v1342_v22, %v1350_v20  ;;  %v10512_v33 = vcombine.high %v1358_v1, %v1366_v28 }
 0x53b   : > { %v10514_v34 = vcombine.high %v1359_v29, %v1367_v30  ;;  %v10513_v41 = vcombine.low %v1359_v29, %v1367_v30  ;;  %v1470_v30 = vld [vmem:[%s12158_s22 + $0x1630] sm:$0xff] }
 0x53d   : > { %8070 = vmatpush1.bf16.msra.mxu0 %v10399_v36  ;;  %8234 = vmatpush1.bf16.msra.mxu1 %v10401_v37  ;;  %v1382_v36 = vld [vmem:[%s12158_s22 + $0x1370] sm:$0xff]  ;;  %v1375_v37 = vld [vmem:[%s12158_s22 + $0x1338] sm:$0xff] }
 0x53e   : > { %8071 = vmatprep.subr.bf16.mxu0 %v10416_v38  ;;  %8235 = vmatprep.subr.bf16.mxu1 %v10418_v40  ;;  %v1383_v38 = vld [vmem:[%s12158_s22 + $0x1378] sm:$0xff]  ;;  %v10511_v40 = vcombine.low %v1358_v1, %v1366_v28  ;;  %v10528_v43 = vcombine.high %v1374_v35, %v1382_v36 }
 0x53f   : > { %v10530_v39 = vcombine.high %v1375_v37, %v1383_v38  ;;  %v10529_v49 = vcombine.low %v1375_v37, %v1383_v38  ;;  %v1486_v38 = vld [vmem:[%s12158_s22 + $0x16b0] sm:$0xff] }
 0x541   : > { %8072 = vmatpush1.bf16.msra.mxu0 %v10415_v45  ;;  %8236 = vmatpush1.bf16.msra.mxu1 %v10417_v46  ;;  %v1398_v45 = vld [vmem:[%s12158_s22 + $0x13f0] sm:$0xff]  ;;  %v1391_v46 = vld [vmem:[%s12158_s22 + $0x13b8] sm:$0xff] }
 0x542   : > { %8082 = vmatprep.subr.bf16.mxu0 %v10432_v47  ;;  %8246 = vmatprep.subr.bf16.mxu1 %v10434_v48  ;;  %v1399_v47 = vld [vmem:[%s12158_s22 + $0x13f8] sm:$0xff]  ;;  %v10527_v48 = vcombine.low %v1374_v35, %v1382_v36  ;;  %v10544_v16 = vcombine.high %v1390_v44, %v1398_v45 }
 0x543   : > { %v10546_v53 = vcombine.high %v1391_v46, %v1399_v47 }
 0x544   : > { %8074 = vmatmul.mubr.bf16.vlgmr.msra.gmra.mrb[12].mxu0 %v12345_v52  ;;  %8238 = vmatmul.mubr.bf16.vlgmr.msra.gmra.mrb[12].mxu1 %v12345_v52  ;;  %v10463_v52 = vcombine.low %v1310_v59, %v1318_v63  ;;  %v10545_v59 = vcombine.low %v1391_v46, %v1399_v47  ;;  %v1502_v47 = vld [vmem:[%s12158_s22 + $0x1730] sm:$0xff] }
 0x545   : > { %8083 = vmatpush1.bf16.msra.mxu0 %v10431_v54  ;;  %8247 = vmatpush1.bf16.msra.mxu1 %v10433_v55  ;;  %v1414_v54 = vld [vmem:[%s12158_s22 + $0x1470] sm:$0xff]  ;;  %v1407_v55 = vld [vmem:[%s12158_s22 + $0x1438] sm:$0xff] }
 0x546   : > { %8084 = vmatprep.subr.bf16.mxu0 %v10448_v57  ;;  %8248 = vmatprep.subr.bf16.mxu1 %v10450_v58  ;;  %v1415_v57 = vld [vmem:[%s12158_s22 + $0x1478] sm:$0xff]  ;;  %v10543_v58 = vcombine.low %v1390_v44, %v1398_v45  ;;  %v10560_v63 = vcombine.high %v1406_v50, %v1414_v54 }
 0x547   : > { %8114 = vmatprep.mubr.bf16.mxu0 %v12353_v42  ;;  %8278 = vmatprep.mubr.bf16.mxu1 %v12353_v42  ;;  %v10481_v42 = vcombine.low %v1327_v14, %v1335_v15  ;;  %v10562_v4 = vcombine.high %v1407_v55, %v1415_v57  ;;  %v10561_v12 = vcombine.low %v1407_v55, %v1415_v57  ;;  %v1438_v15 = vld [vmem:[%s12158_s22 + $0x1530] sm:$0xff] }
 0x548   : > { %v1518_v57 = vld [vmem:[%s12158_s22 + $0x17b0] sm:$0xff] }
 0x549   : > { %8085 = vmatpush1.bf16.msra.mxu0 %v10447_v8  ;;  %8249 = vmatpush1.bf16.msra.mxu1 %v10449_v51  ;;  %v1430_v8 = vld [vmem:[%s12158_s22 + $0x14f0] sm:$0xff]  ;;  %v1423_v51 = vld [vmem:[%s12158_s22 + $0x14b8] sm:$0xff] }
 0x54a   : > { %8086 = vmatprep.subr.bf16.mxu0 %v10464_v10  ;;  %8250 = vmatprep.subr.bf16.mxu1 %v10466_v11  ;;  %v1431_v10 = vld [vmem:[%s12158_s22 + $0x14f8] sm:$0xff]  ;;  %v10559_v11 = vcombine.low %v1406_v50, %v1414_v54  ;;  %v10576_v13 = vcombine.high %v1422_v7, %v1430_v8 }
 0x54b   : > { %v10578_v14 = vcombine.high %v1423_v51, %v1431_v10  ;;  %v10577_v22 = vcombine.low %v1423_v51, %v1431_v10  ;;  %v1534_v10 = vld [vmem:[%s12158_s22 + $0x1830] sm:$0xff] }
 0x54d   : > { %8087 = vmatpush1.bf16.msra.mxu0 %v10463_v52  ;;  %8251 = vmatpush1.bf16.msra.mxu1 %v10465_v17  ;;  %v1446_v52 = vld [vmem:[%s12158_s22 + $0x1570] sm:$0xff]  ;;  %v1439_v17 = vld [vmem:[%s12158_s22 + $0x1538] sm:$0xff] }
 0x54e   : > { %8088 = vmatprep.subr.bf16.mxu0 %v10480_v19  ;;  %8252 = vmatprep.subr.bf16.mxu1 %v10482_v21  ;;  %v1447_v19 = vld [vmem:[%s12158_s22 + $0x1578] sm:$0xff]  ;;  %v10575_v21 = vcombine.low %v1422_v7, %v1430_v8  ;;  %v10592_v20 = vcombine.high %v1438_v15, %v1446_v52 }
 0x54f   : > { %v10594_v23 = vcombine.high %v1439_v17, %v1447_v19  ;;  %v10593_v1 = vcombine.low %v1439_v17, %v1447_v19  ;;  %v1550_v19 = vld [vmem:[%s12158_s22 + $0x18b0] sm:$0xff] }
 0x551   : > { %8089 = vmatpush1.bf16.msra.mxu0 %v10479_v25  ;;  %8253 = vmatpush1.bf16.msra.mxu1 %v10481_v42  ;;  %v1462_v25 = vld [vmem:[%s12158_s22 + $0x15f0] sm:$0xff]  ;;  %v1455_v42 = vld [vmem:[%s12158_s22 + $0x15b8] sm:$0xff] }
 0x552   : > { %8090 = vmatprep.subr.bf16.mxu0 %v10496_v26  ;;  %8254 = vmatprep.subr.bf16.mxu1 %v10498_v27  ;;  %v1463_v26 = vld [vmem:[%s12158_s22 + $0x15f8] sm:$0xff]  ;;  %v10591_v27 = vcombine.low %v1438_v15, %v1446_v52  ;;  %v10608_v28 = vcombine.high %v1454_v24, %v1462_v25 }
 0x553   : > { %v10610_v29 = vcombine.high %v1455_v42, %v1463_v26  ;;  %v10609_v35 = vcombine.low %v1455_v42, %v1463_v26  ;;  %v1566_v26 = vld [vmem:[%s12158_s22 + $0x1930] sm:$0xff] }
 0x555   : > { %8091 = vmatpush1.bf16.msra.mxu0 %v10495_v31  ;;  %8255 = vmatpush1.bf16.msra.mxu1 %v10497_v32  ;;  %v1478_v31 = vld [vmem:[%s12158_s22 + $0x1670] sm:$0xff]  ;;  %v1471_v32 = vld [vmem:[%s12158_s22 + $0x1638] sm:$0xff] }
 0x556   : > { %8092 = vmatprep.subr.bf16.mxu0 %v10512_v33  ;;  %8256 = vmatprep.subr.bf16.mxu1 %v10514_v34  ;;  %v1479_v33 = vld [vmem:[%s12158_s22 + $0x1678] sm:$0xff]  ;;  %v10607_v34 = vcombine.low %v1454_v24, %v1462_v25  ;;  %v10624_v36 = vcombine.high %v1470_v30, %v1478_v31 }
 0x557   : > { %v10626_v37 = vcombine.high %v1471_v32, %v1479_v33  ;;  %v10625_v44 = vcombine.low %v1471_v32, %v1479_v33  ;;  %v1582_v33 = vld [vmem:[%s12158_s22 + $0x19b0] sm:$0xff] }
 0x559   : > { %8093 = vmatpush1.bf16.msra.mxu0 %v10511_v40  ;;  %8257 = vmatpush1.bf16.msra.mxu1 %v10513_v41  ;;  %v1494_v40 = vld [vmem:[%s12158_s22 + $0x16f0] sm:$0xff]  ;;  %v1487_v41 = vld [vmem:[%s12158_s22 + $0x16b8] sm:$0xff] }
 0x55a   : > { %8094 = vmatprep.subr.bf16.mxu0 %v10528_v43  ;;  %8258 = vmatprep.subr.bf16.mxu1 %v10530_v39  ;;  %v1495_v43 = vld [vmem:[%s12158_s22 + $0x16f8] sm:$0xff]  ;;  %v10623_v39 = vcombine.low %v1470_v30, %v1478_v31  ;;  %v10640_v45 = vcombine.high %v1486_v38, %v1494_v40 }
 0x55b   : > { %v10642_v46 = vcombine.high %v1487_v41, %v1495_v43  ;;  %v10641_v50 = vcombine.low %v1487_v41, %v1495_v43  ;;  %v1598_v43 = vld [vmem:[%s12158_s22 + $0x1a30] sm:$0xff] }
 0x55d   : > { %8095 = vmatpush1.bf16.msra.mxu0 %v10527_v48  ;;  %8259 = vmatpush1.bf16.msra.mxu1 %v10529_v49  ;;  %v1510_v48 = vld [vmem:[%s12158_s22 + $0x1770] sm:$0xff]  ;;  %v1503_v49 = vld [vmem:[%s12158_s22 + $0x1738] sm:$0xff] }
 0x55e   : > { %8096 = vmatprep.subr.bf16.mxu0 %v10544_v16  ;;  %8260 = vmatprep.subr.bf16.mxu1 %v10546_v53  ;;  %v1511_v16 = vld [vmem:[%s12158_s22 + $0x1778] sm:$0xff]  ;;  %v10639_v53 = vcombine.low %v1486_v38, %v1494_v40  ;;  %v10656_v54 = vcombine.high %v1502_v47, %v1510_v48 }
 0x55f   : > { %v10658_v55 = vcombine.high %v1503_v49, %v1511_v16  ;;  %v10657_v7 = vcombine.low %v1503_v49, %v1511_v16  ;;  %v1614_v16 = vld [vmem:[%s12158_s22 + $0x1ab0] sm:$0xff] }
 0x561   : > { %8097 = vmatpush1.bf16.msra.mxu0 %v10543_v58  ;;  %8261 = vmatpush1.bf16.msra.mxu1 %v10545_v59  ;;  %v1526_v58 = vld [vmem:[%s12158_s22 + $0x17f0] sm:$0xff]  ;;  %v1519_v59 = vld [vmem:[%s12158_s22 + $0x17b8] sm:$0xff] }
 0x562   : > { %8098 = vmatprep.subr.bf16.mxu0 %v10560_v63  ;;  %8262 = vmatprep.subr.bf16.mxu1 %v10562_v4  ;;  %v1527_v63 = vld [vmem:[%s12158_s22 + $0x17f8] sm:$0xff]  ;;  %v10655_v4 = vcombine.low %v1502_v47, %v1510_v48  ;;  %v10672_v8 = vcombine.high %v1518_v57, %v1526_v58 }
 0x563   : > { %v10674_v51 = vcombine.high %v1519_v59, %v1527_v63  ;;  %v10673_v15 = vcombine.low %v1519_v59, %v1527_v63 }
 0x565   : > { %8099 = vmatpush1.bf16.msra.mxu0 %v10559_v11  ;;  %8263 = vmatpush1.bf16.msra.mxu1 %v10561_v12  ;;  %v1542_v11 = vld [vmem:[%s12158_s22 + $0x1870] sm:$0xff]  ;;  %v1535_v12 = vld [vmem:[%s12158_s22 + $0x1838] sm:$0xff] }
 0x566   : > { %8100 = vmatprep.subr.bf16.mxu0 %v10576_v13  ;;  %8264 = vmatprep.subr.bf16.mxu1 %v10578_v14  ;;  %v1543_v13 = vld [vmem:[%s12158_s22 + $0x1878] sm:$0xff]  ;;  %v10671_v14 = vcombine.low %v1518_v57, %v1526_v58  ;;  %v10688_v52 = vcombine.high %v1534_v10, %v1542_v11 }
 0x567   : > { %v10690_v17 = vcombine.high %v1535_v12, %v1543_v13  ;;  %v10689_v24 = vcombine.low %v1535_v12, %v1543_v13  ;;  %v13289_v57 = vld [vmem:[%s349_s9 + $0x8] sm:$0xff] }
 0x568   : > { %v1631_v13 = vld [vmem:[%s12158_s22 + $0x1b38] sm:$0xff] }
 0x569   : > { %8101 = vmatpush1.bf16.msra.mxu0 %v10575_v21  ;;  %8265 = vmatpush1.bf16.msra.mxu1 %v10577_v22  ;;  %v1558_v21 = vld [vmem:[%s12158_s22 + $0x18f0] sm:$0xff]  ;;  %v1551_v22 = vld [vmem:[%s12158_s22 + $0x18b8] sm:$0xff] }
 0x56a   : > { %8102 = vmatprep.subr.bf16.mxu0 %v10592_v20  ;;  %8266 = vmatprep.subr.bf16.mxu1 %v10594_v23  ;;  %v1559_v20 = vld [vmem:[%s12158_s22 + $0x18f8] sm:$0xff]  ;;  %v10687_v23 = vcombine.low %v1534_v10, %v1542_v11  ;;  %v10704_v25 = vcombine.high %v1550_v19, %v1558_v21  ;;  %v1638_v10 = vld [vmem:[%s12158_s22 + $0x1b70] sm:$0xff] }
 0x56b   : > { %v10706_v42 = vcombine.high %v1551_v22, %v1559_v20  ;;  %v10705_v30 = vcombine.low %v1551_v22, %v1559_v20 }
 0x56d   : > { %8103 = vmatpush1.bf16.msra.mxu0 %v10591_v27  ;;  %8267 = vmatpush1.bf16.msra.mxu1 %v10593_v1  ;;  %v1574_v27 = vld [vmem:[%s12158_s22 + $0x1970] sm:$0xff]  ;;  %v1567_v1 = vld [vmem:[%s12158_s22 + $0x1938] sm:$0xff] }
 0x56e   : > { %8104 = vmatprep.subr.bf16.mxu0 %v10608_v28  ;;  %8268 = vmatprep.subr.bf16.mxu1 %v10610_v29  ;;  %v1575_v28 = vld [vmem:[%s12158_s22 + $0x1978] sm:$0xff]  ;;  %v10703_v29 = vcombine.low %v1550_v19, %v1558_v21  ;;  %v10720_v31 = vcombine.high %v1566_v26, %v1574_v27 }
 0x56f   : > { %v10722_v32 = vcombine.high %v1567_v1, %v1575_v28  ;;  %v10721_v38 = vcombine.low %v1567_v1, %v1575_v28  ;;  %v1647_v1 = vld [vmem:[%s12158_s22 + $0x1bb8] sm:$0xff] }
 0x570   : > { %v1655_v28 = vld [vmem:[%s12158_s22 + $0x1bf8] sm:$0xff] }
 0x571   : > { %8105 = vmatpush1.bf16.msra.mxu0 %v10607_v34  ;;  %8269 = vmatpush1.bf16.msra.mxu1 %v10609_v35  ;;  %v1590_v34 = vld [vmem:[%s12158_s22 + $0x19f0] sm:$0xff]  ;;  %v1583_v35 = vld [vmem:[%s12158_s22 + $0x19b8] sm:$0xff] }
 0x572   : > { %8106 = vmatprep.subr.bf16.mxu0 %v10624_v36  ;;  %8270 = vmatprep.subr.bf16.mxu1 %v10626_v37  ;;  %v1591_v36 = vld [vmem:[%s12158_s22 + $0x19f8] sm:$0xff]  ;;  %v1788_v37 = vlaneseq  ;;  %v10736_v40 = vcombine.high %v1582_v33, %v1590_v34 }
 0x573   : > { %v10738_v41 = vcombine.high %v1583_v35, %v1591_v36  ;;  %v10737_v47 = vcombine.low %v1583_v35, %v1591_v36 }
 0x575   : > { %8107 = vmatpush1.bf16.msra.mxu0 %v10623_v39  ;;  %8271 = vmatpush1.bf16.msra.mxu1 %v10625_v44  ;;  %v1606_v39 = vld [vmem:[%s12158_s22 + $0x1a70] sm:$0xff]  ;;  %v1599_v44 = vld [vmem:[%s12158_s22 + $0x1a38] sm:$0xff] }
 0x576   : > { %8108 = vmatprep.subr.bf16.mxu0 %v10640_v45  ;;  %8272 = vmatprep.subr.bf16.mxu1 %v10642_v46  ;;  %v1607_v45 = vld [vmem:[%s12158_s22 + $0x1a78] sm:$0xff]  ;;  %v13281_v46 = vshrl.u32 %v1788_v37, 7  ;;  %v10752_v48 = vcombine.high %v1598_v43, %v1606_v39 }
 0x577   : > { %v10754_v49 = vcombine.high %v1599_v44, %v1607_v45  ;;  %v10753_v59 = vcombine.low %v1599_v44, %v1607_v45  ;;  %v1671_v44 = vld [vmem:[%s12158_s22 + $0x1c78] sm:$0xff] }
 0x578   : > { %v1790_v58 = vsub.s32 0, %v13281_v46  ;;  %v1802_v11 = vsub.s32 3, %v13281_v46 }
 0x579   : > { %8109 = vmatpush1.bf16.msra.mxu0 %v10639_v53  ;;  %8273 = vmatpush1.bf16.msra.mxu1 %v10641_v50  ;;  %v1622_v53 = vld [vmem:[%s12158_s22 + $0x1af0] sm:$0xff]  ;;  %v1615_v50 = vld [vmem:[%s12158_s22 + $0x1ab8] sm:$0xff] }
 0x57a   : > { %8110 = vmatprep.subr.bf16.mxu0 %v10656_v54  ;;  %8274 = vmatprep.subr.bf16.mxu1 %v10658_v55  ;;  %v1623_v54 = vld [vmem:[%s12158_s22 + $0x1af8] sm:$0xff]  ;;  %v10751_v55 = vcombine.low %v1598_v43, %v1606_v39  ;;  %v10768_v63 = vcombine.high %v1614_v16, %v1622_v53  ;;  %v1823_v12 = vrot.slane %v13289_v57, %v1790_v58  ;;  %v1670_v43 = vld [vmem:[%s12158_s22 + $0x1c70] sm:$0xff] }
 0x57b   : > { %v1835_v19 = vrot.slane %v13289_v57, %v1802_v11  ;;  %v10769_v21 = vcombine.low %v1615_v50, %v1623_v54  ;;  %v1663_v39 = vld [vmem:[%s12158_s22 + $0x1c38] sm:$0xff] }
 0x57d   : > { %8111 = vmatpush1.bf16.msra.mxu0 %v10655_v4  ;;  %8275 = vmatpush1.bf16.msra.mxu1 %v10657_v7  ;;  %v1798_v4 = vsub.s32 2, %v13281_v46  ;;  %v1794_v7 = vsub.s32 1, %v13281_v46 }
 0x57e   : > { %8112 = vmatprep.subr.bf16.mxu0 %v10672_v8  ;;  %8276 = vmatprep.subr.bf16.mxu1 %v10674_v51  ;;  %v10770_v8 = vcombine.high %v1615_v50, %v1623_v54  ;;  %v1630_v51 = vld [vmem:[%s12158_s22 + $0x1b30] sm:$0xff]  ;;  %v1687_v50 = vld [vmem:[%s12158_s22 + $0x1cf8] sm:$0xff] }
 0x57f   : > { %v10784_v22 = vcombine.high %v1630_v51, %v1638_v10 }
 0x581   : > { %8113 = vmatpush1.bf16.msra.mxu0 %v10671_v14  ;;  %8277 = vmatpush1.bf16.msra.mxu1 %v10673_v15  ;;  %v1639_v14 = vld [vmem:[%s12158_s22 + $0x1b78] sm:$0xff]  ;;  %v1831_v15 = vrot.slane %v13289_v57, %v1798_v4 }
 0x582   : > { %8123 = vmatprep.subr.bf16.mxu0 %v10688_v52  ;;  %8287 = vmatprep.subr.bf16.mxu1 %v10690_v17  ;;  %v1827_v52 = vrot.slane %v13289_v57, %v1794_v7  ;;  %v10767_v17 = vcombine.low %v1614_v16, %v1622_v53  ;;  %v1686_v16 = vld [vmem:[%s12158_s22 + $0x1cf0] sm:$0xff]  ;;  %v1679_v53 = vld [vmem:[%s12158_s22 + $0x1cb8] sm:$0xff] }
 0x584   : > { %8115 = vmatmul.mubr.bf16.vlgmr.msra.gmra.mrb[12].mxu0 %v12423_v2  ;;  %8279 = vmatmul.mubr.bf16.vlgmr.msra.gmra.mrb[12].mxu1 %v12423_v2  ;;  %v10719_v2 = vcombine.low %v1566_v26, %v1574_v27 }
 0x585   : > { %8124 = vmatpush1.bf16.msra.mxu0 %v10687_v23  ;;  %8288 = vmatpush1.bf16.msra.mxu1 %v10689_v24  ;;  %v10786_v23 = vcombine.high %v1631_v13, %v1639_v14  ;;  %v1646_v24 = vld [vmem:[%s12158_s22 + $0x1bb0] sm:$0xff] }
 0x586   : > { %8125 = vmatprep.subr.bf16.mxu0 %v10704_v25  ;;  %8289 = vmatprep.subr.bf16.mxu1 %v10706_v42  ;;  %v1654_v25 = vld [vmem:[%s12158_s22 + $0x1bf0] sm:$0xff] }
 0x587   : > { %8155 = vmatprep.mubr.bf16.mxu0 %v12429_v9  ;;  %8319 = vmatprep.mubr.bf16.mxu1 %v12429_v9  ;;  %v10735_v9 = vcombine.low %v1582_v33, %v1590_v34  ;;  %v10783_v33 = vcombine.low %v1630_v51, %v1638_v10  ;;  %v10800_v37 = vcombine.high %v1646_v24, %v1654_v25  ;;  %v1702_v51 = vld [vmem:[%s12158_s22 + $0x1d70] sm:$0xff]  ;;  %v1695_v10 = vld [vmem:[%s12158_s22 + $0x1d38] sm:$0xff] }
 0x588   : > { %v10799_v45 = vcombine.low %v1646_v24, %v1654_v25 }
 0x589   : > { %8126 = vmatpush1.bf16.msra.mxu0 %v10703_v29  ;;  %8290 = vmatpush1.bf16.msra.mxu1 %v10705_v30 }
 0x58a   : > { %8127 = vmatprep.subr.bf16.mxu0 %v10720_v31  ;;  %8291 = vmatprep.subr.bf16.mxu1 %v10722_v32 }
 0x58d   : > { %8128 = vmatpush1.bf16.msra.mxu0 %v10719_v2  ;;  %8292 = vmatpush1.bf16.msra.mxu1 %v10721_v38  ;;  %v10785_v2 = vcombine.low %v1631_v13, %v1639_v14  ;;  %v10833_v14 = vcombine.low %v1679_v53, %v1687_v50 }
 0x58e   : > { %8129 = vmatprep.subr.bf16.mxu0 %v10736_v40  ;;  %8293 = vmatprep.subr.bf16.mxu1 %v10738_v41  ;;  %v10802_v40 = vcombine.high %v1647_v1, %v1655_v28  ;;  %v1662_v41 = vld [vmem:[%s12158_s22 + $0x1c30] sm:$0xff] }
 0x58f   : > { %v10815_v54 = vcombine.low %v1662_v41, %v1670_v43 }
 0x591   : > { %8130 = vmatpush1.bf16.msra.mxu0 %v10735_v9  ;;  %8294 = vmatpush1.bf16.msra.mxu1 %v10737_v47  ;;  %v10801_v9 = vcombine.low %v1647_v1, %v1655_v28  ;;  %v10816_v47 = vcombine.high %v1662_v41, %v1670_v43  ;;  %v13343_v1 = vld [vmem:[%s349_s9] sm:$0xff]  ;;  %v1727_v28 = vld [vmem:[%s12158_s22 + $0x1e38] sm:$0xff] }
 0x592   : > { %8131 = vmatprep.subr.bf16.mxu0 %v10752_v48  ;;  %8295 = vmatprep.subr.bf16.mxu1 %v10754_v49  ;;  %v10818_v48 = vcombine.high %v1663_v39, %v1671_v44  ;;  %v1678_v49 = vld [vmem:[%s12158_s22 + $0x1cb0] sm:$0xff]  ;;  %v1743_v41 = vld [vmem:[%s12158_s22 + $0x1eb8] sm:$0xff] }
 0x593   : > { %v10831_v13 = vcombine.low %v1678_v49, %v1686_v16  ;;  %v1751_v43 = vld [vmem:[%s12158_s22 + $0x1ef8] sm:$0xff] }
 0x595   : > { %8132 = vmatpush1.bf16.msra.mxu0 %v10751_v55  ;;  %8296 = vmatpush1.bf16.msra.mxu1 %v10753_v59  ;;  %v10817_v55 = vcombine.low %v1663_v39, %v1671_v44  ;;  %v10832_v59 = vcombine.high %v1678_v49, %v1686_v16  ;;  %v1759_v49 = vld [vmem:[%s12158_s22 + $0x1f38] sm:$0xff] }
 0x596   : > { %8133 = vmatprep.subr.bf16.mxu0 %v10768_v63  ;;  %8297 = vmatprep.subr.bf16.mxu1 %v10770_v8  ;;  %v10834_v63 = vcombine.high %v1679_v53, %v1687_v50  ;;  %v1694_v8 = vld [vmem:[%s12158_s22 + $0x1d30] sm:$0xff]  ;;  %v1767_v16 = vld [vmem:[%s12158_s22 + $0x1f78] sm:$0xff]  ;;  %v10897_v50 = vcombine.low %v1743_v41, %v1751_v43 }
 0x597   : > { %v7829_v20 = vpop.f32.mrb[8].mxu0  ;;  %v7993_v26 = vpop.f32.mrb[8].mxu1 }
 0x598   : > { %v13313_v42 = vadd.f32 %v7829_v20, %v1823_v12  ;;  %v7831_v27 = vpop.f32.mrb[9].mxu0  ;;  %v13317_v29 = vadd.f32 %v7993_v26, %v1831_v15  ;;  %v7995_v31 = vpop.f32.mrb[9].mxu1  ;;  %v1703_v12 = vld [vmem:[%s12158_s22 + $0x1d78] sm:$0xff]  ;;  %v10848_v15 = vcombine.high %v1694_v8, %v1702_v51  ;;  %v10847_v20 = vcombine.low %v1694_v8, %v1702_v51  ;;  %v1726_v26 = vld [vmem:[%s12158_s22 + $0x1e30] sm:$0xff] }
 0x599   : > { %v13319_v30 = vadd.f32 %v7831_v27, %v1827_v52  ;;  %v7833_v32 = vpop.f32.mrb[10].mxu0  ;;  %8134 = vmatpush1.bf16.msra.mxu0 %v10767_v17  ;;  %v13321_v34 = vadd.f32 %v7995_v31, %v1835_v19  ;;  %v7997_v35 = vpop.f32.mrb[10].mxu1  ;;  %8298 = vmatpush1.bf16.msra.mxu1 %v10769_v21  ;;  %v10850_v52 = vcombine.high %v1695_v10, %v1703_v12  ;;  %v1710_v17 = vld [vmem:[%s12158_s22 + $0x1db0] sm:$0xff]  ;;  %v1711_v21 = vld [vmem:[%s12158_s22 + $0x1db8] sm:$0xff] }
 0x59a   : > { %v7834_v36 = vpop.f32.mrb[11].mxu0  ;;  %8135 = vmatprep.subr.bf16.mxu0 %v10784_v22  ;;  %v7998_v38 = vpop.f32.mrb[11].mxu1  ;;  %8299 = vmatprep.subr.bf16.mxu1 %v10786_v23  ;;  %v1718_v19 = vld [vmem:[%s12158_s22 + $0x1df0] sm:$0xff]  ;;  %v1719_v22 = vld [vmem:[%s12158_s22 + $0x1df8] sm:$0xff]  ;;  %v10849_v23 = vcombine.low %v1695_v10, %v1703_v12  ;;  %v10913_v51 = vcombine.low %v1759_v49, %v1767_v16 }
 0x59b   : > { %v10864_v24 = vcombine.high %v1710_v17, %v1718_v19  ;;  %v10866_v25 = vcombine.high %v1711_v21, %v1719_v22  ;;  %v1734_v27 = vld [vmem:[%s12158_s22 + $0x1e70] sm:$0xff]  ;;  %v1735_v31 = vld [vmem:[%s12158_s22 + $0x1e78] sm:$0xff]  ;;  %v10863_v32 = vcombine.low %v1710_v17, %v1718_v19  ;;  %v1795_v36 = vrot.slane %v13343_v1, %v1794_v7 }
 0x59c   : > { %v10880_v35 = vcombine.high %v1726_v26, %v1734_v27  ;;  %v1750_v38 = vld [vmem:[%s12158_s22 + $0x1ef0] sm:$0xff]  ;;  %v10879_v39 = vcombine.low %v1726_v26, %v1734_v27  ;;  %v10881_v44 = vcombine.low %v1727_v28, %v1735_v31  ;;  %v1783_v8 = vld [vmem:[%s12158_s22 + $0x1ff8] sm:$0xff] }
 0x59d   : > { %8136 = vmatpush1.bf16.msra.mxu0 %v10783_v33  ;;  %8300 = vmatpush1.bf16.msra.mxu1 %v10785_v2  ;;  %v10865_v33 = vcombine.low %v1711_v21, %v1719_v22  ;;  %v10882_v2 = vcombine.high %v1727_v28, %v1735_v31  ;;  %v11484_v19 = vld [vmem:[%s12175_s29] sm:$0xff]   ;;  %v11488_v26 = vld [vmem:[%s12175_s29 + $0x8] sm:$0xff]   ;;  %v11490_v28 = vld [vmem:[%s12175_s29 + $0x50] sm:$0xff]  }
 0x59e   : > { %8137 = vmatprep.subr.bf16.mxu0 %v10800_v37  ;;  %8301 = vmatprep.subr.bf16.mxu1 %v10802_v40  ;;  %v1742_v37 = vld [vmem:[%s12158_s22 + $0x1eb0] sm:$0xff]  ;;  %v1803_v40 = vrot.slane %v13343_v1, %v1802_v11  ;;  %v11489_v27 = vld [vmem:[%s12175_s29 + $0x88] sm:$0xff]   ;;  %v11491_v31 = vld [vmem:[%s12175_s29 + $0xd0] sm:$0xff]  }
 0x59f   : > { %v10896_v7 = vcombine.high %v1742_v37, %v1750_v38  ;;  %v10895_v53 = vcombine.low %v1742_v37, %v1750_v38  ;;  %v11485_v22 = vld [vmem:[%s12175_s29 + $0x80] sm:$0xff]   ;;  %v1791_v37 = vrot.slane %v13343_v1, %v1790_v58  ;;  %v11496_v38 = vld [vmem:[%s12175_s29 + $0x18] sm:$0xff]  }
 0x5a0   : > { %v11250_v11 = vadd.f32 %v12739_v6, %v1803_v40  ;;  %v1799_v40 = vrot.slane %v13343_v1, %v1798_v4  ;;  %v11500_v4 = vld [vmem:[%s12175_s29 + $0x20] sm:$0xff]  }
 0x5a1   : > { %8138 = vmatpush1.bf16.msra.mxu0 %v10799_v45  ;;  %8302 = vmatpush1.bf16.msra.mxu1 %v10801_v9  ;;  %v11248_v45 = vadd.f32 %v12735_v3, %v1795_v36  ;;  %v10898_v9 = vcombine.high %v1743_v41, %v1751_v43  ;;  %v10914_v3 = vcombine.high %v1759_v49, %v1767_v16  ;;  %v11495_v36 = vld [vmem:[%s12175_s29 + $0xd8] sm:$0xff]   ;;  %v11498_v43 = vld [vmem:[%s12175_s29 + $0x60] sm:$0xff]   ;;  %v11506_v16 = vld [vmem:[%s12175_s29 + $0x70] sm:$0xff]  }
 0x5a2   : > { %8139 = vmatprep.subr.bf16.mxu0 %v10816_v47  ;;  %8303 = vmatprep.subr.bf16.mxu1 %v10818_v48  ;;  %v1758_v47 = vld [vmem:[%s12158_s22 + $0x1f30] sm:$0xff]  ;;  %v11497_v41 = vld [vmem:[%s12175_s29 + $0x98] sm:$0xff]  }
 0x5a3   : > { %v1766_v48 = vld [vmem:[%s12158_s22 + $0x1f70] sm:$0xff]  ;;  %11610 = vtanh.f32 %v11248_v45  ;;  %v11249_v45 = vadd.f32 %v12733_v0, %v1799_v40  ;;  %v11505_v0 = vld [vmem:[%s12175_s29 + $0xa8] sm:$0xff]  }
 0x5a4   : > { %11612 = vtanh.f32 %v11250_v11  ;;  %v10911_v6 = vcombine.low %v1758_v47, %v1766_v48  ;;  %v11503_v11 = vld [vmem:[%s12175_s29 + $0xe8] sm:$0xff]   ;;  %v11531_v40 = vld [vmem:[%s12175_s29 + $0x1e0] sm:$0xff]  }
 0x5a5   : > { %8140 = vmatpush1.bf16.msra.mxu0 %v10815_v54  ;;  %8304 = vmatpush1.bf16.msra.mxu1 %v10817_v55  ;;  %v10912_v54 = vcombine.high %v1758_v47, %v1766_v48  ;;  %v1774_v55 = vld [vmem:[%s12158_s22 + $0x1fb0] sm:$0xff]  ;;  %v11502_v47 = vld [vmem:[%s12175_s29 + $0x68] sm:$0xff]  }
 0x5a6   : > { %8141 = vmatprep.subr.bf16.mxu0 %v10832_v59  ;;  %8305 = vmatprep.subr.bf16.mxu1 %v10834_v63  ;;  %v1782_v59 = vld [vmem:[%s12158_s22 + $0x1ff0] sm:$0xff]  ;;  %v1775_v63 = vld [vmem:[%s12158_s22 + $0x1fb8] sm:$0xff] }
 0x5a7   : > { %v10928_v10 = vcombine.high %v1774_v55, %v1782_v59  ;;  %v10930_v12 = vcombine.high %v1775_v63, %v1783_v8 }
 0x5a9   : > { %8142 = vmatpush1.bf16.msra.mxu0 %v10831_v13  ;;  %8306 = vmatpush1.bf16.msra.mxu1 %v10833_v14  ;;  %v10927_v13 = vcombine.low %v1774_v55, %v1782_v59  ;;  %v10929_v14 = vcombine.low %v1775_v63, %v1783_v8  ;;  %v11513_v55 = vld [vmem:[%s12175_s29 + $0xb8] sm:$0xff]   ;;  %v11514_v59 = vld [vmem:[%s12175_s29 + $0x140] sm:$0xff]  }
 0x5aa   : > { %8143 = vmatprep.subr.bf16.mxu0 %v10848_v15  ;;  %8307 = vmatprep.subr.bf16.mxu1 %v10850_v52  ;;  %v11482_v15 = vld [vmem:[%s12175_s29 + $0x40] sm:$0xff]  }
 0x5ab   : > { %v11483_v52 = vld [vmem:[%s12175_s29 + $0xc0] sm:$0xff]  }
 0x5ac   : > { %v11515_v8 = vld [vmem:[%s12175_s29 + $0x1c0] sm:$0xff]  }
 0x5ad   : > { %8144 = vmatpush1.bf16.msra.mxu0 %v10847_v20  ;;  %8308 = vmatpush1.bf16.msra.mxu1 %v10849_v23  ;;  %v11611_v17 = vpop.eup %11610  ;;  %v11486_v20 = vld [vmem:[%s12175_s29 + $0x48] sm:$0xff]  }
 0x5ae   : > { %8145 = vmatprep.subr.bf16.mxu0 %v10864_v24  ;;  %8309 = vmatprep.subr.bf16.mxu1 %v10866_v25  ;;  %v11613_v21 = vpop.eup %11612  ;;  %v8346_v23 = vpack.c.bf16 %v11611_v17, %v11611_v17  ;;  %v11487_v24 = vld [vmem:[%s12175_s29 + $0xc8] sm:$0xff]  }
 0x5af   : > { %v8348_v25 = vpack.c.bf16 %v11613_v21, %v11613_v21 }
 0x5b1   : > { %8146 = vmatpush1.bf16.msra.mxu0 %v10863_v32  ;;  %8310 = vmatpush1.bf16.msra.mxu1 %v10865_v33  ;;  %v11492_v32 = vld [vmem:[%s12175_s29 + $0x10] sm:$0xff]   ;;  %v11494_v33 = vld [vmem:[%s12175_s29 + $0x58] sm:$0xff]  }
 0x5b2   : > { %8147 = vmatprep.subr.bf16.mxu0 %v10880_v35  ;;  %8311 = vmatprep.subr.bf16.mxu1 %v10882_v2  ;;  %v1810_v35 = vsub.s32 5, %v13281_v46  ;;  %v1818_v2 = vsub.s32 7, %v13281_v46 }
 0x5b4   : > { %v1819_v58 = vrot.slane %v13343_v1, %v1818_v2 }
 0x5b5   : > { %8148 = vmatpush1.bf16.msra.mxu0 %v10879_v39  ;;  %8312 = vmatpush1.bf16.msra.mxu1 %v10881_v44  ;;  %v1811_v39 = vrot.slane %v13343_v1, %v1810_v35  ;;  %v11499_v44 = vld [vmem:[%s12175_s29 + $0xe0] sm:$0xff]  }
 0x5b6   : > { %8149 = vmatprep.subr.bf16.mxu0 %v10896_v7  ;;  %8313 = vmatprep.subr.bf16.mxu1 %v10898_v9  ;;  %v11247_v7 = vadd.f32 %v12729_v60, %v1791_v37  ;;  %v11501_v9 = vld [vmem:[%s12175_s29 + $0xa0] sm:$0xff]   ;;  %v11254_v49 = vadd.f32 %v13019_v5, %v1819_v58  ;;  %v11504_v60 = vld [vmem:[%s12175_s29 + $0x28] sm:$0xff]   ;;  %v11508_v5 = vld [vmem:[%s12175_s29 + $0x30] sm:$0xff]  }
 0x5b7   : > { %v11252_v48 = vadd.f32 %v13015_v62, %v1811_v39  ;;  %v11507_v62 = vld [vmem:[%s12175_s29 + $0xf0] sm:$0xff]   ;;  %v11529_v37 = vld [vmem:[%s12175_s29 + $0x198] sm:$0xff]   ;;  %v11535_v58 = vld [vmem:[%s12175_s29 + $0x1e8] sm:$0xff]  }
 0x5b8   : > { %11614 = vtanh.f32 %v11247_v7  ;;  %v11536_v7 = vld [vmem:[%s12175_s29 + $0x128] sm:$0xff]  }
 0x5b9   : > { %8150 = vmatpush1.bf16.msra.mxu0 %v10895_v53  ;;  %8314 = vmatpush1.bf16.msra.mxu1 %v10897_v50  ;;  %11616 = vtanh.f32 %v11249_v45  ;;  %v11509_v53 = vld [vmem:[%s12175_s29 + $0xb0] sm:$0xff]   ;;  %v11510_v50 = vld [vmem:[%s12175_s29 + $0x78] sm:$0xff]  }
 0x5ba   : > { %8151 = vmatprep.subr.bf16.mxu0 %v10912_v54  ;;  %8315 = vmatprep.subr.bf16.mxu1 %v10914_v3  ;;  %11618 = vtanh.f32 %v11252_v48  ;;  %v11511_v54 = vld [vmem:[%s12175_s29 + $0xf8] sm:$0xff]   ;;  %v11540_v45 = vld [vmem:[%s12175_s29 + $0x130] sm:$0xff]  }
 0x5bb   : > { %11620 = vtanh.f32 %v11254_v49  ;;  %v11512_v3 = vld [vmem:[%s12175_s29 + $0x38] sm:$0xff]   ;;  %v11546_v49 = vld [vmem:[%s12175_s29 + $0x240] sm:$0xff]  }
 0x5bc   : > { %v11543_v48 = vld [vmem:[%s12175_s29 + $0x1f8] sm:$0xff]  }
 0x5bd   : > { %8152 = vmatpush1.bf16.msra.mxu0 %v10911_v6  ;;  %8316 = vmatpush1.bf16.msra.mxu1 %v10913_v51 }
 0x5be   : > { %8153 = vmatprep.subr.bf16.mxu0 %v10928_v10  ;;  %8317 = vmatprep.subr.bf16.mxu1 %v10930_v12  ;;  %v11516_v10 = vld [vmem:[%s12175_s29 + $0x100] sm:$0xff]  }
 0x5c1   : > { %8154 = vmatpush1.bf16.msra.mxu0 %v10927_v13  ;;  %8318 = vmatpush1.bf16.msra.mxu1 %v10929_v14  ;;  %v11517_v14 = vld [vmem:[%s12175_s29 + $0x180] sm:$0xff]  }
 0x5c2   : > { %11071 = vmatprep.subr.bf16.mxu0 %v11482_v15  ;;  %11093 = vmatprep.subr.bf16.mxu1 %v11483_v52  ;;  %v11615_v63 = vpop.eup %11614  ;;  %v11518_v52 = vld [vmem:[%s12175_s29 + $0x148] sm:$0xff]  }
 0x5c3   : > { %v11617_v6 = vpop.eup %11616  ;;  %v8345_v13 = vpack.c.bf16 %v11615_v63, %v11615_v63 }
 0x5c4   : > { %8156 = vmatmul.mubr.bf16.vlgmr.msra.gmra.mrb[12].mxu0 %v12497_v18  ;;  %8320 = vmatmul.mubr.bf16.vlgmr.msra.gmra.mrb[12].mxu1 %v12497_v18  ;;  %v11493_v18 = vld [vmem:[%s12175_s29 + $0x90] sm:$0xff]   ;;  %v11619_v51 = vpop.eup %11618  ;;  %v8347_v15 = vpack.c.bf16 %v11617_v6, %v11617_v6  ;;  %v11553_v6 = vld [vmem:[%s12175_s29 + $0x288] sm:$0xff]  }
 0x5c5   : > { %11072 = vmatpush3.bf16.msra.mxu0 %v11484_v19  ;;  %9417 = vmatprep.mubr.bf16.mxu0 %v8346_v23  ;;  %v11621_v12 = vpop.eup %11620  ;;  %v8350_v17 = vpack.c.bf16 %v11619_v51, %v11619_v51  ;;  %v11519_v19 = vld [vmem:[%s12175_s29 + $0x1c8] sm:$0xff]   ;;  %v11522_v23 = vld [vmem:[%s12175_s29 + $0x150] sm:$0xff]  }
 0x5c6   : > { %11094 = vmatpush3.bf16.msra.mxu1 %v11485_v22  ;;  %9457 = vmatprep.mubr.bf16.mxu1 %v8348_v25  ;;  %v8352_v21 = vpack.c.bf16 %v11621_v12, %v11621_v12  ;;  %v11520_v22 = vld [vmem:[%s12175_s29 + $0x108] sm:$0xff]   ;;  %v1806_v25 = vsub.s32 4, %v13281_v46  ;;  %v11554_v51 = vld [vmem:[%s12175_s29 + $0x250] sm:$0xff]  }
 0x5c7   : > { %11073 = vmatprep.subr.bf16.mxu0 %v11486_v20  ;;  %11095 = vmatprep.subr.bf16.mxu1 %v11487_v24  ;;  %v11521_v20 = vld [vmem:[%s12175_s29 + $0x188] sm:$0xff]   ;;  %v11523_v24 = vld [vmem:[%s12175_s29 + $0x1d0] sm:$0xff]  }
 0x5c8   : > { %v11556_v12 = vld [vmem:[%s12175_s29 + $0x210] sm:$0xff]  }
 0x5c9   : > { %11074 = vmatpush3.bf16.msra.mxu0 %v11488_v26  ;;  %v11524_v26 = vld [vmem:[%s12175_s29 + $0x110] sm:$0xff]  }
 0x5ca   : > { %11096 = vmatpush3.bf16.msra.mxu1 %v11489_v27  ;;  %11075 = vmatprep.subr.bf16.mxu0 %v11490_v28  ;;  %v1814_v27 = vsub.s32 6, %v13281_v46  ;;  %v11525_v28 = vld [vmem:[%s12175_s29 + $0x190] sm:$0xff]  }
 0x5cb   : > { %11097 = vmatprep.subr.bf16.mxu1 %v11491_v31  ;;  %v11526_v31 = vld [vmem:[%s12175_s29 + $0x158] sm:$0xff]  }
 0x5cd   : > { %11076 = vmatpush3.bf16.msra.mxu0 %v11492_v32  ;;  %v11527_v32 = vld [vmem:[%s12175_s29 + $0x1d8] sm:$0xff]  }
 0x5ce   : > { %11098 = vmatpush3.bf16.msra.mxu1 %v11493_v18  ;;  %11077 = vmatprep.subr.bf16.mxu0 %v11494_v33  ;;  %v1807_v18 = vrot.slane %v13343_v1, %v1806_v25  ;;  %v11528_v33 = vld [vmem:[%s12175_s29 + $0x118] sm:$0xff]  }
 0x5cf   : > { %11099 = vmatprep.subr.bf16.mxu1 %v11495_v36  ;;  %v1815_v36 = vrot.slane %v13343_v1, %v1814_v27  ;;  %v11533_v1 = vld [vmem:[%s12175_s29 + $0x1a0] sm:$0xff]  }
 0x5d1   : > { %11078 = vmatpush3.bf16.msra.mxu0 %v11496_v38  ;;  %v11530_v38 = vld [vmem:[%s12175_s29 + $0x160] sm:$0xff]   ;;  %v11253_v39 = vadd.f32 %v13013_v61, %v1815_v36  ;;  %v11538_v61 = vld [vmem:[%s12175_s29 + $0x170] sm:$0xff]   ;;  %v11575_v36 = vld [vmem:[%s12175_s29 + $0x2f8] sm:$0xff]  }
 0x5d2   : > { %11100 = vmatpush3.bf16.msra.mxu1 %v11497_v41  ;;  %11079 = vmatprep.subr.bf16.mxu0 %v11498_v43  ;;  %v11251_v41 = vadd.f32 %v13009_v56, %v1807_v18  ;;  %v11532_v43 = vld [vmem:[%s12175_s29 + $0x120] sm:$0xff]   ;;  %v11537_v56 = vld [vmem:[%s12175_s29 + $0x1a8] sm:$0xff]   ;;  %v11572_v18 = vld [vmem:[%s12175_s29 + $0x230] sm:$0xff]  }
 0x5d3   : > { %11101 = vmatprep.subr.bf16.mxu1 %v11499_v44  ;;  %v11534_v44 = vld [vmem:[%s12175_s29 + $0x168] sm:$0xff]  }
 0x5d4   : > { %11622 = vtanh.f32 %v11251_v41  ;;  %v11579_v41 = vld [vmem:[%s12175_s29 + $0x3c0] sm:$0xff]  }
 0x5d5   : > { %11080 = vmatpush3.bf16.msra.mxu0 %v11500_v4  ;;  %11624 = vtanh.f32 %v11253_v39  ;;  %v11539_v4 = vld [vmem:[%s12175_s29 + $0x1f0] sm:$0xff]   ;;  %v11580_v39 = vld [vmem:[%s12175_s29 + $0x300] sm:$0xff]  }
 0x5d6   : > { %11102 = vmatpush3.bf16.msra.mxu1 %v11501_v9  ;;  %11081 = vmatprep.subr.bf16.mxu0 %v11502_v47  ;;  %11626 = vtanh.f32 %v13319_v30  ;;  %v11541_v9 = vld [vmem:[%s12175_s29 + $0x1b0] sm:$0xff]   ;;  %v11542_v47 = vld [vmem:[%s12175_s29 + $0x178] sm:$0xff]  }
 0x5d7   : > { %11103 = vmatprep.subr.bf16.mxu1 %v11503_v11  ;;  %11628 = vtanh.f32 %v13321_v34  ;;  %v11544_v11 = vld [vmem:[%s12175_s29 + $0x138] sm:$0xff]   ;;  %v11547_v34 = vld [vmem:[%s12175_s29 + $0x2c0] sm:$0xff]  }
 0x5d8   : > { %v11545_v30 = vld [vmem:[%s12175_s29 + $0x1b8] sm:$0xff]   ;;  %11630 = vtanh.f32 %v13313_v42  ;;  %v11573_v42 = vld [vmem:[%s12175_s29 + $0x2b0] sm:$0xff]  }
 0x5d9   : > { %11082 = vmatpush3.bf16.msra.mxu0 %v11504_v60  ;;  %11632 = vtanh.f32 %v13317_v29  ;;  %v11576_v29 = vld [vmem:[%s12175_s29 + $0x238] sm:$0xff]  }
 0x5da   : > { %11104 = vmatpush3.bf16.msra.mxu1 %v11505_v0  ;;  %11083 = vmatprep.subr.bf16.mxu0 %v11506_v16 }
 0x5db   : > { %11105 = vmatprep.subr.bf16.mxu1 %v11507_v62  ;;  %v11548_v62 = vld [vmem:[%s12175_s29 + $0x200] sm:$0xff]  }
 0x5dd   : > { %11084 = vmatpush3.bf16.msra.mxu0 %v11508_v5 }
 0x5de   : > { %11106 = vmatpush3.bf16.msra.mxu1 %v11509_v53  ;;  %11085 = vmatprep.subr.bf16.mxu0 %v11510_v50  ;;  %v11623_v60 = vpop.eup %11622  ;;  %v11549_v50 = vld [vmem:[%s12175_s29 + $0x280] sm:$0xff]  }
 0x5df   : > { %11107 = vmatprep.subr.bf16.mxu1 %v11511_v54  ;;  %v11625_v0 = vpop.eup %11624  ;;  %v8349_v53 = vpack.c.bf16 %v11623_v60, %v11623_v60  ;;  %v11593_v60 = vld [vmem:[%s12175_s29 + $0x398] sm:$0xff]  }
 0x5e0   : > { %v11627_v16 = vpop.eup %11626  ;;  %v8351_v54 = vpack.c.bf16 %v11625_v0, %v11625_v0  ;;  %v11595_v0 = vld [vmem:[%s12175_s29 + $0x3e0] sm:$0xff]  }
 0x5e1   : > { %11086 = vmatpush3.bf16.msra.mxu0 %v11512_v3  ;;  %v11629_v5 = vpop.eup %11628  ;;  %v11550_v3 = vld [vmem:[%s12175_s29 + $0x248] sm:$0xff]  }
 0x5e2   : > { %11108 = vmatpush3.bf16.msra.mxu1 %v11513_v55  ;;  %11115 = vmatprep.subr.bf16.mxu0 %v11514_v59  ;;  %v8354_v55 = vpack.c.bf16 %v11627_v16, %v11627_v16  ;;  %v11551_v59 = vld [vmem:[%s12175_s29 + $0x2c8] sm:$0xff]   ;;  %v8356_v63 = vpack.c.bf16 %v11629_v5, %v11629_v5  ;;  %v11596_v16 = vld [vmem:[%s12175_s29 + $0x320] sm:$0xff]  }
 0x5e3   : > { %11137 = vmatprep.subr.bf16.mxu1 %v11515_v8  ;;  %v11552_v8 = vld [vmem:[%s12175_s29 + $0x208] sm:$0xff]  }
 0x5e4   : > { %9418 = vmatmul.mubr.bf16.vlgmr.msra.gmra.mrb[16].mxu0 %v8345_v13  ;;  %v11557_v13 = vld [vmem:[%s12175_s29 + $0x290] sm:$0xff]   ;;  %v11598_v5 = vld [vmem:[%s12175_s29 + $0x368] sm:$0xff]  }
 0x5e5   : > { %9458 = vmatmul.mubr.bf16.vlgmr.msra.gmra.mrb[16].mxu1 %v8347_v15  ;;  %11116 = vmatpush3.bf16.msra.mxu0 %v11516_v10  ;;  %v11555_v10 = vld [vmem:[%s12175_s29 + $0x2d0] sm:$0xff]   ;;  %v11559_v15 = vld [vmem:[%s12175_s29 + $0x2d8] sm:$0xff]  }
 0x5e6   : > { %9497 = vmatprep.mubr.bf16.mxu0 %v8350_v17  ;;  %11138 = vmatpush3.bf16.msra.mxu1 %v11517_v14  ;;  %v11558_v14 = vld [vmem:[%s12175_s29 + $0x258] sm:$0xff]  }
 0x5e7   : > { %9537 = vmatprep.mubr.bf16.mxu1 %v8352_v21  ;;  %11117 = vmatprep.subr.bf16.mxu0 %v11518_v52  ;;  %v11560_v52 = vld [vmem:[%s12175_s29 + $0x218] sm:$0xff]   ;;  %v11563_v21 = vld [vmem:[%s12175_s29 + $0x2e0] sm:$0xff]  }
 0x5e8   : > { %11139 = vmatprep.subr.bf16.mxu1 %v11519_v19  ;;  %v11561_v17 = vld [vmem:[%s12175_s29 + $0x298] sm:$0xff]   ;;  %v11562_v19 = vld [vmem:[%s12175_s29 + $0x260] sm:$0xff]  }
 0x5e9   : > { %11118 = vmatpush3.bf16.msra.mxu0 %v11520_v22  ;;  %v11564_v22 = vld [vmem:[%s12175_s29 + $0x220] sm:$0xff]  }
 0x5ea   : > { %11140 = vmatpush3.bf16.msra.mxu1 %v11521_v20  ;;  %11119 = vmatprep.subr.bf16.mxu0 %v11522_v23  ;;  %v11565_v20 = vld [vmem:[%s12175_s29 + $0x2a0] sm:$0xff]   ;;  %v11566_v23 = vld [vmem:[%s12175_s29 + $0x268] sm:$0xff]  }
 0x5eb   : > { %11141 = vmatprep.subr.bf16.mxu1 %v11523_v24  ;;  %v11567_v24 = vld [vmem:[%s12175_s29 + $0x2e8] sm:$0xff]  }
 0x5ed   : > { %11120 = vmatpush3.bf16.msra.mxu0 %v11524_v26  ;;  %v11568_v26 = vld [vmem:[%s12175_s29 + $0x228] sm:$0xff]  }
 0x5ee   : > { %11142 = vmatpush3.bf16.msra.mxu1 %v11525_v28  ;;  %11121 = vmatprep.subr.bf16.mxu0 %v11526_v31  ;;  %v11569_v28 = vld [vmem:[%s12175_s29 + $0x2a8] sm:$0xff]   ;;  %v11570_v31 = vld [vmem:[%s12175_s29 + $0x270] sm:$0xff]  }
 0x5ef   : > { %11143 = vmatprep.subr.bf16.mxu1 %v11527_v32  ;;  %v11571_v32 = vld [vmem:[%s12175_s29 + $0x2f0] sm:$0xff]  }
 0x5f1   : > { %11122 = vmatpush3.bf16.msra.mxu0 %v11528_v33  ;;  %v11574_v33 = vld [vmem:[%s12175_s29 + $0x278] sm:$0xff]  }
 0x5f2   : > { %11144 = vmatpush3.bf16.msra.mxu1 %v11529_v37  ;;  %11123 = vmatprep.subr.bf16.mxu0 %v11530_v38  ;;  %v11577_v37 = vld [vmem:[%s12175_s29 + $0x2b8] sm:$0xff]   ;;  %v11578_v38 = vld [vmem:[%s12175_s29 + $0x340] sm:$0xff]  }
 0x5f3   : > { %11145 = vmatprep.subr.bf16.mxu1 %v11531_v40  ;;  %v11631_v40 = vpop.eup %11630 }
 0x5f5   : > { %11124 = vmatpush3.bf16.msra.mxu0 %v11532_v43  ;;  %v11633_v43 = vpop.eup %11632 }
 0x5f6   : > { %11146 = vmatpush3.bf16.msra.mxu1 %v11533_v1  ;;  %11125 = vmatprep.subr.bf16.mxu0 %v11534_v44  ;;  %v8353_v1 = vpack.c.bf16 %v11631_v40, %v11631_v40  ;;  %v11581_v44 = vld [vmem:[%s12175_s29 + $0x380] sm:$0xff]  }
 0x5f7   : > { %11147 = vmatprep.subr.bf16.mxu1 %v11535_v58  ;;  %v11582_v58 = vld [vmem:[%s12175_s29 + $0x348] sm:$0xff]  }
 0x5f9   : > { %11126 = vmatpush3.bf16.msra.mxu0 %v11536_v7  ;;  %v8355_v7 = vpack.c.bf16 %v11633_v43, %v11633_v43 }
 0x5fa   : > { %11148 = vmatpush3.bf16.msra.mxu1 %v11537_v56  ;;  %11127 = vmatprep.subr.bf16.mxu0 %v11538_v61  ;;  %v11583_v56 = vld [vmem:[%s12175_s29 + $0x3c8] sm:$0xff]  }
 0x5fb   : > { %11149 = vmatprep.subr.bf16.mxu1 %v11539_v4  ;;  %v11584_v61 = vld [vmem:[%s12175_s29 + $0x308] sm:$0xff]  }
 0x5fc   : > { %v11585_v4 = vld [vmem:[%s12175_s29 + $0x388] sm:$0xff]  }
 0x5fd   : > { %11128 = vmatpush3.bf16.msra.mxu0 %v11540_v45  ;;  %v11586_v45 = vld [vmem:[%s12175_s29 + $0x350] sm:$0xff]  }
 0x5fe   : > { %11150 = vmatpush3.bf16.msra.mxu1 %v11541_v9  ;;  %11129 = vmatprep.subr.bf16.mxu0 %v11542_v47  ;;  %v11587_v9 = vld [vmem:[%s12175_s29 + $0x3d0] sm:$0xff]  }
 0x5ff   : > { %11151 = vmatprep.subr.bf16.mxu1 %v11543_v48  ;;  %v11588_v47 = vld [vmem:[%s12175_s29 + $0x310] sm:$0xff]  }
 0x600   : > { %v11589_v48 = vld [vmem:[%s12175_s29 + $0x390] sm:$0xff]  }
 0x601   : > { %11130 = vmatpush3.bf16.msra.mxu0 %v11544_v11  ;;  %v11590_v11 = vld [vmem:[%s12175_s29 + $0x358] sm:$0xff]  }
 0x602   : > { %11152 = vmatpush3.bf16.msra.mxu1 %v11545_v30  ;;  %11159 = vmatprep.subr.bf16.mxu0 %v11546_v49  ;;  %v11591_v30 = vld [vmem:[%s12175_s29 + $0x3d8] sm:$0xff]  }
 0x603   : > { %11181 = vmatprep.subr.bf16.mxu1 %v11547_v34  ;;  %v11592_v49 = vld [vmem:[%s12175_s29 + $0x318] sm:$0xff]   ;;  %v11594_v34 = vld [vmem:[%s12175_s29 + $0x360] sm:$0xff]  }
 0x604   : > { %9498 = vmatmul.mubr.bf16.vlgmr.msra.gmra.mrb[20].mxu0 %v8349_v53  ;;  %v11599_v53 = vld [vmem:[%s12175_s29 + $0x3e8] sm:$0xff]  }
 0x605   : > { %9538 = vmatmul.mubr.bf16.vlgmr.msra.gmra.mrb[20].mxu1 %v8351_v54  ;;  %11160 = vmatpush3.bf16.msra.mxu0 %v11548_v62  ;;  %v11597_v62 = vld [vmem:[%s12175_s29 + $0x3a0] sm:$0xff]   ;;  %v11601_v54 = vld [vmem:[%s12175_s29 + $0x3a8] sm:$0xff]  }
 0x606   : > { %9577 = vmatprep.mubr.bf16.mxu0 %v8354_v55  ;;  %11182 = vmatpush3.bf16.msra.mxu1 %v11549_v50  ;;  %v11600_v50 = vld [vmem:[%s12175_s29 + $0x328] sm:$0xff]   ;;  %v11603_v55 = vld [vmem:[%s12175_s29 + $0x3f0] sm:$0xff]  }
 0x607   : > { %9617 = vmatprep.mubr.bf16.mxu1 %v8356_v63  ;;  %11161 = vmatprep.subr.bf16.mxu0 %v11550_v3  ;;  %v11602_v3 = vld [vmem:[%s12175_s29 + $0x370] sm:$0xff]  }
 0x608   : > { %11183 = vmatprep.subr.bf16.mxu1 %v11551_v59  ;;  %v11604_v59 = vld [vmem:[%s12175_s29 + $0x330] sm:$0xff]  }
 0x609   : > { %11162 = vmatpush3.bf16.msra.mxu0 %v11552_v8  ;;  %v11605_v63 = vld [vmem:[%s12175_s29 + $0x3b0] sm:$0xff]   ;;  %v11606_v8 = vld [vmem:[%s12175_s29 + $0x378] sm:$0xff]  }
 0x60a   : > { %11184 = vmatpush3.bf16.msra.mxu1 %v11553_v6  ;;  %11163 = vmatprep.subr.bf16.mxu0 %v11554_v51  ;;  %v11607_v6 = vld [vmem:[%s12175_s29 + $0x3f8] sm:$0xff]  }
 0x60b   : > { %11185 = vmatprep.subr.bf16.mxu1 %v11555_v10  ;;  %v11608_v51 = vld [vmem:[%s12175_s29 + $0x338] sm:$0xff]  }
 0x60c   : > { %v11609_v10 = vld [vmem:[%s12175_s29 + $0x3b8] sm:$0xff]  }
 0x60d   : > { %11164 = vmatpush3.bf16.msra.mxu0 %v11556_v12  ;;  %v1839_v12 = vrot.slane %v13289_v57, %v1806_v25 }
 0x60e   : > { %11186 = vmatpush3.bf16.msra.mxu1 %v11557_v13  ;;  %11165 = vmatprep.subr.bf16.mxu0 %v11558_v14  ;;  %v1847_v13 = vrot.slane %v13289_v57, %v1814_v27  ;;  %v1843_v14 = vrot.slane %v13289_v57, %v1810_v35 }
 0x60f   : > { %11187 = vmatprep.subr.bf16.mxu1 %v11559_v15  ;;  %v1851_v15 = vrot.slane %v13289_v57, %v1818_v2 }
 0x611   : > { %11166 = vmatpush3.bf16.msra.mxu0 %v11560_v52 }
 0x612   : > { %11188 = vmatpush3.bf16.msra.mxu1 %v11561_v17  ;;  %11167 = vmatprep.subr.bf16.mxu0 %v11562_v19 }
 0x613   : > { %11189 = vmatprep.subr.bf16.mxu1 %v11563_v21 }
 0x615   : > { %11168 = vmatpush3.bf16.msra.mxu0 %v11564_v22 }
 0x616   : > { %11190 = vmatpush3.bf16.msra.mxu1 %v11565_v20  ;;  %11169 = vmatprep.subr.bf16.mxu0 %v11566_v23 }
 0x617   : > { %11191 = vmatprep.subr.bf16.mxu1 %v11567_v24 }
 0x619   : > { %11170 = vmatpush3.bf16.msra.mxu0 %v11568_v26 }
 0x61a   : > { %11192 = vmatpush3.bf16.msra.mxu1 %v11569_v28  ;;  %11171 = vmatprep.subr.bf16.mxu0 %v11570_v31 }
 0x61b   : > { %11193 = vmatprep.subr.bf16.mxu1 %v11571_v32 }
 0x61d   : > { %11172 = vmatpush3.bf16.msra.mxu0 %v11572_v18 }
 0x61e   : > { %11194 = vmatpush3.bf16.msra.mxu1 %v11573_v42  ;;  %11173 = vmatprep.subr.bf16.mxu0 %v11574_v33 }
 0x61f   : > { %11195 = vmatprep.subr.bf16.mxu1 %v11575_v36 }
 0x621   : > { %11174 = vmatpush3.bf16.msra.mxu0 %v11576_v29 }
 0x622   : > { %11196 = vmatpush3.bf16.msra.mxu1 %v11577_v37  ;;  %11203 = vmatprep.subr.bf16.mxu0 %v11578_v38 }
 0x623   : > { %11225 = vmatprep.subr.bf16.mxu1 %v11579_v41 }
 0x624   : > { %9578 = vmatmul.mubr.bf16.vlgmr.msra.gmra.mrb[24].mxu0 %v8353_v1 }
 0x625   : > { %9618 = vmatmul.mubr.bf16.vlgmr.msra.gmra.mrb[24].mxu1 %v8355_v7  ;;  %11204 = vmatpush3.bf16.msra.mxu0 %v11580_v39 }
 0x626   : > { %11226 = vmatpush3.bf16.msra.mxu1 %v11581_v44  ;;  %11205 = vmatprep.subr.bf16.mxu0 %v11582_v58 }
 0x627   : > { %11227 = vmatprep.subr.bf16.mxu1 %v11583_v56 }
 0x629   : > { %11206 = vmatpush3.bf16.msra.mxu0 %v11584_v61 }
 0x62a   : > { %11228 = vmatpush3.bf16.msra.mxu1 %v11585_v4  ;;  %11207 = vmatprep.subr.bf16.mxu0 %v11586_v45 }
 0x62b   : > { %11229 = vmatprep.subr.bf16.mxu1 %v11587_v9 }
 0x62d   : > { %11208 = vmatpush3.bf16.msra.mxu0 %v11588_v47 }
 0x62e   : > { %11230 = vmatpush3.bf16.msra.mxu1 %v11589_v48  ;;  %11209 = vmatprep.subr.bf16.mxu0 %v11590_v11 }
 0x62f   : > { %11231 = vmatprep.subr.bf16.mxu1 %v11591_v30 }
 0x631   : > { %11210 = vmatpush3.bf16.msra.mxu0 %v11592_v49 }
 0x632   : > { %11232 = vmatpush3.bf16.msra.mxu1 %v11593_v60  ;;  %11211 = vmatprep.subr.bf16.mxu0 %v11594_v34 }
 0x633   : > { %11233 = vmatprep.subr.bf16.mxu1 %v11595_v0 }
 0x635   : > { %11212 = vmatpush3.bf16.msra.mxu0 %v11596_v16 }
 0x636   : > { %11234 = vmatpush3.bf16.msra.mxu1 %v11597_v62  ;;  %11213 = vmatprep.subr.bf16.mxu0 %v11598_v5 }
 0x637   : > { %11235 = vmatprep.subr.bf16.mxu1 %v11599_v53 }
 0x639   : > { %11214 = vmatpush3.bf16.msra.mxu0 %v11600_v50 }
 0x63a   : > { %11236 = vmatpush3.bf16.msra.mxu1 %v11601_v54  ;;  %11215 = vmatprep.subr.bf16.mxu0 %v11602_v3 }
 0x63b   : > { %11237 = vmatprep.subr.bf16.mxu1 %v11603_v55 }
 0x63d   : > { %11216 = vmatpush3.bf16.msra.mxu0 %v11604_v59 }
 0x63e   : > { %11238 = vmatpush3.bf16.msra.mxu1 %v11605_v63  ;;  %11217 = vmatprep.subr.bf16.mxu0 %v11606_v8 }
 0x63f   : > { %11239 = vmatprep.subr.bf16.mxu1 %v11607_v6 }
 0x641   : > { %11218 = vmatpush3.bf16.msra.mxu0 %v11608_v51 }
 0x642   : > { %11240 = vmatpush3.bf16.msra.mxu1 %v11609_v10 }
 0x697   : > { %v8157_v52 = vpop.f32.mrb[12].mxu0  ;;  %v8321_v19 = vpop.f32.mrb[12].mxu1 }
 0x698   : > { %v11259_v17 = vadd.f32 %v8157_v52, %v1839_v12  ;;  %v8159_v21 = vpop.f32.mrb[13].mxu0  ;;  %v11261_v22 = vadd.f32 %v8321_v19, %v1847_v13  ;;  %v8323_v23 = vpop.f32.mrb[13].mxu1  ;;  %v8344_v19 = vld [vmem:[#allocation14] sm:$0xff] }
 0x699   : > { %v11260_v20 = vadd.f32 %v8159_v21, %v1843_v14  ;;  %v8161_v25 = vpop.f32.mrb[14].mxu0  ;;  %v11262_v24 = vadd.f32 %v8323_v23, %v1851_v15  ;;  %v8325_v26 = vpop.f32.mrb[14].mxu1  ;;  %v11060_v23 = vld [vmem:[#allocation12] ss:$0 sm:$0xff] (!%p11059_p2) }
 0x69a   : > { %11634 = vtanh.f32 %v11259_v17  ;;  %v8162_v27 = vpop.f32.mrb[15].mxu0  ;;  %v8326_v28 = vpop.f32.mrb[15].mxu1 }
 0x69b   : > { %11636 = vtanh.f32 %v11261_v22 }
 0x69c   : > { %11638 = vtanh.f32 %v11260_v20 }
 0x69d   : > { %11640 = vtanh.f32 %v11262_v24 }
 0x6a4   : > { %v11635_v35 = vpop.eup %11634 }
 0x6a5   : > { %v11637_v46 = vpop.eup %11636  ;;  %v8357_v32 = vpack.c.bf16 %v11635_v35, %v11635_v35 }
 0x6a6   : > { %v11639_v31 = vpop.eup %11638  ;;  %v8359_v42 = vpack.c.bf16 %v11637_v46, %v11637_v46 }
 0x6a7   : > { %v11641_v57 = vpop.eup %11640  ;;  %v8358_v2 = vpack.c.bf16 %v11639_v31, %v11639_v31 }
 0x6a8   : > { %v8360_v18 = vpack.c.bf16 %v11641_v57, %v11641_v57 }
 0x6a9   : > { %9657 = vmatprep.mubr.bf16.mxu0 %v8358_v2 }
 0x6aa   : > { %9697 = vmatprep.mubr.bf16.mxu1 %v8360_v18  ;;  %9658 = vmatmul.mubr.bf16.vlgmr.msra.gmra.mrb[28].mxu0 %v8357_v32 }
 0x6ab   : > { %9698 = vmatmul.mubr.bf16.vlgmr.msra.gmra.mrb[28].mxu1 %v8359_v42 }
 0x6b7   : > { %v11087_v33 = vpop.f32.mrb[16].mxu0 }
 0x6b8   : > { %v11109_v36 = vpop.f32.mrb[16].mxu1  ;;  %v11088_v29 = vpop.f32.mrb[17].mxu0 }
 0x6b9   : > { %v11089_v37 = vadd.f32 %v11088_v29, %v11087_v33  ;;  %v11110_v38 = vpop.f32.mrb[17].mxu1  ;;  %v11090_v40 = vpop.f32.mrb[18].mxu0 }
 0x6ba   : > { %v11111_v41 = vadd.f32 %v11110_v38, %v11109_v36  ;;  %v11112_v43 = vpop.f32.mrb[18].mxu1  ;;  %v11091_v39 = vpop.f32.mrb[19].mxu0 }
 0x6bb   : > { %v11113_v1 = vpop.f32.mrb[19].mxu1 }
 0x6bc   : > { %v9460_v44 = vadd.f32 %v11111_v41, %v11089_v37 }
 0x6d7   : > { %v11131_v58 = vpop.f32.mrb[20].mxu0 }
 0x6d8   : > { %v11153_v7 = vpop.f32.mrb[20].mxu1  ;;  %v11132_v56 = vpop.f32.mrb[21].mxu0 }
 0x6d9   : > { %v11133_v61 = vadd.f32 %v11132_v56, %v11131_v58  ;;  %v11154_v4 = vpop.f32.mrb[21].mxu1  ;;  %v11134_v45 = vpop.f32.mrb[22].mxu0 }
 0x6da   : > { %v11155_v9 = vadd.f32 %v11154_v4, %v11153_v7  ;;  %v11156_v47 = vpop.f32.mrb[22].mxu1  ;;  %v11135_v48 = vpop.f32.mrb[23].mxu0 }
 0x6db   : > { %v9500_v11 = vadd.f32 %v11133_v61, %v9460_v44  ;;  %v11157_v30 = vpop.f32.mrb[23].mxu1 }
 0x6dd   : > { %v9540_v49 = vadd.f32 %v11155_v9, %v9500_v11 }
 0x6f7   : > { %v11175_v60 = vpop.f32.mrb[24].mxu0 }
 0x6f8   : > { %v11197_v34 = vpop.f32.mrb[24].mxu1  ;;  %v11176_v0 = vpop.f32.mrb[25].mxu0 }
 0x6f9   : > { %v11177_v16 = vadd.f32 %v11176_v0, %v11175_v60  ;;  %v11198_v62 = vpop.f32.mrb[25].mxu1  ;;  %v11178_v5 = vpop.f32.mrb[26].mxu0 }
 0x6fa   : > { %v11199_v53 = vadd.f32 %v11198_v62, %v11197_v34  ;;  %v11200_v50 = vpop.f32.mrb[26].mxu1  ;;  %v11179_v54 = vpop.f32.mrb[27].mxu0 }
 0x6fb   : > { %v9580_v3 = vadd.f32 %v11177_v16, %v9540_v49  ;;  %v11201_v55 = vpop.f32.mrb[27].mxu1 }
 0x6fd   : > { %v9620_v59 = vadd.f32 %v11199_v53, %v9580_v3 }
 0x77d   : > { %v11219_v63 = vpop.f32.mrb[28].mxu0 }
 0x77e   : > { %v11241_v8 = vpop.f32.mrb[28].mxu1  ;;  %v11220_v6 = vpop.f32.mrb[29].mxu0 }
 0x77f   : > { %v11221_v51 = vadd.f32 %v11220_v6, %v11219_v63  ;;  %v11242_v10 = vpop.f32.mrb[29].mxu1  ;;  %v11222_v12 = vpop.f32.mrb[30].mxu0 }
 0x780   : > { %v11243_v13 = vadd.f32 %v11242_v10, %v11241_v8  ;;  %v11244_v14 = vpop.f32.mrb[30].mxu1  ;;  %v11223_v15 = vpop.f32.mrb[31].mxu0 }
 0x781   : > { %v9660_v52 = vadd.f32 %v11221_v51, %v9620_v59  ;;  %v11245_v17 = vpop.f32.mrb[31].mxu1  ;;  %9711 = sbr.rel (%p11059_p2) target bundleno = 1938 (0x792), region = 80 }
 0x783   : > { %v9700_v21 = vadd.f32 %v11243_v13, %v9660_v52 }
 0x785   : > { %v9705_v22 = vadd.f32 %v9700_v21, %v8344_v19 }
 0x787   : > { %9707 = vst.msk [vmem:[#allocation14] sm:$0xff] %vm9706_vm2, %v9705_v22 }
 0x78e   : > { %v9712_v20 = vld [vmem:[#allocation14] sm:$0xff] }
 0x78f   : > { %v9720_v25 = vadd.f32 %v11060_v23, %v9712_v20 }
 0x791   : > { %9721 = vst.msk [vmem:[#allocation14] sm:$0xff] %vm9706_vm2, %v9720_v25 }
 0x792 PF: > { %p11412_p4 = scmp.eq.s32.totalorder %s11965_s28, 1  ;;  %s11905_s7 = smov [#allocation14]  }
 0x793   : > { %s9729_s15 = sshll.u32 %s11905_s7, 4  ;;  %s9730_s15 = int_to_ptr.vmem [resolvable:$true] %s9729_s15 }
 0x794   : > { %s11814_s10 = scalar_lea.vmem %s9730_s15, 128  ;;  %p11821_p6 = scmp.lt.s32.totalorder %s9730_s15, %s9730_s15 }
 0x795   : > { %p11815_p8 = scmp.ne.s32.totalorder %s9730_s15, %s11814_s10  ;;  %p11822_p9 = scmp.lt.s32.totalorder %s11814_s10, %s11814_s10 }
 0x797   : > { %p11816_p13 = pnand %p11815_p8, %p11412_p4  ;;  %p11823_p12 = por %p11822_p9, %p11821_p6 }
 0x799   : > { %p11817_p5 = pneg %p11816_p13 }
 0x79b   : > { %p11824_p0 = pnand %p11823_p12, %p11817_p5 }
 0x79d   : > { %11827 = shalt.err (!%p11824_p0)
}
 0x79e   : > { %s13624_s14 = sld [smem:[#allocation24_spill]] }
 0x7a4   : > { %s11828_s8 = scalar_lea.hbm %s13624_s14, 128 }
 0x7a5   : > { %p11829_p11 = scmp.ne.s32.totalorder %s13624_s14, %s11828_s8  ;;  %p11834_p1 = scmp.lt.u32.totalorder %s11828_s8, %s13624_s14 }
 0x7a7   : > { %p11830_p3 = pnand %p11829_p11, %p11412_p4 }
 0x7a9   : > { %p11831_p7 = pneg %p11830_p3 }
 0x7ab   : > { %p11836_p10 = pnand %p11834_p1, %p11831_p7 }
 0x7ad   : > { %11839 = shalt.err (!%p11836_p10)
}
 0x7ae   : > { %11380 = dma.vmem_to_hbm [thread:$0]  (%p11412_p4), %s9730_s15, 128, %s13624_s14, [#allocation5]  }
 0x7af   : > { %11873 = dma.done.wait (%p11412_p4), [#allocation5], 128  }
 0x7b0   : > { %11875 = vsyncadd (%p11412_p4), [#allocation5], 4294967168 }
 0x7b1 PF: > { %s13625_s27 = sld [smem:[#allocation20_spill]]  ;;  %s13626_s20 = sld [smem:[#allocation21_spill]] }
 0x7b2   : > { %s13627_s24 = smov %s11882_s25  ;;  %s13628_s25 = smov %s11886_s26 }
 0x7b7   : > { %p21_p2 = scmp.ge.s32.totalorder %s13625_s27, 4   ;;  %s13629_s26 = smov %s13626_s20 }
 0x7b9   :  { %23 = sbr.rel (!%p21_p2) target bundleno = 11 (0xb), region = 124 }
 0x7c0   :  { %9742 = vsyncpa [#allocation4], 1 }
 0x7c1   :  { %9744 = vsyncpa [#allocation4 + $0x1], 1 }
 0x7c2   :  { %9745 = vsyncpa [#allocation7], 1 }
 0x7c3   :  { %9746 = vsyncpa [#allocation10], 1 }
 0x7c4   :  { %9748 = vsyncpa [#allocation10 + $0x1], 1 }
 0x7c5   :  { %9749 = vsyncpa [#allocation13], 1 }
 0x7c6   :  { %9750 = vsyncpa [#allocation5], 1 }
 0x7c7   :  { %9752 = vsyncpa [#allocation5 + $0x1], 1 }

</bundles_post_ra>
